<compile_context>
chip_gen: v5e
topology: v5e:2x2
jax: 0.10.0
libtpu: 0.0.40
codegen_flags: <defaults>
</compile_context>

<pallas_src>
import functools

import jax
import jax.numpy as jnp
from jax.experimental import pallas as pl
from jax.experimental.pallas import tpu as pltpu


def _round_up(n, m):
    return ((n + m - 1) // m) * m


def pendulum_kernel(x_ref, w_in_ref, b_in_ref, w1_ref, b1_ref,
                    w2_ref, b2_ref, w_out_ref, b_out_ref, o_ref,
                    *, bf16_sin=False):
    # x_ref: (block_b, D_in) native layout; weights: (fan_out, fan_in) PyTorch
    # layout; biases: (fan_out, 1).  Activations kept feature-major
    # (features, block_b) so the batch sits on the lane axis (lane-dense).
    act_dtype = jnp.bfloat16 if bf16_sin else jnp.float32
    prec = jax.lax.Precision.DEFAULT if bf16_sin else jax.lax.Precision.HIGHEST

    # First layer: contract D_in of W (H, D_in) with D_in of x (block_b, D_in)
    # -> (H, block_b).  No wrapper transpose needed; Mosaic handles the NT dot.
    pre = jax.lax.dot_general(
        w_in_ref[...], x_ref[...],
        dimension_numbers=(((1,), (1,)), ((), ())),
        preferred_element_type=jnp.float32, precision=prec) + b_in_ref[...]
    h = jnp.sin(pre.astype(act_dtype))

    for w_ref, b_ref in ((w1_ref, b1_ref), (w2_ref, b2_ref)):
        pre = jnp.dot(w_ref[...].astype(h.dtype), h,
                      preferred_element_type=jnp.float32,
                      precision=prec) + b_ref[...]
        h = jnp.sin(pre.astype(act_dtype))

    y = jnp.dot(w_out_ref[...].astype(h.dtype), h,
                preferred_element_type=jnp.float32,
                precision=prec) + b_out_ref[...]
    o_ref[...] = y.astype(o_ref.dtype)          # (D_out, block_b): lane-dense store


@functools.partial(jax.jit, static_argnames=("max_block_b", "bf16_sin"))
def pendulum_net(x, params, *, max_block_b=8192, bf16_sin=False):
    """x: (B, D_in) float32.  params: PyTorch-layout weights (out,in), biases (out,1)."""
    B, D_in = x.shape
    H, _ = params["w_in"].shape
    D_out, _ = params["w_out"].shape
    assert max_block_b % 128 == 0 and max_block_b >= 128

    # Batch tile: multiple of 128 (lane-dense output stores), as large as
    # possible (amortize per-step overhead), but targeting >= 2 grid steps when
    # the batch allows so v7x's two TensorCores both get work.
    B128 = _round_up(B, 128)
    if B128 <= 128:
        block_b = 128
    else:
        block_b = min(max_block_b, _round_up(pl.cdiv(B128, 2), 128))
    grid = (pl.cdiv(B, block_b),)   # ragged last tile handled (masked) by Pallas

    # Weights/biases are ~5 KB total -> replicate the full tensors every step.
    def full(shape):
        return pl.BlockSpec(shape, lambda i: tuple(0 for _ in shape))

    n_params = (D_in * H + H) + 2 * (H * H + H) + (H * D_out + D_out)
    cost = pl.CostEstimate(
        flops=2 * B * (D_in * H + 2 * H * H + H * D_out),
        transcendentals=3 * B * H,
        bytes_accessed=4 * (B * (D_in + D_out) + n_params),
    )

    out_t = pl.pallas_call(
        functools.partial(pendulum_kernel, bf16_sin=bf16_sin),
        out_shape=jax.ShapeDtypeStruct((D_out, B), jnp.float32),
        grid_spec=pltpu.PrefetchScalarGridSpec(
            num_scalar_prefetch=0,
            grid=grid,
            in_specs=[
                pl.BlockSpec((block_b, D_in), lambda i: (i, 0)),   # x tile (native)
                full((H, D_in)),  full((H, 1)),                    # input layer
                full((H, H)),     full((H, 1)),                    # fc1
                full((H, H)),     full((H, 1)),                    # fc2
                full((D_out, H)), full((D_out, 1)),                # out layer
            ],
            out_specs=pl.BlockSpec((D_out, block_b), lambda i: (0, i)),
        ),
        compiler_params=pltpu.CompilerParams(
            dimension_semantics=("parallel",),
            vmem_limit_bytes=32 * 1024 * 1024),
        cost_estimate=cost,
    )(x, params["w_in"], params["b_in"], params["w1"], params["b1"],
      params["w2"], params["b2"], params["w_out"], params["b_out"])

    # Tiny (D_out, B) -> (B, D_out) transpose; keeps the kernel's store lane-dense.
    return out_t.T


def init_params(key, D_in, H, D_out):
    """PyTorch-Linear-style init: U(-1/sqrt(fan_in), 1/sqrt(fan_in)).
    Weights stored PyTorch-style as (fan_out, fan_in); biases as (fan_out, 1)."""
    def layer(k, fan_in, fan_out):
        kw, kb = jax.random.split(k)
        bound = 1.0 / jnp.sqrt(fan_in)
        w = jax.random.uniform(kw, (fan_out, fan_in), jnp.float32, -bound, bound)
        b = jax.random.uniform(kb, (fan_out, 1), jnp.float32, -bound, bound)
        return w, b

    k0, k1, k2, k3 = jax.random.split(key, 4)
    w_in, b_in = layer(k0, D_in, H)
    w1, b1 = layer(k1, H, H)
    w2, b2 = layer(k2, H, H)
    w_out, b_out = layer(k3, H, D_out)
    return dict(w_in=w_in, b_in=b_in, w1=w1, b1=b1,
                w2=w2, b2=b2, w_out=w_out, b_out=b_out)


def reference_net(x, p):
    prec = jax.lax.Precision.HIGHEST   # true-f32 reference (matches PyTorch f32)
    h = jnp.sin(jnp.dot(x, p["w_in"].T, precision=prec) + p["b_in"][:, 0])
    h = jnp.sin(jnp.dot(h, p["w1"].T, precision=prec) + p["b1"][:, 0])
    h = jnp.sin(jnp.dot(h, p["w2"].T, precision=prec) + p["b2"][:, 0])
    return jnp.dot(h, p["w_out"].T, precision=prec) + p["b_out"][:, 0]


if __name__ == "__main__":
    # Small shapes consistent with the module: pendulum state -> D_in small.
    D_in, H, D_out = 4, 32, 2

    key = jax.random.PRNGKey(0)
    k_x, k_x2, k_p = jax.random.split(key, 3)
    params = init_params(k_p, D_in, H, D_out)

    # Small batch: single grid step.
    x = jax.random.normal(k_x, (16, D_in), jnp.float32)
    out = jax.block_until_ready(pendulum_net(x, params))
    ref = reference_net(x, params)
    assert out.shape == (16, D_out)
    assert jnp.allclose(out, ref, atol=1e-5, rtol=1e-5), "mismatch (B=16)"

    # Ragged batch: exercises 2 grid steps + masked last tile (no padding pass).
    x2 = jax.random.normal(k_x2, (300, D_in), jnp.float32)
    out2 = jax.block_until_ready(pendulum_net(x2, params))
    ref2 = reference_net(x2, params)
    assert out2.shape == (300, D_out)
    assert jnp.allclose(out2, ref2, atol=1e-5, rtol=1e-5), "mismatch (B=300)"

    print("KERNEL_OK")
</pallas_src>

<mosaic_0001>
module attributes {stable_mosaic.version = 11 : i64} {
  func.func @pendulum_kernel(%arg0: i32, %arg1: memref<128x4xf32, #tpu.memory_space<vmem>>, %arg2: memref<32x4xf32, #tpu.memory_space<vmem>>, %arg3: memref<32x1xf32, #tpu.memory_space<vmem>>, %arg4: memref<32x32xf32, #tpu.memory_space<vmem>>, %arg5: memref<32x1xf32, #tpu.memory_space<vmem>>, %arg6: memref<32x32xf32, #tpu.memory_space<vmem>>, %arg7: memref<32x1xf32, #tpu.memory_space<vmem>>, %arg8: memref<2x32xf32, #tpu.memory_space<vmem>>, %arg9: memref<2x1xf32, #tpu.memory_space<vmem>>, %arg10: memref<2x128xf32, #tpu.memory_space<vmem>>) attributes {dimension_semantics = [#tpu.dimension_semantics<parallel>], iteration_bounds = array<i64: 1>, scalar_prefetch = 0 : i64, scratch_operands = 0 : i64, tpu.core_type = #tpu.core_type<tc>, window_params = [{transform_indices = @transform_0, window_bounds = array<i64: 128, 4>}, {pipeline_mode = #tpu.pipeline_mode<synchronous>, transform_indices = @transform_1, window_bounds = array<i64: 32, 4>}, {pipeline_mode = #tpu.pipeline_mode<synchronous>, transform_indices = @transform_2, window_bounds = array<i64: 32, 1>}, {pipeline_mode = #tpu.pipeline_mode<synchronous>, transform_indices = @transform_3, window_bounds = array<i64: 32, 32>}, {pipeline_mode = #tpu.pipeline_mode<synchronous>, transform_indices = @transform_4, window_bounds = array<i64: 32, 1>}, {pipeline_mode = #tpu.pipeline_mode<synchronous>, transform_indices = @transform_5, window_bounds = array<i64: 32, 32>}, {pipeline_mode = #tpu.pipeline_mode<synchronous>, transform_indices = @transform_6, window_bounds = array<i64: 32, 1>}, {pipeline_mode = #tpu.pipeline_mode<synchronous>, transform_indices = @transform_7, window_bounds = array<i64: 2, 32>}, {pipeline_mode = #tpu.pipeline_mode<synchronous>, transform_indices = @transform_8, window_bounds = array<i64: 2, 1>}, {transform_indices = @transform_9, window_bounds = array<i64: 2, 128>}]} {
    %c0 = arith.constant 0 : index
    %c0_0 = arith.constant 0 : index
    %0 = vector.load %arg2[%c0, %c0_0] : memref<32x4xf32, #tpu.memory_space<vmem>>, vector<32x4xf32>
    %c0_1 = arith.constant 0 : index
    %c0_2 = arith.constant 0 : index
    %1 = vector.load %arg1[%c0_1, %c0_2] : memref<128x4xf32, #tpu.memory_space<vmem>>, vector<128x4xf32>
    %cst = arith.constant dense<0.000000e+00> : vector<32x128xf32>
    %2 = tpu.matmul %0, %1, %cst {dimension_numbers = #tpu.dot_dimension_numbers<[1], [1], [0], [0], [0, 0, 1, 0], [], []>, precision = #tpu.contract_precision<fp32>} : vector<32x4xf32>, vector<128x4xf32>, vector<32x128xf32> -> vector<32x128xf32>
    %c0_3 = arith.constant 0 : index
    %c0_4 = arith.constant 0 : index
    %3 = vector.load %arg3[%c0_3, %c0_4] : memref<32x1xf32, #tpu.memory_space<vmem>>, vector<32x1xf32>
    %4 = vector.broadcast %3 : vector<32x1xf32> to vector<32x128xf32>
    %5 = arith.addf %2, %4 : vector<32x128xf32>
    %6 = math.sin %5 : vector<32x128xf32>
    %c0_5 = arith.constant 0 : index
    %c0_6 = arith.constant 0 : index
    %7 = vector.load %arg4[%c0_5, %c0_6] : memref<32x32xf32, #tpu.memory_space<vmem>>, vector<32x32xf32>
    %cst_7 = arith.constant dense<0.000000e+00> : vector<32x128xf32>
    %8 = tpu.matmul %7, %6, %cst_7 {dimension_numbers = #tpu.dot_dimension_numbers<[1], [0], [0], [1], [0, 0, 1, 1], [], []>, precision = #tpu.contract_precision<fp32>} : vector<32x32xf32>, vector<32x128xf32>, vector<32x128xf32> -> vector<32x128xf32>
    %c0_8 = arith.constant 0 : index
    %c0_9 = arith.constant 0 : index
    %9 = vector.load %arg5[%c0_8, %c0_9] : memref<32x1xf32, #tpu.memory_space<vmem>>, vector<32x1xf32>
    %10 = vector.broadcast %9 : vector<32x1xf32> to vector<32x128xf32>
    %11 = arith.addf %8, %10 : vector<32x128xf32>
    %12 = math.sin %11 : vector<32x128xf32>
    %c0_10 = arith.constant 0 : index
    %c0_11 = arith.constant 0 : index
    %13 = vector.load %arg6[%c0_10, %c0_11] : memref<32x32xf32, #tpu.memory_space<vmem>>, vector<32x32xf32>
    %cst_12 = arith.constant dense<0.000000e+00> : vector<32x128xf32>
    %14 = tpu.matmul %13, %12, %cst_12 {dimension_numbers = #tpu.dot_dimension_numbers<[1], [0], [0], [1], [0, 0, 1, 1], [], []>, precision = #tpu.contract_precision<fp32>} : vector<32x32xf32>, vector<32x128xf32>, vector<32x128xf32> -> vector<32x128xf32>
    %c0_13 = arith.constant 0 : index
    %c0_14 = arith.constant 0 : index
    %15 = vector.load %arg7[%c0_13, %c0_14] : memref<32x1xf32, #tpu.memory_space<vmem>>, vector<32x1xf32>
    %16 = vector.broadcast %15 : vector<32x1xf32> to vector<32x128xf32>
    %17 = arith.addf %14, %16 : vector<32x128xf32>
    %18 = math.sin %17 : vector<32x128xf32>
    %c0_15 = arith.constant 0 : index
    %c0_16 = arith.constant 0 : index
    %19 = vector.load %arg8[%c0_15, %c0_16] : memref<2x32xf32, #tpu.memory_space<vmem>>, vector<2x32xf32>
    %cst_17 = arith.constant dense<0.000000e+00> : vector<2x128xf32>
    %20 = tpu.matmul %19, %18, %cst_17 {dimension_numbers = #tpu.dot_dimension_numbers<[1], [0], [0], [1], [0, 0, 1, 1], [], []>, precision = #tpu.contract_precision<fp32>} : vector<2x32xf32>, vector<32x128xf32>, vector<2x128xf32> -> vector<2x128xf32>
    %c0_18 = arith.constant 0 : index
    %c0_19 = arith.constant 0 : index
    %21 = vector.load %arg9[%c0_18, %c0_19] : memref<2x1xf32, #tpu.memory_space<vmem>>, vector<2x1xf32>
    %22 = vector.broadcast %21 : vector<2x1xf32> to vector<2x128xf32>
    %23 = arith.addf %20, %22 : vector<2x128xf32>
    %c0_20 = arith.constant 0 : index
    %c0_21 = arith.constant 0 : index
    %24 = vector.load %arg10[%c0_20, %c0_21] : memref<2x128xf32, #tpu.memory_space<vmem>>, vector<2x128xf32>
    tpu.vector_store %arg10[%c0_20, %c0_21], %23 {strides = array<i32>} : memref<2x128xf32, #tpu.memory_space<vmem>>, vector<2x128xf32>,
    return
  }
  func.func @transform_0(%arg0: i32) -> (i32, i32) {
    %c0_i32 = arith.constant 0 : i32
    %c0_i32_0 = arith.constant 0 : i32
    return %arg0, %c0_i32 : i32, i32
  }
  func.func @transform_1(%arg0: i32) -> (i32, i32) {
    %c0_i32 = arith.constant 0 : i32
    %c0_i32_0 = arith.constant 0 : i32
    %c0_i32_1 = arith.constant 0 : i32
    return %c0_i32, %c0_i32_0 : i32, i32
  }
  func.func @transform_2(%arg0: i32) -> (i32, i32) {
    %c0_i32 = arith.constant 0 : i32
    %c0_i32_0 = arith.constant 0 : i32
    %c0_i32_1 = arith.constant 0 : i32
    return %c0_i32, %c0_i32_0 : i32, i32
  }
  func.func @transform_3(%arg0: i32) -> (i32, i32) {
    %c0_i32 = arith.constant 0 : i32
    %c0_i32_0 = arith.constant 0 : i32
    %c0_i32_1 = arith.constant 0 : i32
    return %c0_i32, %c0_i32_0 : i32, i32
  }
  func.func @transform_4(%arg0: i32) -> (i32, i32) {
    %c0_i32 = arith.constant 0 : i32
    %c0_i32_0 = arith.constant 0 : i32
    %c0_i32_1 = arith.constant 0 : i32
    return %c0_i32, %c0_i32_0 : i32, i32
  }
  func.func @transform_5(%arg0: i32) -> (i32, i32) {
    %c0_i32 = arith.constant 0 : i32
    %c0_i32_0 = arith.constant 0 : i32
    %c0_i32_1 = arith.constant 0 : i32
    return %c0_i32, %c0_i32_0 : i32, i32
  }
  func.func @transform_6(%arg0: i32) -> (i32, i32) {
    %c0_i32 = arith.constant 0 : i32
    %c0_i32_0 = arith.constant 0 : i32
    %c0_i32_1 = arith.constant 0 : i32
    return %c0_i32, %c0_i32_0 : i32, i32
  }
  func.func @transform_7(%arg0: i32) -> (i32, i32) {
    %c0_i32 = arith.constant 0 : i32
    %c0_i32_0 = arith.constant 0 : i32
    %c0_i32_1 = arith.constant 0 : i32
    return %c0_i32, %c0_i32_0 : i32, i32
  }
  func.func @transform_8(%arg0: i32) -> (i32, i32) {
    %c0_i32 = arith.constant 0 : i32
    %c0_i32_0 = arith.constant 0 : i32
    %c0_i32_1 = arith.constant 0 : i32
    return %c0_i32, %c0_i32_0 : i32, i32
  }
  func.func @transform_9(%arg0: i32) -> (i32, i32) {
    %c0_i32 = arith.constant 0 : i32
    %c0_i32_0 = arith.constant 0 : i32
    return %c0_i32, %arg0 : i32, i32
  }
}

</mosaic_0001>

<bundles_post_ra>
// kernel: pendulum_net.1
= control target key start
LH: loop header
LB: loop body
LE: loop exit
PB: predicated region body
PF: predicated region fallthrough
CT: control target
= control target key end

     0   :  { %vm77_vm0 = vcmask 31744   ;;  %s5255_s0 = inlined_call_operand.vmem [shape: f32[16,4], index: 0, kind: input, shape index: {}]   ;;  %s5256_s1 = inlined_call_operand.vmem [shape: f32[32,4], index: 1, kind: input, shape index: {}]   ;;  %s5257_s2 = inlined_call_operand.vmem [shape: f32[32,1], index: 2, kind: input, shape index: {}]   ;;  %s5258_s3 = inlined_call_operand.vmem [shape: f32[32,32], index: 3, kind: input, shape index: {}]   ;;  %s5259_s4 = inlined_call_operand.vmem [shape: f32[32,1], index: 4, kind: input, shape index: {}]   ;;  %s5260_s5 = inlined_call_operand.vmem [shape: f32[32,32], index: 5, kind: input, shape index: {}]   ;;  %s5261_s6 = inlined_call_operand.vmem [shape: f32[32,1], index: 6, kind: input, shape index: {}]   ;;  %s5262_s7 = inlined_call_operand.vmem [shape: f32[2,32], index: 7, kind: input, shape index: {}]   ;;  %s5263_s8 = inlined_call_operand.vmem [shape: f32[2,1], index: 8, kind: input, shape index: {}]   ;;  %s5264_s9 = inlined_call_operand.hbm [shape: f32[2,16], index: 9, kind: output, shape index: {}]  }
   0x1   :  { %v52_v0 = vld [vmem:[%s5255_s0 + $0x78] sm:$0xff]  ;;  %v51_v1 = vld [vmem:[%s5255_s0 + $0x70] sm:$0xff]  ;;  %v50_v2 = vld [vmem:[%s5255_s0 + $0x68] sm:$0xff] }
   0x2   :  { %v136_v3 = vsel %vm77_vm0, %v52_v0, 0  ;;  %v133_v4 = vsel %vm77_vm0, %v51_v1, 0  ;;  %v130_v5 = vsel %vm77_vm0, %v50_v2, 0  ;;  %v49_v6 = vld [vmem:[%s5255_s0 + $0x60] sm:$0xff]  ;;  %v48_v7 = vld [vmem:[%s5255_s0 + $0x58] sm:$0xff]  ;;  %v47_v17 = vld [vmem:[%s5255_s0 + $0x50] sm:$0xff] }
   0x3   :  { %v3430_v8 = vand.u32 4294901760, %v136_v3  ;;  %v3432_v9 = vand.u32 4294901760, %v133_v4  ;;  %v3434_v10 = vand.u32 4294901760, %v130_v5  ;;  %v127_v11 = vsel %vm77_vm0, %v49_v6, 0 }
   0x4   :  { %v3437_v12 = vand.u32 4294901760, %v127_v11  ;;  %v124_v15 = vsel %vm77_vm0, %v48_v7, 0 }
   0x5   :  { %139 = vmatpush.xpose.msra.mxu0 %v3430_v8  ;;  %v3441_v13 = vsub.f32 %v136_v3, %v3430_v8  ;;  %v3444_v14 = vsub.f32 %v133_v4, %v3432_v9  ;;  %v3448_v16 = vsub.f32 %v130_v5, %v3434_v10  ;;  %386 = vmatpush.xpose.msra.mxu3 %v3430_v8 }
   0x6   :  { %14 = vsyncpa [#allocation3], 0  ;;  %v3457_v20 = vand.u32 4294901760, %v124_v15  ;;  %v121_v21 = vsel %vm77_vm0, %v47_v17, 0  ;;  %v3469_v25 = vsub.f32 %v127_v11, %v3437_v12  ;;  %v46_v26 = vld [vmem:[%s5255_s0 + $0x48] sm:$0xff]  ;;  %v45_v34 = vld [vmem:[%s5255_s0 + $0x40] sm:$0xff] }
   0x7   :  { %v205_v18 = vand.u32 4294901760, %v3441_v13  ;;  %v211_v19 = vand.u32 4294901760, %v3444_v14  ;;  %318 = vmatpush.xpose.msra.mxu2 %v3441_v13  ;;  %v217_v24 = vand.u32 4294901760, %v3448_v16  ;;  %v3476_v28 = vand.u32 4294901760, %v121_v21  ;;  %v44_v41 = vld [vmem:[%s5255_s0 + $0x38] sm:$0xff]  ;;  %v43_v48 = vld [vmem:[%s5255_s0 + $0x30] sm:$0xff] }
   0x8   :  { %v118_v29 = vsel %vm77_vm0, %v46_v26, 0  ;;  %v223_v32 = vand.u32 4294901760, %v3469_v25  ;;  %v3485_v33 = vsub.f32 %v124_v15, %v3457_v20  ;;  %v115_v40 = vsel %vm77_vm0, %v45_v34, 0  ;;  %v42_v55 = vld [vmem:[%s5255_s0 + $0x28] sm:$0xff]  ;;  %v41_v62 = vld [vmem:[%s5255_s0 + $0x20] sm:$0xff]  ;;  %v40_v5 = vld [vmem:[%s5255_s0 + $0x18] sm:$0xff] }
   0x9   :  { %141 = vmatpush.xpose.msra.mxu0 %v3432_v9  ;;  %v206_v22 = vsub.f32 %v3441_v13, %v205_v18  ;;  %v212_v23 = vsub.f32 %v3444_v14, %v211_v19  ;;  %388 = vmatpush.xpose.msra.mxu3 %v3432_v9  ;;  %v218_v31 = vsub.f32 %v3448_v16, %v217_v24  ;;  %v3492_v35 = vand.u32 4294901760, %v118_v29  ;;  %v38_v34 = vld [vmem:[%s5255_s0 + $0x8] sm:$0xff] }
   0xa   :  { %v3495_v36 = vsub.f32 %v121_v21, %v3476_v28  ;;  %v224_v38 = vsub.f32 %v3469_v25, %v223_v32  ;;  %v229_v39 = vand.u32 4294901760, %v3485_v33  ;;  %v3508_v42 = vand.u32 4294901760, %v115_v40  ;;  %v54_v13 = vld [vmem:[%s5257_s2 + $0x8] sm:$0xff] }
   0xb   :  { %v207_v27 = vand.u32 4294901760, %v206_v22  ;;  %321 = vmatpush.xpose.msra.mxu2 %v3444_v14  ;;  %v213_v30 = vand.u32 4294901760, %v212_v23  ;;  %v219_v37 = vand.u32 4294901760, %v218_v31  ;;  %v112_v46 = vsel %vm77_vm0, %v44_v41, 0  ;;  %v39_v22 = vld [vmem:[%s5255_s0 + $0x10] sm:$0xff] }
   0xc   :  { %v235_v43 = vand.u32 4294901760, %v3495_v36  ;;  %v225_v44 = vand.u32 4294901760, %v224_v38  ;;  %v230_v45 = vsub.f32 %v3485_v33, %v229_v39  ;;  %v3517_v47 = vsub.f32 %v118_v29, %v3492_v35 }
   0xd   :  { %143 = vmatpush.xpose.msra.mxu0 %v3434_v10  ;;  %208 = vmatpush.xpose.msra.mxu1 %v207_v27  ;;  %v3527_v50 = vand.u32 4294901760, %v112_v46  ;;  %v109_v53 = vsel %vm77_vm0, %v43_v48, 0  ;;  %v3533_v54 = vsub.f32 %v115_v40, %v3508_v42  ;;  %v106_v57 = vsel %vm77_vm0, %v42_v55, 0 }
   0xe   :  { %390 = vmatpush.xpose.msra.mxu3 %v3434_v10  ;;  %v236_v49 = vsub.f32 %v3495_v36, %v235_v43  ;;  %v231_v51 = vand.u32 4294901760, %v230_v45  ;;  %v241_v52 = vand.u32 4294901760, %v3517_v47  ;;  %v3540_v56 = vand.u32 4294901760, %v109_v53 }
   0xf   :  { %324 = vmatpush.xpose.msra.mxu2 %v3448_v16  ;;  %v247_v60 = vand.u32 4294901760, %v3533_v54  ;;  %v3549_v61 = vsub.f32 %v112_v46, %v3527_v50  ;;  %v3556_v63 = vand.u32 4294901760, %v106_v57  ;;  %v103_v0 = vsel %vm77_vm0, %v41_v62, 0  ;;  %v37_v46 = vld [vmem:[%s5255_s0] sm:$0xff] }
  0x10   :  { %v237_v58 = vand.u32 4294901760, %v236_v49  ;;  %v242_v59 = vsub.f32 %v3517_v47, %v241_v52  ;;  %v3565_v4 = vsub.f32 %v109_v53, %v3540_v56  ;;  %v3572_v6 = vand.u32 4294901760, %v103_v0  ;;  %v53_v16 = vld [vmem:[%s5257_s2] sm:$0xff] }
  0x11   :  { %145 = vmatpush.xpose.msra.mxu0 %v3437_v12  ;;  %214 = vmatpush.xpose.msra.mxu1 %v213_v30  ;;  %v248_v2 = vsub.f32 %v3533_v54, %v247_v60  ;;  %v253_v3 = vand.u32 4294901760, %v3549_v61  ;;  %v3575_v7 = vsub.f32 %v106_v57, %v3556_v63  ;;  %v100_v21 = vsel %vm77_vm0, %v40_v5, 0 }
  0x12   :  { %392 = vmatpush.xpose.msra.mxu3 %v3437_v12  ;;  %v243_v1 = vand.u32 4294901760, %v242_v59  ;;  %v259_v17 = vand.u32 4294901760, %v3565_v4  ;;  %v3588_v23 = vand.u32 4294901760, %v100_v21  ;;  %v3596_v30 = vsub.f32 %v103_v0, %v3572_v6 }
  0x13   :  { %327 = vmatpush.xpose.msra.mxu2 %v3469_v25  ;;  %v249_v11 = vand.u32 4294901760, %v248_v2  ;;  %v254_v15 = vsub.f32 %v3549_v61, %v253_v3  ;;  %v265_v29 = vand.u32 4294901760, %v3575_v7  ;;  %v97_v31 = vsel %vm77_vm0, %v39_v22, 0  ;;  %v33_v2 = vld [vmem:[%s5256_s1] sm:$0xff] }
  0x14   :  { %v260_v27 = vsub.f32 %v3565_v4, %v259_v17  ;;  %v3611_v41 = vand.u32 4294901760, %v97_v31  ;;  %v94_v45 = vsel %vm77_vm0, %v38_v34, 0  ;;  %v91_v57 = vsel %vm77_vm0, %v37_v46, 0  ;;  %v34_v46 = vld [vmem:[%s5256_s1 + $0x8] sm:$0xff] }
  0x15   :  { %147 = vmatpush.xpose.msra.mxu0 %v3457_v20  ;;  %220 = vmatpush.xpose.msra.mxu1 %v219_v37  ;;  %v255_v26 = vand.u32 4294901760, %v254_v15  ;;  %v3605_v37 = vsub.f32 %v100_v21, %v3588_v23  ;;  %v266_v40 = vsub.f32 %v3575_v7, %v265_v29  ;;  %v3625_v53 = vand.u32 4294901760, %v94_v45 }
  0x16   :  { %394 = vmatpush.xpose.msra.mxu3 %v3457_v20  ;;  %v261_v38 = vand.u32 4294901760, %v260_v27  ;;  %v3628_v55 = vsub.f32 %v97_v31, %v3611_v41  ;;  %v3637_v62 = vand.u32 4294901760, %v91_v57  ;;  %v79_v5 = vsel %vm77_vm0, %v33_v2, 0 }
  0x17   :  { %330 = vmatpush.xpose.msra.mxu2 %v3485_v33  ;;  %v277_v48 = vand.u32 4294901760, %v3605_v37  ;;  %v267_v49 = vand.u32 4294901760, %v266_v40 }
  0x18   :  { %v283_v0 = vand.u32 4294901760, %v3628_v55 }
  0x19   :  { %149 = vmatpush.xpose.msra.mxu0 %v3476_v28  ;;  %226 = vmatpush.xpose.msra.mxu1 %v225_v44  ;;  %v271_v44 = vand.u32 4294901760, %v3596_v30 }
  0x1a   :  { %396 = vmatpush.xpose.msra.mxu3 %v3476_v28  ;;  %v284_v21 = vsub.f32 %v3628_v55, %v283_v0 }
  0x1b   :  { %333 = vmatpush.xpose.msra.mxu2 %v3495_v36  ;;  %v2136_v36 = vld [vmem:[%s5261_s6 + $0x8] sm:$0xff] }
  0x1c   :  { %v285_v34 = vand.u32 4294901760, %v284_v21 }
  0x1d   :  { %151 = vmatpush.xpose.msra.mxu0 %v3492_v35  ;;  %232 = vmatpush.xpose.msra.mxu1 %v231_v51  ;;  %v272_v51 = vsub.f32 %v3596_v30, %v271_v44 }
  0x1e   :  { %398 = vmatpush.xpose.msra.mxu3 %v3492_v35 }
  0x1f   :  { %336 = vmatpush.xpose.msra.mxu2 %v3517_v47  ;;  %v273_v59 = vand.u32 4294901760, %v272_v51 }
  0x21   :  { %153 = vmatpush.xpose.msra.mxu0 %v3508_v42  ;;  %238 = vmatpush.xpose.msra.mxu1 %v237_v58  ;;  %v278_v58 = vsub.f32 %v3605_v37, %v277_v48 }
  0x22   :  { %400 = vmatpush.xpose.msra.mxu3 %v3508_v42 }
  0x23   :  { %339 = vmatpush.xpose.msra.mxu2 %v3533_v54  ;;  %v279_v15 = vand.u32 4294901760, %v278_v58 }
  0x25   :  { %155 = vmatpush.xpose.msra.mxu0 %v3527_v50  ;;  %244 = vmatpush.xpose.msra.mxu1 %v243_v1  ;;  %v3641_v1 = vsub.f32 %v94_v45, %v3625_v53 }
  0x26   :  { %402 = vmatpush.xpose.msra.mxu3 %v3527_v50 }
  0x27   :  { %342 = vmatpush.xpose.msra.mxu2 %v3549_v61  ;;  %v289_v22 = vand.u32 4294901760, %v3641_v1 }
  0x29   :  { %157 = vmatpush.xpose.msra.mxu0 %v3540_v56  ;;  %250 = vmatpush.xpose.msra.mxu1 %v249_v11  ;;  %v3649_v11 = vand.u32 4294901760, %v79_v5 }
  0x2a   :  { %404 = vmatpush.xpose.msra.mxu3 %v3540_v56 }
  0x2b   :  { %345 = vmatpush.xpose.msra.mxu2 %v3565_v4  ;;  %v171_v27 = vsub.f32 %v79_v5, %v3649_v11 }
  0x2d   :  { %159 = vmatpush.xpose.msra.mxu0 %v3556_v63  ;;  %256 = vmatpush.xpose.msra.mxu1 %v255_v26  ;;  %v3657_v26 = vsub.f32 %v91_v57, %v3637_v62  ;;  %v172_v31 = vand.u32 4294901760, %v171_v27 }
  0x2e   :  { %406 = vmatpush.xpose.msra.mxu3 %v3556_v63 }
  0x2f   :  { %348 = vmatpush.xpose.msra.mxu2 %v3575_v7  ;;  %v295_v40 = vand.u32 4294901760, %v3657_v26  ;;  %v173_v45 = vsub.f32 %v171_v27, %v172_v31 }
  0x31   :  { %161 = vmatpush.xpose.msra.mxu0 %v3572_v6  ;;  %262 = vmatpush.xpose.msra.mxu1 %v261_v38  ;;  %v290_v38 = vsub.f32 %v3641_v1, %v289_v22  ;;  %v174_v57 = vand.u32 4294901760, %v173_v45 }
  0x32   :  { %408 = vmatpush.xpose.msra.mxu3 %v3572_v6 }
  0x33   :  { %351 = vmatpush.xpose.msra.mxu2 %v3596_v30  ;;  %v291_v58 = vand.u32 4294901760, %v290_v38  ;;  %v3354_v38 = vmov 0  }
  0x34   :  { %3326 = vset.pattern.permute.xlu1 %v3354_v38  ;;  %3325 = vset.pattern.permute.xlu0 %v3354_v38 }
  0x35   :  { %163 = vmatpush.xpose.msra.mxu0 %v3588_v23  ;;  %268 = vmatpush.xpose.msra.mxu1 %v267_v49  ;;  %v82_v49 = vsel %vm77_vm0, %v34_v46, 0  ;;  %v36_v46 = vld [vmem:[%s5256_s1 + $0x18] sm:$0xff] }
  0x36   :  { %410 = vmatpush.xpose.msra.mxu3 %v3588_v23  ;;  %v3673_v51 = vand.u32 4294901760, %v82_v49  ;;  %64 = vperm.xlu1 %3326, %v54_v13  }
  0x37   :  { %354 = vmatpush.xpose.msra.mxu2 %v3605_v37  ;;  %3327 = vset.pattern.permute.xlu2 %v3354_v38 }
  0x38   :  { %v179_v2 = vsub.f32 %v82_v49, %v3673_v51 }
  0x39   :  { %165 = vmatpush.xpose.msra.mxu0 %v3611_v41  ;;  %274 = vmatpush.xpose.msra.mxu1 %v273_v59  ;;  %v296_v59 = vsub.f32 %v3657_v26, %v295_v40 }
  0x3a   :  { %412 = vmatpush.xpose.msra.mxu3 %v3611_v41  ;;  %v180_v5 = vand.u32 4294901760, %v179_v2 }
  0x3b   :  { %357 = vmatpush.xpose.msra.mxu2 %v3628_v55 }
  0x3c   :  { %v181_v21 = vsub.f32 %v179_v2, %v180_v5 }
  0x3d   :  { %167 = vmatpush.xpose.msra.mxu0 %v3625_v53  ;;  %280 = vmatpush.xpose.msra.mxu1 %v279_v15  ;;  %v297_v15 = vand.u32 4294901760, %v296_v59 }
  0x3e   :  { %414 = vmatpush.xpose.msra.mxu3 %v3625_v53  ;;  %59 = vperm.xlu1 %3326, %v53_v16  }
  0x3f   :  { %360 = vmatpush.xpose.msra.mxu2 %v3641_v1 }
  0x41   :  { %169 = vmatpush.xpose.msra.mxu0 %v3637_v62  ;;  %286 = vmatpush.xpose.msra.mxu1 %v285_v34  ;;  %v35_v34 = vld [vmem:[%s5256_s1 + $0x10] sm:$0xff] }
  0x42   :  { %416 = vmatpush.xpose.msra.mxu3 %v3637_v62 }
  0x43   :  { %363 = vmatpush.xpose.msra.mxu2 %v3657_v26 }
  0x44   :  { %175 = vmatmul.f32.vlgmr.msra.gmra.mxu0 %v174_v57 }
  0x45   :  { %445 = vmatpush.xpose.msrb.mxu0 %v205_v18  ;;  %292 = vmatpush.xpose.msra.mxu1 %v291_v58  ;;  %v85_v18 = vsel %vm77_vm0, %v35_v34, 0 }
  0x46   :  { %420 = vmatmul.f32.vlgmr.msra.gmra.mxu3 %v172_v31  ;;  %366 = vmatmul.f32.vlgmr.msra.gmra.mxu2 %v171_v27  ;;  %v3694_v45 = vand.u32 4294901760, %v85_v18  ;;  %v182_v31 = vand.u32 4294901760, %v181_v21 }
  0x48   :  { %v187_v14 = vsub.f32 %v85_v18, %v3694_v45 }
  0x49   :  { %449 = vmatpush.xpose.msrb.mxu0 %v211_v19  ;;  %298 = vmatpush.xpose.msra.mxu1 %v297_v15 }
  0x4a   :  { %v188_v19 = vand.u32 4294901760, %v187_v14 }
  0x4c   :  { %183 = vmatmul.f32.gmra.mxu0 %v182_v31  ;;  %300 = vmatmul.f32.vlgmr.msra.gmra.mxu1 %v3649_v11  ;;  %v189_v27 = vsub.f32 %v187_v14, %v188_v19 }
  0x4d   :  { %453 = vmatpush.xpose.msrb.mxu0 %v217_v24  ;;  %524 = vmatpush.xpose.msrb.mxu1 %v3430_v8  ;;  %v88_v8 = vsel %vm77_vm0, %v36_v46, 0 }
  0x4e   :  { %426 = vmatmul.f32.gmra.mxu3 %v180_v5  ;;  %371 = vmatmul.f32.gmra.mxu2 %v179_v2  ;;  %v194_v24 = vand.u32 4294901760, %v88_v8  ;;  %v190_v49 = vand.u32 4294901760, %v189_v27 }
  0x50   :  { %v195_v57 = vsub.f32 %v88_v8, %v194_v24 }
  0x51   :  { %457 = vmatpush.xpose.msrb.mxu0 %v223_v32  ;;  %526 = vmatpush.xpose.msrb.mxu1 %v3432_v9  ;;  %v56_v32 = vld [vmem:[%s5257_s2 + $0x18] sm:$0xff] }
  0x52   :  { %v196_v25 = vand.u32 4294901760, %v195_v57  ;;  %74 = vperm.xlu0 %3325, %v56_v32  }
  0x54   :  { %191 = vmatmul.f32.gmra.mxu0 %v190_v49  ;;  %304 = vmatmul.f32.gmra.mxu1 %v3673_v51  ;;  %v197_v9 = vsub.f32 %v195_v57, %v196_v25 }
  0x55   :  { %461 = vmatpush.xpose.msrb.mxu0 %v229_v39  ;;  %528 = vmatpush.xpose.msrb.mxu1 %v3434_v10  ;;  %v55_v10 = vld [vmem:[%s5257_s2 + $0x10] sm:$0xff] }
  0x56   :  { %432 = vmatmul.f32.gmra.mxu3 %v188_v19  ;;  %376 = vmatmul.f32.gmra.mxu2 %v187_v14  ;;  %v198_v33 = vand.u32 4294901760, %v197_v9 }
  0x59   :  { %465 = vmatpush.xpose.msrb.mxu0 %v235_v43  ;;  %530 = vmatpush.xpose.msrb.mxu1 %v3437_v12  ;;  %v1197_v12 = vld [vmem:[%s5259_s4 + $0x8] sm:$0xff] }
  0x5a   :  { %69 = vperm.xlu0 %3325, %v55_v10  }
  0x5c   :  { %199 = vmatmul.f32.gmra.mxu0 %v198_v33  ;;  %308 = vmatmul.f32.gmra.mxu1 %v3694_v45  ;;  %v3357_v33 = vmov 2131351028  }
  0x5d   :  { %469 = vmatpush.xpose.msrb.mxu0 %v241_v52  ;;  %532 = vmatpush.xpose.msrb.mxu1 %v3457_v20  ;;  %v2137_v20 = vld [vmem:[%s5261_s6 + $0x10] sm:$0xff] }
  0x5e   :  { %438 = vmatmul.f32.gmra.mxu3 %v196_v25  ;;  %381 = vmatmul.f32.gmra.mxu2 %v195_v57  ;;  %v3356_v57 = vmov 2475754826  }
  0x61   :  { %473 = vmatpush.xpose.msrb.mxu0 %v247_v60  ;;  %534 = vmatpush.xpose.msrb.mxu1 %v3476_v28  ;;  %v1196_v28 = vld [vmem:[%s5259_s4] sm:$0xff] }
  0x62   :  { %1207 = vperm.xlu0 %3325, %v1197_v12   ;;  %1202 = vperm.xlu1 %3326, %v1196_v28  }
  0x64   :  { %312 = vmatmul.f32.gmra.mxu1 %v194_v24 }
  0x65   :  { %477 = vmatpush.xpose.msrb.mxu0 %v253_v3  ;;  %536 = vmatpush.xpose.msrb.mxu1 %v3492_v35  ;;  %v3070_v35 = vld [vmem:[%s5263_s8] sm:$0x3]  ;;  %s3272_s8 = sshll.u32 %s5264_s9, 4  ;;  %s3273_s8 = int_to_ptr.hbm [resolvable:$true] %s3272_s8 }
  0x69   :  { %481 = vmatpush.xpose.msrb.mxu0 %v259_v17  ;;  %538 = vmatpush.xpose.msrb.mxu1 %v3508_v42 }
  0x6a   :  { %2151 = vperm.xlu0 %3325, %v2137_v20   ;;  %2146 = vperm.xlu1 %3326, %v2136_v36   ;;  %v3358_v20 = vmov 2102212464   ;;  %v3359_v36 = vmov 920167782  }
  0x6d   :  { %485 = vmatpush.xpose.msrb.mxu0 %v265_v29  ;;  %540 = vmatpush.xpose.msrb.mxu1 %v3527_v50 }
  0x71   :  { %489 = vmatpush.xpose.msrb.mxu0 %v271_v44  ;;  %542 = vmatpush.xpose.msrb.mxu1 %v3540_v56 }
  0x72   :  { %3073 = vperm.xlu0 %3325, %v3070_v35  }
  0x75   :  { %493 = vmatpush.xpose.msrb.mxu0 %v277_v48  ;;  %544 = vmatpush.xpose.msrb.mxu1 %v3556_v63 }
  0x79   :  { %497 = vmatpush.xpose.msrb.mxu0 %v283_v0  ;;  %546 = vmatpush.xpose.msrb.mxu1 %v3572_v6 }
  0x7d   :  { %501 = vmatpush.xpose.msrb.mxu0 %v289_v22  ;;  %548 = vmatpush.xpose.msrb.mxu1 %v3588_v23 }
  0x81   :  { %505 = vmatpush.xpose.msrb.mxu0 %v295_v40  ;;  %550 = vmatpush.xpose.msrb.mxu1 %v3611_v41 }
  0x84   :  { %507 = vmatmul.f32.vlgmr.msrb.gmra.mxu0 %v3649_v11 }
  0x85   :  { %552 = vmatpush.xpose.msrb.mxu1 %v3625_v53 }
  0x89   :  { %554 = vmatpush.xpose.msrb.mxu1 %v3637_v62 }
  0x8c   :  { %511 = vmatmul.f32.gmra.mxu0 %v3673_v51  ;;  %556 = vmatmul.f32.vlgmr.msrb.gmra.mxu1 %v3649_v11 }
  0x94   :  { %515 = vmatmul.f32.gmra.mxu0 %v3694_v45  ;;  %560 = vmatmul.f32.gmra.mxu1 %v3673_v51 }
  0x9c   :  { %519 = vmatmul.f32.gmra.mxu0 %v194_v24  ;;  %564 = vmatmul.f32.gmra.mxu1 %v3694_v45 }
  0xa4   :  { %568 = vmatmul.f32.gmra.mxu1 %v194_v24  ;;  %v3355_v24 = vmov 683565275  }
  0xa8   :  { %v65_v50 = vpop.permute.xlu1 %64 }
  0xb0   :  { %v60_v56 = vpop.permute.xlu1 %59 }
  0xc1   :  { %v176_v39 = vpop.f32.mrf.mxu0 }
  0xc2   :  { %v177_v61 = vadd.f32 %v176_v39, %v60_v56 }
  0xc4   :  { %v3786_v48 = vpop.permute.xlu0 %74 }
  0xc9   :  { %v301_v42 = vpop.f32.mrf.mxu1  ;;  %v184_v43 = vpop.f32.mrf.mxu0 }
  0xca   :  { %v367_v63 = vpop.f32.mrf.mxu2  ;;  %v302_v3 = vadd.f32 %v301_v42, %v177_v61  ;;  %v421_v6 = vpop.f32.mrf.mxu3  ;;  %v185_v7 = vadd.f32 %v184_v43, %v65_v50  ;;  %v3360_v43 = vmov 1326507024  }
  0xcc   :  { %v368_v17 = vadd.f32 %v367_v63, %v302_v3  ;;  %v70_v21 = vpop.permute.xlu0 %69 }
  0xce   :  { %v422_v29 = vadd.f32 %v421_v6, %v368_v17 }
  0xd1   :  { %v305_v47 = vpop.f32.mrf.mxu1  ;;  %v192_v52 = vpop.f32.mrf.mxu0 }
  0xd2   :  { %v306_v30 = vadd.f32 %v305_v47, %v185_v7  ;;  %v372_v37 = vpop.f32.mrf.mxu2  ;;  %v427_v62 = vpop.f32.mrf.mxu3  ;;  %v193_v14 = vadd.f32 %v192_v52, %v70_v21 }
  0xd4   :  { %v373_v53 = vadd.f32 %v372_v37, %v306_v30 }
  0xd6   :  { %v428_v22 = vadd.f32 %v427_v62, %v373_v53 }
  0xd9   :  { %v3780_v54 = vpop.f32.mrf.mxu1  ;;  %v3782_v60 = vpop.f32.mrf.mxu0 }
  0xe1   :  { %v3784_v4 = vpop.f32.mrf.mxu1 }
 0x101   :  { %v508_v23 = vpop.f32.mrf.mxu0 }
 0x102   :  { %v509_v41 = vadd.f32 %v508_v23, %v422_v29 }
 0x109   :  { %v557_v44 = vpop.f32.mrf.mxu1  ;;  %v512_v11 = vpop.f32.mrf.mxu0 }
 0x10a   :  { %v3788_v55 = vadd.f32 %v557_v44, %v509_v41  ;;  %v513_v51 = vadd.f32 %v512_v11, %v428_v22 }
 0x10c   :  { %v572_v0 = vand.u32 2147483647, %v3788_v55  ;;  %v575_v1 = vand.u32 2139095040, %v3788_v55 }
 0x10e   :  { %v576_v26 = vshrl.u32 %v575_v1, 23  ;;  %v579_v40 = vand.u32 8388607, %v572_v0 }
 0x110   :  { %v3281_v58 = vadd.s32 4294967169, %v576_v26  ;;  %v580_v59 = vor.u32 8388608, %v579_v40 }
 0x111   :  { %v561_v2 = vpop.f32.mrf.mxu1 }
 0x112   :  { %v582_v5 = vadd.s32 1, %v3281_v58  ;;  %v3794_v15 = vadd.f32 %v561_v2, %v513_v51  ;;  %v3796_v34 = vshll.u32 %v580_v59, 8  ;;  %v310_v58 = vadd.f32 %v3780_v54, %v193_v14 }
 0x114   :  { %vm583_vm1 = vcmp.gt.s32.totalorder %v582_v5, 0  ;;  %v727_v18 = vand.u32 2147483647, %v3794_v15  ;;  %v730_v45 = vand.u32 2139095040, %v3794_v15  ;;  %v621_v27 = vand.u32 65535, %v3796_v34 }
 0x115   :  { %v584_v13 = vsel %vm583_vm1, %v582_v5, 0  ;;  %v622_v46 = vshrl.u32 %v3796_v34, 16 }
 0x116   :  { %v586_v31 = vand.u32 31, %v584_v13  ;;  %v731_v16 = vshrl.u32 %v730_v45, 23  ;;  %v585_v8 = vshrl.u32 %v584_v13, 5  ;;  %v3806_v9 = vand.u32 8388607, %v727_v18 }
 0x118   :  { %v587_v19 = vsub.s32 32, %v586_v31  ;;  %v589_v49 = vshll.u32 %v3355_v24, %v586_v31  ;;  %v592_v25 = vshll.u32 %v3356_v57, %v586_v31  ;;  %v595_v12 = vshll.u32 %v3357_v33, %v586_v31 }
 0x119   :  { %v598_v35 = vshll.u32 %v3358_v20, %v586_v31  ;;  %v601_v42 = vshll.u32 %v3359_v36, %v586_v31  ;;  %v3284_v61 = vadd.s32 4294967169, %v731_v16  ;;  %vm604_vm2 = vcmp.lt.s32.totalorder %v585_v8, 1 }
 0x11a   :  { %v590_v32 = vshrl.u32 %v3356_v57, %v587_v19  ;;  %v593_v10 = vshrl.u32 %v3357_v33, %v587_v19  ;;  %v596_v28 = vshrl.u32 %v3358_v20, %v587_v19  ;;  %v599_v39 = vshrl.u32 %v3359_v36, %v587_v19 }
 0x11b   :  { %v602_v47 = vshrl.u32 %v3360_v43, %v587_v19  ;;  %vm607_vm3 = vcmp.lt.s32.totalorder %v585_v8, 4  ;;  %v588_v6 = vshrl.u32 %v3355_v24, %v587_v19  ;;  %vm606_vm4 = vcmp.lt.s32.totalorder %v585_v8, 3 }
 0x11c   :  { %v591_v50 = vor.u32 %v590_v32, %v589_v49  ;;  %v594_v52 = vor.u32 %v593_v10, %v592_v25  ;;  %v597_v56 = vor.u32 %v596_v28, %v595_v12  ;;  %v600_v63 = vor.u32 %v599_v39, %v598_v35 }
 0x11d   :  { %v603_v3 = vor.u32 %v602_v47, %v601_v42  ;;  %v737_v37 = vadd.s32 1, %v3284_v61  ;;  %vm605_vm5 = vcmp.lt.s32.totalorder %v585_v8, 2  ;;  %v735_v59 = vor.u32 8388608, %v3806_v9 }
 0x11e   :  { %v609_v7 = vsel %vm607_vm3, %v597_v56, 2102212464  ;;  %v612_v17 = vsel %vm604_vm2, %v591_v50, %v594_v52  ;;  %v616_v23 = vsel %vm604_vm2, %v594_v52, %v597_v56  ;;  %v613_v29 = vsel %vm607_vm3, %v600_v63, 920167782 }
 0x11f   :  { %v617_v30 = vsel %vm607_vm3, %v603_v3, 1326507024  ;;  %v608_v41 = vsel %vm604_vm2, %v588_v6, %v591_v50  ;;  %v614_v44 = vsel %vm606_vm4, %v597_v56, %v613_v29  ;;  %v610_v62 = vsel %vm606_vm4, %v594_v52, %v609_v7 }
 0x120   :  { %v618_v53 = vsel %vm606_vm4, %v600_v63, %v617_v30  ;;  %v615_v1 = vsel %vm605_vm5, %v612_v17, %v614_v44  ;;  %vm738_vm6 = vcmp.gt.s32.totalorder %v737_v37, 0  ;;  %v3819_v2 = vsel %vm605_vm5, %v608_v41, %v610_v62 }
 0x121   :  { %v619_v11 = vsel %vm605_vm5, %v616_v23, %v618_v53  ;;  %v645_v40 = vand.u32 65535, %v615_v1  ;;  %v646_v51 = vshrl.u32 %v615_v1, 16  ;;  %v739_v13 = vsel %vm738_vm6, %v737_v37, 0  ;;  %v377_v37 = vpop.f32.mrf.mxu2 }
 0x122   :  { %v623_v22 = vand.u32 65535, %v619_v11  ;;  %v624_v26 = vshrl.u32 %v619_v11, 16  ;;  %v741_v9 = vand.u32 31, %v739_v13  ;;  %v3826_v61 = vshrl.u32 %v739_v13, 5 }
 0x123   :  { %v648_v19 = vmul.u32 %v646_v51, %v621_v27  ;;  %v649_v16 = vmul.u32 %v645_v40, %v622_v46  ;;  %v647_v25 = vmul.u32 %v645_v40, %v621_v27  ;;  %v650_v32 = vmul.u32 %v646_v51, %v622_v46 }
 0x124   :  { %v626_v5 = vmul.u32 %v624_v26, %v621_v27  ;;  %v627_v21 = vmul.u32 %v623_v22, %v622_v46  ;;  %v625_v45 = vmul.u32 %v623_v22, %v621_v27  ;;  %v628_v31 = vmul.u32 %v624_v26, %v622_v46 }
 0x125   :  { %v651_v28 = vshll.u32 %v648_v19, 16  ;;  %v652_v35 = vshrl.u32 %v648_v19, 16  ;;  %v653_v14 = vshll.u32 %v649_v16, 16  ;;  %v654_v42 = vshrl.u32 %v649_v16, 16 }
 0x126   :  { %v629_v8 = vshll.u32 %v626_v5, 16  ;;  %v630_v49 = vshrl.u32 %v626_v5, 16  ;;  %v631_v10 = vshll.u32 %v627_v21, 16  ;;  %v632_v12 = vshrl.u32 %v627_v21, 16 }
 0x127   :  { %vm655_vm8 = vc.u32 %v647_v25, %v651_v28  ;;  %v657_v47 = vadd.s32 %v651_v28, %v647_v25  ;;  %v3823_v56 = vsub.s32 32, %v741_v9  ;;  %v744_v7 = vshll.u32 %v3355_v24, %v741_v9 }
 0x128   :  { %vm633_vm7 = vc.u32 %v625_v45, %v629_v8  ;;  %v635_v54 = vadd.s32 %v629_v8, %v625_v45  ;;  %v656_v52 = vsel %vm655_vm8, 1, %v3354_v38  ;;  %v747_v29 = vshll.u32 %v3356_v57, %v741_v9 }
 0x129   :  { %v634_v39 = vsel %vm633_vm7, 1, %v3354_v38  ;;  %v658_v46 = vadd.s32 %v656_v52, %v650_v32  ;;  %vm659_vm10 = vc.u32 %v657_v47, %v653_v14  ;;  %v3829_v6 = vadd.s32 %v657_v47, %v653_v14 }
 0x12a   :  { %v636_v50 = vadd.s32 %v634_v39, %v628_v31  ;;  %vm637_vm9 = vc.u32 %v635_v54, %v631_v10  ;;  %v660_v3 = vsel %vm659_vm10, 1, %v3354_v38  ;;  %v745_v23 = vshrl.u32 %v3356_v57, %v3823_v56  ;;  %v516_v39 = vpop.f32.mrf.mxu0 }
 0x12b   :  { %v638_v27 = vsel %vm637_vm9, 1, %v3354_v38  ;;  %v662_v17 = vadd.s32 %v660_v3, %v658_v46  ;;  %v748_v30 = vshrl.u32 %v3357_v33, %v3823_v56  ;;  %v750_v44 = vshll.u32 %v3357_v33, %v741_v9  ;;  %v565_v3 = vpop.f32.mrf.mxu1 }
 0x12c   :  { %v640_v63 = vadd.s32 %v638_v27, %v636_v50  ;;  %v751_v53 = vshrl.u32 %v3358_v20, %v3823_v56  ;;  %v753_v62 = vshll.u32 %v3358_v20, %v741_v9  ;;  %v3841_v11 = vor.u32 %v745_v23, %v744_v7 }
 0x12d   :  { %v663_v1 = vadd.s32 %v662_v17, %v652_v35  ;;  %v3843_v22 = vor.u32 %v748_v30, %v747_v29  ;;  %v754_v26 = vshrl.u32 %v3359_v36, %v3823_v56  ;;  %v756_v5 = vshll.u32 %v3359_v36, %v741_v9 }
 0x12e   :  { %v641_v41 = vadd.s32 %v640_v63, %v630_v49  ;;  %v3849_v51 = vor.u32 %v751_v53, %v750_v44  ;;  %v757_v21 = vshrl.u32 %v3360_v43, %v3823_v56  ;;  %v378_v13 = vadd.f32 %v377_v37, %v310_v58 }
 0x12f   :  { %v664_v45 = vadd.s32 %v663_v1, %v654_v42  ;;  %v755_v31 = vor.u32 %v754_v26, %v753_v62  ;;  %vm759_vm12 = vcmp.lt.s32.totalorder %v3826_v61, 1  ;;  %v3857_v16 = vshll.u32 %v735_v59, 8 }
 0x130   :  { %v3847_v40 = vadd.s32 %v641_v41, %v632_v12  ;;  %v758_v19 = vor.u32 %v757_v21, %v756_v5  ;;  %v665_v8 = vmul.u32 %v3796_v34, %v3819_v2  ;;  %vm762_vm13 = vcmp.lt.s32.totalorder %v3826_v61, 4  ;;  %v433_v2 = vpop.f32.mrf.mxu3 }
 0x131   :  { %v668_v49 = vadd.s32 1, %v664_v45  ;;  %v767_v58 = vsel %vm759_vm12, %v3841_v11, %v3843_v22  ;;  %vm761_vm14 = vcmp.lt.s32.totalorder %v3826_v61, 3  ;;  %v768_v25 = vsel %vm762_vm13, %v755_v31, 920167782 }
 0x132   :  { %vm667_vm11 = vc.u32 %v3847_v40, %v3829_v6  ;;  %v771_v59 = vsel %vm759_vm12, %v3843_v22, %v3849_v51  ;;  %v772_v34 = vsel %vm762_vm13, %v758_v19, 1326507024  ;;  %vm760_vm15 = vcmp.lt.s32.totalorder %v3826_v61, 2 }
 0x133   :  { %v669_v32 = vsel %vm667_vm11, %v668_v49, %v664_v45  ;;  %v769_v10 = vsel %vm761_vm14, %v3849_v51, %v768_v25  ;;  %v773_v12 = vsel %vm761_vm14, %v755_v31, %v772_v34  ;;  %v776_v54 = vand.u32 65535, %v3857_v16 }
 0x134   :  { %v770_v28 = vsel %vm760_vm15, %v767_v58, %v769_v10  ;;  %v774_v35 = vsel %vm760_vm15, %v771_v59, %v773_v12  ;;  %v777_v14 = vshrl.u32 %v3857_v16, 16  ;;  %v670_v9 = vadd.s32 %v669_v32, %v665_v8 }
 0x135   :  { %v778_v42 = vand.u32 65535, %v774_v35  ;;  %v779_v47 = vshrl.u32 %v774_v35, 16  ;;  %v801_v50 = vshrl.u32 %v770_v28, 16  ;;  %v434_v52 = vadd.f32 %v433_v2, %v378_v13 }
 0x136   :  { %v800_v27 = vand.u32 65535, %v770_v28  ;;  %v671_v23 = vadd.s32 536870912, %v670_v9  ;;  %v201_v5 = vadd.f32 %v3782_v60, %v3786_v48  ;;  %v764_v48 = vsel %vm762_vm13, %v3849_v51, 2102212464 }
 0x137   :  { %v781_v46 = vmul.u32 %v779_v47, %v776_v54  ;;  %v782_v63 = vmul.u32 %v778_v42, %v777_v14  ;;  %v517_v7 = vadd.f32 %v516_v39, %v434_v52  ;;  %v803_v17 = vmul.u32 %v801_v50, %v776_v54 }
 0x138   :  { %v780_v29 = vmul.u32 %v778_v42, %v776_v54  ;;  %v783_v37 = vmul.u32 %v779_v47, %v777_v14  ;;  %v804_v41 = vmul.u32 %v800_v27, %v777_v14  ;;  %v802_v26 = vmul.u32 %v800_v27, %v776_v54  ;;  %v382_v42 = vpop.f32.mrf.mxu2 }
 0x139   :  { %v784_v30 = vshll.u32 %v781_v46, 16  ;;  %v806_v44 = vshll.u32 %v803_v17, 16  ;;  %v3887_v53 = vadd.f32 %v565_v3, %v517_v7  ;;  %v786_v62 = vshll.u32 %v782_v63, 16 }
 0x13a   :  { %v3892_v13 = vshrl.u32 %v671_v23, 30  ;;  %v785_v31 = vshrl.u32 %v781_v46, 16  ;;  %v805_v8 = vmul.u32 %v801_v50, %v777_v14  ;;  %v808_v49 = vshll.u32 %v804_v41, 16 }
 0x13b   :  { %vm788_vm0 = vc.u32 %v780_v29, %v784_v30  ;;  %v790_v1 = vadd.s32 %v784_v30, %v780_v29  ;;  %vm810_vm2 = vc.u32 %v802_v26, %v806_v44  ;;  %v812_v59 = vadd.s32 %v806_v44, %v802_v26 }
 0x13c   :  { %v789_v21 = vsel %vm788_vm0, 1, %v3354_v38  ;;  %v811_v25 = vsel %vm810_vm2, 1, %v3354_v38  ;;  %v885_v34 = vand.u32 2139095040, %v3887_v53  ;;  %v673_v60 = vshll.u32 %v3892_v13, 30 }
 0x13d   :  { %v791_v45 = vadd.s32 %v789_v21, %v783_v37  ;;  %vm792_vm1 = vc.u32 %v790_v1, %v786_v62  ;;  %v813_v2 = vadd.s32 %v811_v25, %v805_v8  ;;  %vm814_vm3 = vc.u32 %v812_v59, %v808_v49  ;;  %v520_v37 = vpop.f32.mrf.mxu0 }
 0x13e   :  { %v793_v19 = vsel %vm792_vm1, 1, %v3354_v38  ;;  %v743_v10 = vshrl.u32 %v3355_v24, %v3823_v56  ;;  %v787_v12 = vshrl.u32 %v782_v63, 16  ;;  %v815_v28 = vsel %vm814_vm3, 1, %v3354_v38 }
 0x13f   :  { %v795_v58 = vadd.s32 %v793_v19, %v791_v45  ;;  %v886_v35 = vshrl.u32 %v885_v34, 23  ;;  %v314_v54 = vadd.f32 %v3784_v4, %v201_v5  ;;  %v807_v14 = vshrl.u32 %v803_v17, 16 }
 0x140   :  { %v817_v39 = vadd.s32 %v815_v28, %v813_v2  ;;  %v763_v47 = vsel %vm759_vm12, %v743_v10, %v3841_v11  ;;  %v765_v51 = vsel %vm761_vm14, %v3843_v22, %v764_v48  ;;  %v3913_v52 = vsub.s32 %v670_v9, %v673_v60  ;;  %v439_v11 = vpop.f32.mrf.mxu3  ;;  %v569_v48 = vpop.f32.mrf.mxu1 }
 0x141   :  { %v796_v32 = vadd.s32 %v795_v58, %v785_v31  ;;  %v3287_v56 = vadd.s32 4294967169, %v886_v35  ;;  %v809_v27 = vshrl.u32 %v804_v41, 16  ;;  %v3915_v63 = vadd.s32 %v812_v59, %v808_v49 }
 0x142   :  { %v818_v46 = vadd.s32 %v817_v39, %v807_v14  ;;  %v383_v3 = vadd.f32 %v382_v42, %v314_v54  ;;  %v766_v7 = vsel %vm760_vm15, %v763_v47, %v765_v51  ;;  %v676_v22 = vsub.s32 0, %v3913_v52 }
 0x143   :  { %v3911_v50 = vadd.s32 %v796_v32, %v787_v12  ;;  %v892_v4 = vadd.s32 1, %v3287_v56  ;;  %v882_v9 = vand.u32 2147483647, %v3887_v53  ;;  %vm675_vm6 = vcmp.lt.s32.totalorder %v3913_v52, 0 }
 0x144   :  { %v819_v17 = vadd.s32 %v818_v46, %v809_v27  ;;  %v820_v30 = vmul.u32 %v3857_v16, %v766_v7  ;;  %v440_v61 = vadd.f32 %v439_v11, %v383_v3  ;;  %v677_v26 = vsel %vm675_vm6, %v676_v22, %v3913_v52 }
 0x145   :  { %vm822_vm4 = vc.u32 %v3911_v50, %v3915_v63  ;;  %vm893_vm5 = vcmp.gt.s32.totalorder %v892_v4, 0  ;;  %v889_v21 = vand.u32 8388607, %v882_v9  ;;  %v678_v59 = vclz %v677_v26 }
 0x146   :  { %v823_v23 = vadd.s32 1, %v819_v17  ;;  %v894_v29 = vsel %vm893_vm5, %v892_v4, 0  ;;  %v521_v5 = vadd.f32 %v520_v37, %v440_v61 }
 0x147   :  { %v896_v41 = vand.u32 31, %v894_v29  ;;  %v3943_v2 = vshrl.u32 %v894_v29, 5  ;;  %v890_v54 = vor.u32 8388608, %v889_v21  ;;  %v3282_v56 = vadd.s32 4294967294, %v678_v59 }
 0x148   :  { %v824_v44 = vsel %vm822_vm4, %v823_v23, %v819_v17  ;;  %v3952_v42 = vadd.f32 %v569_v48, %v521_v5 }
 0x149   :  { %v825_v62 = vadd.s32 %v824_v44, %v820_v30  ;;  %v3925_v1 = vsub.s32 32, %v896_v41  ;;  %v899_v31 = vshll.u32 %v3355_v24, %v896_v41  ;;  %v902_v8 = vshll.u32 %v3356_v57, %v896_v41 }
 0x14a   :  { %v908_v58 = vshll.u32 %v3358_v20, %v896_v41  ;;  %v905_v12 = vshll.u32 %v3357_v33, %v896_v41  ;;  %v911_v14 = vshll.u32 %v3359_v36, %v896_v41  ;;  %vm914_vm7 = vcmp.lt.s32.totalorder %v3943_v2, 1 }
 0x14b   :  { %v826_v45 = vadd.s32 536870912, %v825_v62  ;;  %v900_v19 = vshrl.u32 %v3356_v57, %v3925_v1  ;;  %v903_v16 = vshrl.u32 %v3357_v33, %v3925_v1  ;;  %v906_v49 = vshrl.u32 %v3358_v20, %v3925_v1 }
 0x14c   :  { %v909_v25 = vshrl.u32 %v3359_v36, %v3925_v1  ;;  %v912_v60 = vshrl.u32 %v3360_v43, %v3925_v1  ;;  %vm917_vm8 = vcmp.lt.s32.totalorder %v3943_v2, 4  ;;  %vm916_vm10 = vcmp.lt.s32.totalorder %v3943_v2, 3 }
 0x14d   :  { %v3941_v34 = vshrl.u32 %v826_v45, 30  ;;  %v901_v32 = vor.u32 %v900_v19, %v899_v31  ;;  %v3947_v10 = vor.u32 %v903_v16, %v902_v8  ;;  %v907_v39 = vor.u32 %v906_v49, %v905_v12 }
 0x14e   :  { %v910_v28 = vor.u32 %v909_v25, %v908_v58  ;;  %v913_v51 = vor.u32 %v912_v60, %v911_v14  ;;  %v3966_v3 = vshll.u32 %v890_v54, 8  ;;  %vm915_vm11 = vcmp.lt.s32.totalorder %v3943_v2, 2 }
 0x14f   :  { %v828_v35 = vshll.u32 %v3941_v34, 30  ;;  %v922_v27 = vsel %vm914_vm7, %v901_v32, %v3947_v10  ;;  %v926_v17 = vsel %vm914_vm7, %v3947_v10, %v907_v39  ;;  %v1040_v11 = vand.u32 2139095040, %v3952_v42 }
 0x150   :  { %v923_v46 = vsel %vm917_vm8, %v910_v28, 920167782  ;;  %v927_v29 = vsel %vm917_vm8, %v913_v51, 1326507024  ;;  %vm3283_vm12 = vcmp.lt.s32.totalorder %v3282_v56, 0  ;;  %v931_v61 = vand.u32 65535, %v3966_v3 }
 0x151   :  { %v3954_v47 = vsub.s32 %v825_v62, %v828_v35  ;;  %v924_v7 = vsel %vm916_vm10, %v907_v39, %v923_v46  ;;  %v928_v37 = vsel %vm916_vm10, %v910_v28, %v927_v29  ;;  %v1041_v21 = vshrl.u32 %v1040_v11, 23 }
 0x152   :  { %v925_v23 = vsel %vm915_vm11, %v922_v27, %v924_v7  ;;  %v929_v41 = vsel %vm915_vm11, %v926_v17, %v928_v37  ;;  %v932_v45 = vshrl.u32 %v3966_v3, 16  ;;  %v3986_v19 = vsel %vm3283_vm12, 0, %v3282_v56 }
 0x153   :  { %vm830_vm9 = vcmp.lt.s32.totalorder %v3954_v47, 0  ;;  %v831_v4 = vsub.s32 0, %v3954_v47  ;;  %v956_v44 = vshrl.u32 %v925_v23, 16  ;;  %v933_v62 = vand.u32 65535, %v929_v41 }
 0x154   :  { %v934_v26 = vshrl.u32 %v929_v41, 16  ;;  %v955_v5 = vand.u32 65535, %v925_v23  ;;  %v1037_v25 = vand.u32 2147483647, %v3952_v42  ;;  %v3290_v59 = vadd.s32 4294967169, %v1041_v21 }
 0x155   :  { %v832_v22 = vsel %vm830_vm9, %v831_v4, %v3954_v47  ;;  %v958_v31 = vmul.u32 %v956_v44, %v931_v61  ;;  %v937_v49 = vmul.u32 %v933_v62, %v932_v45  ;;  %v686_v60 = vsub.s32 4294967266, %v3986_v19 }
 0x156   :  { %v833_v30 = vclz %v832_v22  ;;  %v936_v8 = vmul.u32 %v934_v26, %v931_v61  ;;  %v959_v58 = vmul.u32 %v955_v5, %v932_v45  ;;  %v935_v48 = vmul.u32 %v933_v62, %v931_v61 }
 0x157   :  { %v961_v28 = vshll.u32 %v958_v31, 16  ;;  %v898_v35 = vshrl.u32 %v3355_v24, %v3925_v1  ;;  %v919_v54 = vsel %vm917_vm8, %v907_v39, 2102212464  ;;  %v957_v14 = vmul.u32 %v955_v5, %v931_v61 }
 0x158   :  { %v3285_v16 = vadd.s32 4294967294, %v833_v30  ;;  %v939_v12 = vshll.u32 %v936_v8, 16  ;;  %v938_v51 = vmul.u32 %v934_v26, %v932_v45  ;;  %v941_v56 = vshll.u32 %v937_v49, 16 }
 0x159   :  { %v918_v46 = vsel %vm914_vm7, %v898_v35, %v901_v32  ;;  %v963_v7 = vshll.u32 %v959_v58, 16  ;;  %v1047_v17 = vadd.s32 1, %v3290_v59  ;;  %vm965_vm0 = vc.u32 %v957_v14, %v961_v28 }
 0x15a   :  { %vm3286_vm13 = vcmp.lt.s32.totalorder %v3285_v16, 0  ;;  %vm943_vm14 = vc.u32 %v935_v48, %v939_v12  ;;  %v945_v27 = vadd.s32 %v939_v12, %v935_v48  ;;  %v967_v22 = vadd.s32 %v961_v28, %v957_v14 }
 0x15b   :  { %v944_v4 = vsel %vm943_vm14, 1, %v3354_v38  ;;  %v3998_v1 = vsel %vm3286_vm13, 0, %v3285_v16  ;;  %v920_v39 = vsel %vm916_vm10, %v3947_v10, %v919_v54  ;;  %v960_v29 = vmul.u32 %v956_v44, %v932_v45 }
 0x15c   :  { %v946_v11 = vadd.s32 %v944_v4, %v938_v51  ;;  %vm947_vm15 = vc.u32 %v945_v27, %v941_v56  ;;  %v940_v30 = vshrl.u32 %v936_v8, 16  ;;  %v966_v37 = vsel %vm965_vm0, 1, %v3354_v38 }
 0x15d   :  { %v948_v23 = vsel %vm947_vm15, 1, %v3354_v38  ;;  %vm969_vm1 = vc.u32 %v967_v22, %v963_v7  ;;  %v687_v41 = vadd.s32 127, %v686_v60  ;;  %v968_v61 = vadd.s32 %v966_v37, %v960_v29 }
 0x15e   :  { %v950_v32 = vadd.s32 %v948_v23, %v946_v11  ;;  %v970_v62 = vsel %vm969_vm1, 1, %v3354_v38  ;;  %v1044_v26 = vand.u32 8388607, %v1037_v25  ;;  %v921_v5 = vsel %vm915_vm11, %v918_v46, %v920_v39 }
 0x15f   :  { %v942_v21 = vshrl.u32 %v937_v49, 16  ;;  %vm1048_vm2 = vcmp.gt.s32.totalorder %v1047_v17, 0  ;;  %v841_v44 = vsub.s32 4294967266, %v3998_v1  ;;  %v962_v45 = vshrl.u32 %v958_v31, 16 }
 0x160   :  { %v951_v10 = vadd.s32 %v950_v32, %v940_v30  ;;  %v972_v16 = vadd.s32 %v970_v62, %v968_v61  ;;  %v1049_v8 = vsel %vm1048_vm2, %v1047_v17, 0  ;;  %v666_v59 = vadd.s32 %v3829_v6, %v3847_v40 }
 0x161   :  { %v821_v60 = vadd.s32 %v3915_v63, %v3911_v50  ;;  %v1051_v12 = vand.u32 31, %v1049_v8  ;;  %v682_v2 = vsub.s32 32, %v3986_v19  ;;  %v964_v28 = vshrl.u32 %v959_v58, 16 }
 0x162   :  { %v4015_v48 = vadd.s32 %v951_v10, %v942_v21  ;;  %v4018_v49 = vadd.s32 %v967_v22, %v963_v7  ;;  %v973_v35 = vadd.s32 %v972_v16, %v962_v45  ;;  %v688_v54 = vshll.u32 %v687_v41, 23 }
 0x163   :  { %v975_v31 = vmul.u32 %v3966_v3, %v921_v5  ;;  %v1045_v14 = vor.u32 8388608, %v1044_v26  ;;  %v4021_v51 = vsub.s32 32, %v1051_v12  ;;  %v837_v6 = vsub.s32 32, %v3998_v1 }
 0x164   :  { %v842_v40 = vadd.s32 127, %v841_v44  ;;  %v974_v56 = vadd.s32 %v973_v35, %v964_v28  ;;  %vm977_vm3 = vc.u32 %v4015_v48, %v4018_v49  ;;  %v1054_v50 = vshll.u32 %v3355_v24, %v1051_v12 }
 0x165   :  { %v1055_v63 = vshrl.u32 %v3356_v57, %v4021_v51  ;;  %v1057_v58 = vshll.u32 %v3356_v57, %v1051_v12  ;;  %v1058_v3 = vshrl.u32 %v3357_v33, %v4021_v51  ;;  %v4032_v46 = vshrl.u32 %v1049_v8, 5 }
 0x166   :  { %v978_v27 = vadd.s32 1, %v974_v56  ;;  %v1060_v4 = vshll.u32 %v3357_v33, %v1051_v12  ;;  %v1061_v7 = vshrl.u32 %v3358_v20, %v4021_v51  ;;  %v1063_v22 = vshll.u32 %v3358_v20, %v1051_v12 }
 0x167   :  { %v4037_v17 = vor.u32 %v1055_v63, %v1054_v50  ;;  %v4039_v11 = vor.u32 %v1058_v3, %v1057_v58  ;;  %v1064_v39 = vshrl.u32 %v3359_v36, %v4021_v51  ;;  %v1066_v30 = vshll.u32 %v3359_v36, %v1051_v12 }
 0x168   :  { %v979_v23 = vsel %vm977_vm3, %v978_v27, %v974_v56  ;;  %v4044_v29 = vor.u32 %v1061_v7, %v1060_v4  ;;  %v1067_v32 = vshrl.u32 %v3360_v43, %v4021_v51  ;;  %v683_v37 = vshll.u32 %v3913_v52, %v3986_v19 }
 0x169   :  { %v684_v41 = vshrl.u32 %v666_v59, %v682_v2  ;;  %v980_v61 = vadd.s32 %v979_v23, %v975_v31  ;;  %v1065_v62 = vor.u32 %v1064_v39, %v1063_v22  ;;  %v689_v26 = vor.u32 4788187, %v688_v54 }
 0x16a   :  { %v1068_v5 = vor.u32 %v1067_v32, %v1066_v30  ;;  %vm1069_vm4 = vcmp.lt.s32.totalorder %v4032_v46, 1  ;;  %v4052_v21 = vshll.u32 %v1045_v14, 8  ;;  %v843_v10 = vshll.u32 %v842_v40, 23 }
 0x16b   :  { %v981_v44 = vadd.s32 536870912, %v980_v61  ;;  %vm1072_vm5 = vcmp.lt.s32.totalorder %v4032_v46, 4  ;;  %v1077_v45 = vsel %vm1069_vm4, %v4037_v17, %v4039_v11  ;;  %v839_v16 = vshrl.u32 %v821_v60, %v837_v6 }
 0x16c   :  { %vm1071_vm6 = vcmp.lt.s32.totalorder %v4032_v46, 3  ;;  %v1078_v52 = vsel %vm1072_vm5, %v1065_v62, 920167782  ;;  %v1081_v19 = vsel %vm1069_vm4, %v4039_v11, %v4044_v29  ;;  %vm1070_vm7 = vcmp.lt.s32.totalorder %v4032_v46, 2 }
 0x16d   :  { %v4066_v8 = vshrl.u32 %v981_v44, 30  ;;  %v1079_v59 = vsel %vm1071_vm6, %v4044_v29, %v1078_v52  ;;  %v1082_v60 = vsel %vm1072_vm5, %v1068_v5, 1326507024  ;;  %v685_v12 = vor.u32 %v684_v41, %v683_v37 }
 0x16e   :  { %v838_v2 = vshll.u32 %v3954_v47, %v3998_v1  ;;  %v1080_v28 = vsel %vm1070_vm7, %v1077_v45, %v1079_v59  ;;  %v1083_v35 = vsel %vm1071_vm6, %v1065_v62, %v1082_v60  ;;  %v690_v54 = vand.u32 2147483647, %v689_v26 }
 0x16f   :  { %v844_v31 = vor.u32 4788187, %v843_v10  ;;  %v983_v14 = vshll.u32 %v4066_v8, 30  ;;  %v1084_v6 = vsel %vm1070_vm7, %v1081_v19, %v1083_v35  ;;  %v1086_v56 = vand.u32 65535, %v4052_v21 }
 0x170   :  { %v840_v40 = vor.u32 %v839_v16, %v838_v2  ;;  %v1088_v50 = vand.u32 65535, %v1084_v6  ;;  %v1089_v63 = vshrl.u32 %v1084_v6, 16  ;;  %v1087_v47 = vshrl.u32 %v4052_v21, 16 }
 0x171   :  { %v984_v58 = vsub.s32 %v980_v61, %v983_v14  ;;  %v1110_v1 = vand.u32 65535, %v1080_v28  ;;  %v1111_v3 = vshrl.u32 %v1080_v28, 16  ;;  %v692_v27 = vcvt.s32.f32 %v685_v12 }
 0x172   :  { %v1091_v4 = vmul.u32 %v1089_v63, %v1086_v56  ;;  %v845_v7 = vand.u32 2147483647, %v844_v31  ;;  %v1092_v39 = vmul.u32 %v1088_v50, %v1087_v47  ;;  %v847_v30 = vcvt.s32.f32 %v840_v40 }
 0x173   :  { %vm985_vm8 = vcmp.lt.s32.totalorder %v984_v58, 0  ;;  %v986_v22 = vsub.s32 0, %v984_v58  ;;  %v4085_v23 = vmul.f32 %v692_v27, %v690_v54  ;;  %v1090_v32 = vmul.u32 %v1088_v50, %v1086_v56 }
 0x174   :  { %v1094_v37 = vshll.u32 %v1091_v4, 16  ;;  %v1093_v62 = vmul.u32 %v1089_v63, %v1087_v47  ;;  %v1113_v26 = vmul.u32 %v1111_v3, %v1086_v56  ;;  %v1114_v5 = vmul.u32 %v1110_v1, %v1087_v47 }
 0x175   :  { %v987_v41 = vsel %vm985_vm8, %v986_v22, %v984_v58  ;;  %v1096_v10 = vshll.u32 %v1092_v39, 16  ;;  %v848_v45 = vmul.f32 %v847_v30, %v845_v7  ;;  %v1112_v52 = vmul.u32 %v1110_v1, %v1086_v56 }
 0x176   :  { %v988_v61 = vclz %v987_v41  ;;  %vm1098_vm9 = vc.u32 %v1090_v32, %v1094_v37  ;;  %v1100_v44 = vadd.s32 %v1094_v37, %v1090_v32  ;;  %v1116_v19 = vshll.u32 %v1113_v26, 16 }
 0x177   :  { %v1099_v16 = vsel %vm1098_vm9, 1, %v3354_v38  ;;  %v1115_v12 = vmul.u32 %v1111_v3, %v1087_v47  ;;  %v1118_v28 = vshll.u32 %v1114_v5, 16  ;;  %v1095_v54 = vshrl.u32 %v1091_v4, 16 }
 0x178   :  { %v3288_v59 = vadd.s32 4294967294, %v988_v61  ;;  %v1101_v60 = vadd.s32 %v1099_v16, %v1093_v62  ;;  %vm1102_vm10 = vc.u32 %v1100_v44, %v1096_v10  ;;  %vm1120_vm11 = vc.u32 %v1112_v52, %v1116_v19 }
 0x179   :  { %v1103_v2 = vsel %vm1102_vm10, 1, %v3354_v38  ;;  %v1122_v35 = vadd.s32 %v1116_v19, %v1112_v52  ;;  %v1121_v14 = vsel %vm1120_vm11, 1, %v3354_v38  ;;  %v976_v6 = vadd.s32 %v4018_v49, %v4015_v48 }
 0x17a   :  { %vm3289_vm12 = vcmp.lt.s32.totalorder %v3288_v59, 0  ;;  %v1105_v31 = vadd.s32 %v1103_v2, %v1101_v60  ;;  %v1123_v56 = vadd.s32 %v1121_v14, %v1115_v12  ;;  %v1074_v47 = vsel %vm1072_vm5, %v4044_v29, 2102212464 }
 0x17b   :  { %v991_v40 = vsel %vm3289_vm12, 0, %v3288_v59  ;;  %vm1124_vm13 = vc.u32 %v1122_v35, %v1118_v28  ;;  %v1053_v3 = vshrl.u32 %v3355_v24, %v4021_v51  ;;  %v1097_v27 = vshrl.u32 %v1092_v39, 16 }
 0x17c   :  { %v992_v50 = vsub.s32 32, %v991_v40  ;;  %v996_v63 = vsub.s32 4294967266, %v991_v40  ;;  %v1106_v1 = vadd.s32 %v1105_v31, %v1095_v54  ;;  %v1117_v4 = vshrl.u32 %v1113_v26, 16 }
 0x17d   :  { %v1125_v7 = vsel %vm1124_vm13, 1, %v3354_v38  ;;  %v993_v22 = vshll.u32 %v984_v58, %v991_v40  ;;  %v1073_v32 = vsel %vm1069_vm4, %v1053_v3, %v4037_v17  ;;  %v1075_v29 = vsel %vm1071_vm6, %v4039_v11, %v1074_v47 }
 0x17e   :  { %v994_v30 = vshrl.u32 %v976_v6, %v992_v50  ;;  %v997_v48 = vadd.s32 127, %v996_v63  ;;  %v1127_v49 = vadd.s32 %v1125_v7, %v1123_v56  ;;  %v1107_v37 = vadd.s32 %v1106_v1, %v1097_v27 }
 0x17f   :  { %v1119_v51 = vshrl.u32 %v1114_v5, 16  ;;  %v694_v26 = vxor.u32 2147483648, %v4085_v23  ;;  %v849_v61 = vxor.u32 2147483648, %v848_v45  ;;  %v1126_v58 = vadd.s32 %v1122_v35, %v1118_v28 }
 0x180   :  { %v995_v41 = vor.u32 %v994_v30, %v993_v22  ;;  %v998_v62 = vshll.u32 %v997_v48, 23  ;;  %v1128_v39 = vadd.s32 %v1127_v49, %v1117_v4  ;;  %v1076_v44 = vsel %vm1070_vm7, %v1073_v32, %v1075_v29 }
 0x181   :  { %vm574_vm14 = vcmp.lt.s32.totalorder %v3788_v55, 0  ;;  %vm1132_vm15 = vc.u32 %v1107_v37, %v1126_v58  ;;  %vm729_vm0 = vcmp.lt.s32.totalorder %v3794_v15, 0  ;;  %v1130_v59 = vmul.u32 %v4052_v21, %v1076_v44 }
 0x182   :  { %v999_v10 = vor.u32 4788187, %v998_v62  ;;  %v1129_v16 = vadd.s32 %v1128_v39, %v1119_v51  ;;  %v1002_v11 = vcvt.s32.f32 %v995_v41  ;;  %v695_v5 = vsel %vm574_vm14, %v694_v26, %v4085_v23 }
 0x183   :  { %v850_v19 = vsel %vm729_vm0, %v849_v61, %v848_v45  ;;  %vm4117_vm1 = vcmp.le.f32.partialorder %v572_v0, 0.7853982  ;;  %vm4123_vm2 = vcmp.le.f32.partialorder %v727_v18, 0.7853982  ;;  %vm884_vm3 = vcmp.lt.s32.totalorder %v3887_v53, 0 }
 0x184   :  { %v1000_v17 = vand.u32 2147483647, %v999_v10  ;;  %v1133_v52 = vadd.s32 1, %v1129_v16  ;;  %v4130_v45 = vsel %vm4117_vm1, %v3788_v55, %v695_v5  ;;  %v4135_v21 = vsel %vm4123_vm2, %v3794_v15, %v850_v19 }
 0x185   :  { %vm4140_vm4 = vcmp.le.f32.partialorder %v882_v9, 0.7853982  ;;  %v4148_v54 = vmul.f32 %v4130_v45, %v4130_v45  ;;  %v4152_v31 = vmul.f32 %v4135_v21, %v4135_v21  ;;  %v1006_v26 = vsub.s32 4, %v4066_v8 }
 0x186   :  { %v1003_v46 = vmul.f32 %v1002_v11, %v1000_v17  ;;  %v1134_v60 = vsel %vm1132_vm15, %v1133_v52, %v1129_v16  ;;  %v1131_v61 = vadd.s32 %v1126_v58, %v1107_v37  ;;  %v696_v37 = vsub.s32 4, %v3892_v13 }
 0x187   :  { %v1135_v23 = vadd.s32 %v1134_v60, %v1130_v59  ;;  %v708_v56 = vmul.f32 -0.00019511016, %v4148_v54  ;;  %v863_v50 = vmul.f32 -0.00019511016, %v4152_v31  ;;  %v856_v29 = vmul.f32 -0.001358992, %v4152_v31 }
 0x188   :  { %v1004_v0 = vxor.u32 2147483648, %v1003_v46  ;;  %v701_v39 = vmul.f32 -0.001358992, %v4148_v54  ;;  %vm1039_vm7 = vcmp.lt.s32.totalorder %v3952_v42, 0  ;;  %vm4199_vm8 = vcmp.le.f32.partialorder %v1037_v25, 0.7853982 }
 0x189   :  { %v1136_v28 = vadd.s32 536870912, %v1135_v23  ;;  %v709_v3 = vadd.f32 0.008332121, %v708_v56  ;;  %v864_v27 = vadd.f32 0.008332121, %v863_v50  ;;  %vm1220_vm11 = vcmask 261120  }
 0x18a   :  { %v1005_v35 = vsel %vm884_vm3, %v1004_v0, %v1003_v46  ;;  %v857_v11 = vadd.f32 0.041655596, %v856_v29  ;;  %v851_v46 = vsub.s32 4, %v3941_v34  ;;  %v1007_v0 = vsel %vm884_vm3, %v1006_v26, %v4066_v8 }
 0x18b   :  { %v4157_v14 = vsel %vm4140_vm4, %v3887_v53, %v1005_v35  ;;  %v4159_v9 = vshrl.u32 %v1136_v28, 30  ;;  %v710_v49 = vmul.f32 %v709_v3, %v4148_v54  ;;  %v865_v32 = vmul.f32 %v864_v27, %v4152_v31 }
 0x18c   :  { %v1010_v6 = vmul.f32 %v4157_v14, %v4157_v14  ;;  %v858_v56 = vmul.f32 %v857_v11, %v4152_v31 }
 0x18d   :  { %v1138_v40 = vshll.u32 %v4159_v9, 30  ;;  %v711_v16 = vadd.f32 -0.16666654, %v710_v49  ;;  %v866_v17 = vadd.f32 -0.16666654, %v865_v32 }
 0x18e   :  { %v1018_v47 = vmul.f32 -0.00019511016, %v1010_v6  ;;  %v1011_v30 = vmul.f32 -0.001358992, %v1010_v6 }
 0x18f   :  { %v1139_v63 = vsub.s32 %v1135_v23, %v1138_v40  ;;  %v702_v23 = vadd.f32 0.041655596, %v701_v39  ;;  %v712_v58 = vmul.f32 %v711_v16, %v4148_v54  ;;  %v867_v40 = vmul.f32 %v866_v17, %v4152_v31 }
 0x190   :  { %v1019_v7 = vadd.f32 0.008332121, %v1018_v47  ;;  %v1012_v51 = vadd.f32 0.041655596, %v1011_v30  ;;  %v852_v47 = vsel %vm729_vm0, %v851_v46, %v3941_v34 }
 0x191   :  { %vm1140_vm5 = vcmp.lt.s32.totalorder %v1139_v63, 0  ;;  %v1141_v1 = vsub.s32 0, %v1139_v63  ;;  %v703_v3 = vmul.f32 %v702_v23, %v4148_v54  ;;  %v868_v30 = vadd.f32 1.0, %v867_v40 }
 0x192   :  { %v1020_v41 = vmul.f32 %v1019_v7, %v1010_v6  ;;  %v1013_v60 = vmul.f32 %v1012_v51, %v1010_v6  ;;  %v697_v7 = vsel %vm574_vm14, %v696_v37, %v3892_v13  ;;  %v854_v49 = vsel %vm4123_vm2, 0, %v852_v47 }
 0x193   :  { %v1142_v4 = vsel %vm1140_vm5, %v1141_v1, %v1139_v63  ;;  %v1009_v1 = vsel %vm4140_vm4, 0, %v1007_v0  ;;  %v869_v13 = vmul.f32 %v868_v30, %v4135_v21  ;;  %v871_v26 = vadd.s32 3, %v854_v49 }
 0x194   :  { %v1143_v22 = vclz %v1142_v4  ;;  %v1021_v52 = vadd.f32 -0.16666654, %v1020_v41  ;;  %v1014_v8 = vadd.f32 -0.4999988, %v1013_v60  ;;  %v1026_v34 = vadd.s32 3, %v1009_v1 }
 0x195   :  { %v704_v41 = vadd.f32 -0.4999988, %v703_v3  ;;  %v875_v25 = vxor.u32 2147483648, %v869_v13  ;;  %vm870_vm4 = vweird.f32 %v3794_v15  ;;  %vm715_vm5 = vweird.f32 %v3788_v55 }
 0x196   :  { %v3291_v48 = vadd.s32 4294967294, %v1143_v22  ;;  %v1022_v50 = vmul.f32 %v1021_v52, %v1010_v6  ;;  %v713_v22 = vadd.f32 1.0, %v712_v58  ;;  %v1015_v18 = vmul.f32 %v1014_v8, %v1010_v6 }
 0x197   :  { %v872_v52 = vand.u32 3, %v871_v26 }
 0x198   :  { %vm3292_vm6 = vcmp.lt.s32.totalorder %v3291_v48, 0  ;;  %v1023_v32 = vadd.f32 1.0, %v1022_v50  ;;  %v714_v39 = vmul.f32 %v713_v22, %v4130_v45  ;;  %v1016_v21 = vadd.f32 1.0, %v1015_v18 }
 0x199   :  { %v1146_v62 = vsel %vm3292_vm6, 0, %v3291_v48  ;;  %v859_v48 = vadd.f32 -0.4999988, %v858_v56  ;;  %vm873_vm13 = vcmp.lt.s32.totalorder %v872_v52, 2  ;;  %vm874_vm14 = vcmp.eq.s32.totalorder %v872_v52, 0 }
 0x19a   :  { %v1147_v10 = vsub.s32 32, %v1146_v62  ;;  %v1151_v44 = vsub.s32 4294967266, %v1146_v62  ;;  %v1148_v5 = vshll.u32 %v1139_v63, %v1146_v62  ;;  %v699_v62 = vsel %vm4117_vm1, 0, %v697_v7 }
 0x19b   :  { %v1024_v2 = vmul.f32 %v1023_v32, %v4157_v14  ;;  %v716_v14 = vadd.s32 3, %v699_v62  ;;  %v720_v17 = vxor.u32 2147483648, %v714_v39  ;;  %v1033_v60 = vxor.u32 2147483648, %v1016_v21  ;;  %v1193_v62 = vld [vmem:[%s5258_s3 + $0x8] sm:$0xff] }
 0x19c   :  { %v1149_v19 = vshrl.u32 %v1131_v61, %v1147_v10  ;;  %v1152_v59 = vadd.s32 127, %v1151_v44  ;;  %v860_v61 = vmul.f32 %v859_v48, %v4152_v31  ;;  %v1027_v10 = vand.u32 3, %v1026_v34 }
 0x19d   :  { %v1161_v44 = vsub.s32 4, %v4159_v9  ;;  %v705_v31 = vmul.f32 %v704_v41, %v4148_v54  ;;  %v1192_v54 = vld [vmem:[%s5258_s3] sm:$0xff]  ;;  %v717_v37 = vand.u32 3, %v716_v14  ;;  %vm877_vm15 = vcmp.eq.s32.totalorder %v872_v52, 2 }
 0x19e   :  { %v1150_v28 = vor.u32 %v1149_v19, %v1148_v5  ;;  %v1153_v35 = vshll.u32 %v1152_v59, 23  ;;  %v861_v11 = vadd.f32 1.0, %v860_v61  ;;  %v1030_v5 = vxor.u32 2147483648, %v1024_v2 }
 0x19f   :  { %vm1028_vm9 = vcmp.lt.s32.totalorder %v1027_v10, 2  ;;  %v1162_v46 = vsel %vm1039_vm7, %v1161_v44, %v4159_v9  ;;  %vm1029_vm10 = vcmp.eq.s32.totalorder %v1027_v10, 0  ;;  %v706_v23 = vadd.f32 1.0, %v705_v31 }
 0x1a0   :  { %v1154_v63 = vor.u32 4788187, %v1153_v35  ;;  %v1157_v4 = vcvt.s32.f32 %v1150_v28  ;;  %vm1032_vm12 = vcmp.eq.s32.totalorder %v1027_v10, 2  ;;  %v878_v35 = vxor.u32 2147483648, %v861_v11 }
 0x1a1   :  { %v1164_v58 = vsel %vm4199_vm8, 0, %v1162_v46  ;;  %v1031_v9 = vsel %vm1029_vm10, %v1016_v21, %v1030_v5  ;;  %v723_v50 = vxor.u32 2147483648, %v706_v23  ;;  %v1034_v8 = vsel %vm1032_vm12, %v1033_v60, %v1024_v2 }
 0x1a2   :  { %v1155_v27 = vand.u32 2147483647, %v1154_v63  ;;  %v1222_v63 = vsel %vm1220_vm11, %v1192_v54, 0  ;;  %v876_v3 = vsel %vm874_vm14, %v861_v11, %v875_v25  ;;  %v879_v7 = vsel %vm877_vm15, %v878_v35, %v869_v13  ;;  %v1194_v25 = vld [vmem:[%s5258_s3 + $0x10] sm:$0xff] }
 0x1a3   :  { %vm719_vm0 = vcmp.eq.s32.totalorder %v717_v37, 0  ;;  %v4220_v49 = vand.u32 4294901760, %v1222_v63  ;;  %vm1025_vm1 = vweird.f32 %v3887_v53  ;;  %v880_v32 = vsel %vm873_vm13, %v876_v3, %v879_v7 }
 0x1a4   :  { %v1158_v29 = vmul.f32 %v1157_v4, %v1155_v27  ;;  %v1181_v27 = vadd.s32 3, %v1164_v58  ;;  %v1035_v4 = vsel %vm1028_vm9, %v1031_v9, %v1034_v8  ;;  %v721_v48 = vsel %vm719_vm0, %v706_v23, %v720_v17 }
 0x1a5   :  { %vm718_vm2 = vcmp.lt.s32.totalorder %v717_v37, 2  ;;  %vm722_vm3 = vcmp.eq.s32.totalorder %v717_v37, 2  ;;  %v1036_v18 = vsel %vm1025_vm1, nan, %v1035_v4  ;;  %v881_v2 = vsel %vm870_vm4, nan, %v880_v32 }
 0x1a6   :  { %v1159_v51 = vxor.u32 2147483648, %v1158_v29  ;;  %v724_v41 = vsel %vm722_vm3, %v723_v50, %v714_v39  ;;  %v4229_v53 = vsub.f32 %v1222_v63, %v4220_v49  ;;  %v4231_v6 = vand.u32 4294901760, %v1036_v18 }
 0x1a7   :  { %v725_v13 = vsel %vm718_vm2, %v721_v48, %v724_v41  ;;  %v1225_v39 = vsel %vm1220_vm11, %v1193_v62, 0  ;;  %v4235_v44 = vand.u32 4294901760, %v881_v2  ;;  %vm1180_vm9 = vweird.f32 %v3952_v42  ;;  %v1198_v62 = vld [vmem:[%s5259_s4 + $0x10] sm:$0xff] }
 0x1a8   :  { %v1160_v12 = vsel %vm1039_vm7, %v1159_v51, %v1158_v29  ;;  %v1182_v51 = vand.u32 3, %v1181_v27  ;;  %v726_v10 = vsel %vm715_vm5, nan, %v725_v13  ;;  %v1255_v21 = vand.u32 4294901760, %v4229_v53  ;;  %v2135_v13 = vld [vmem:[%s5261_s6] sm:$0xff] }
 0x1a9   :  { %v1163_v45 = vsel %vm4199_vm8, %v3952_v42, %v1160_v12  ;;  %v4238_v31 = vand.u32 4294901760, %v1225_v39  ;;  %v1305_v55 = vsub.f32 %v1036_v18, %v4231_v6  ;;  %v1311_v52 = vsub.f32 %v881_v2, %v4235_v44 }
 0x1aa   :  { %v1165_v16 = vmul.f32 %v1163_v45, %v1163_v45  ;;  %vm1183_vm6 = vcmp.lt.s32.totalorder %v1182_v51, 2  ;;  %vm1184_vm7 = vcmp.eq.s32.totalorder %v1182_v51, 0  ;;  %vm1187_vm8 = vcmp.eq.s32.totalorder %v1182_v51, 2  ;;  %v2138_v51 = vld [vmem:[%s5261_s6 + $0x18] sm:$0xff] }
 0x1ab   :  { %v1256_v5 = vsub.f32 %v4229_v53, %v1255_v21  ;;  %v1228_v60 = vsel %vm1220_vm11, %v1194_v25, 0 }
 0x1ac   :  { %v1173_v19 = vmul.f32 -0.00019511016, %v1165_v16  ;;  %v1166_v59 = vmul.f32 -0.001358992, %v1165_v16  ;;  %v1269_v35 = vand.u32 4294901760, %v1228_v60 }
 0x1ae   :  { %v1174_v0 = vadd.f32 0.008332121, %v1173_v19  ;;  %v1167_v28 = vadd.f32 0.041655596, %v1166_v59  ;;  %v4252_v19 = vsub.f32 %v1225_v39, %v4238_v31  ;;  %v1306_v59 = vand.u32 4294901760, %v1305_v55 }
 0x1b0   :  { %v1175_v40 = vmul.f32 %v1174_v0, %v1165_v16  ;;  %v1168_v56 = vmul.f32 %v1167_v28, %v1165_v16  ;;  %v1312_v0 = vand.u32 4294901760, %v1311_v52  ;;  %v1257_v28 = vand.u32 4294901760, %v1256_v5 }
 0x1b1   :  { %v1263_v54 = vand.u32 4294901760, %v4252_v19  ;;  %v1307_v58 = vsub.f32 %v1305_v55, %v1306_v59 }
 0x1b2   :  { %v1176_v47 = vadd.f32 -0.16666654, %v1175_v40  ;;  %v1169_v1 = vadd.f32 -0.4999988, %v1168_v56  ;;  %v1195_v56 = vld [vmem:[%s5258_s3 + $0x18] sm:$0xff]  ;;  %v1313_v50 = vsub.f32 %v1311_v52, %v1312_v0 }
 0x1b3   :  { %v1264_v63 = vsub.f32 %v4252_v19, %v1263_v54  ;;  %v1231_v3 = vsel %vm1220_vm11, %v1195_v56, 0 }
 0x1b4   :  { %v1177_v22 = vmul.f32 %v1176_v47, %v1165_v16  ;;  %v1170_v30 = vmul.f32 %v1169_v1, %v1165_v16  ;;  %v4241_v16 = vand.u32 4294901760, %v726_v10  ;;  %v1270_v47 = vsub.f32 %v1228_v60, %v1269_v35 }
 0x1b5   :  { %v1308_v1 = vand.u32 4294901760, %v1307_v58  ;;  %v1314_v27 = vand.u32 4294901760, %v1313_v50  ;;  %v1265_v4 = vand.u32 4294901760, %v1264_v63 }
 0x1b6   :  { %v1178_v34 = vadd.f32 1.0, %v1177_v22  ;;  %v1171_v29 = vadd.f32 1.0, %v1170_v30  ;;  %v1317_v46 = vsub.f32 %v726_v10, %v4241_v16  ;;  %v1271_v7 = vand.u32 4294901760, %v1270_v47 }
 0x1b7   :  { %v1277_v22 = vand.u32 4294901760, %v1231_v3 }
 0x1b8   :  { %v1179_v26 = vmul.f32 %v1178_v34, %v1163_v45  ;;  %v1188_v61 = vxor.u32 2147483648, %v1171_v29  ;;  %v1318_v40 = vand.u32 4294901760, %v1317_v46  ;;  %v1272_v48 = vsub.f32 %v1270_v47, %v1271_v7 }
 0x1b9   :  { %v1278_v32 = vsub.f32 %v1231_v3, %v1277_v22 }
 0x1ba   :  { %v1185_v12 = vxor.u32 2147483648, %v1179_v26  ;;  %v1189_v45 = vsel %vm1187_vm8, %v1188_v61, %v1179_v26  ;;  %v1319_v8 = vsub.f32 %v1317_v46, %v1318_v40  ;;  %v1273_v34 = vand.u32 4294901760, %v1272_v48 }
 0x1bc   :  { %v1186_v15 = vsel %vm1184_vm7, %v1171_v29, %v1185_v12  ;;  %v1320_v30 = vand.u32 4294901760, %v1319_v8  ;;  %v1279_v29 = vand.u32 4294901760, %v1278_v32 }
 0x1bd   :  { %v1190_v14 = vsel %vm1183_vm6, %v1186_v15, %v1189_v45 }
 0x1be   :  { %v1191_v17 = vsel %vm1180_vm9, nan, %v1190_v14  ;;  %v1280_v18 = vsub.f32 %v1278_v32, %v1279_v29 }
 0x1bf   :  { %v1245_v11 = vand.u32 4294901760, %v1191_v17 }
 0x1c0   :  { %v1281_v41 = vand.u32 4294901760, %v1280_v18 }
 0x1c1   :  { %1246 = vmatpush.msrb.mxu2 %v1245_v11  ;;  %v1299_v42 = vsub.f32 %v1191_v17, %v1245_v11  ;;  %1487 = vmatpush.msra.mxu1 %v1245_v11 }
 0x1c3   :  { %1248 = vmatpush.msrb.mxu2 %v4231_v6  ;;  %1489 = vmatpush.msra.mxu1 %v4231_v6  ;;  %v1300_v23 = vand.u32 4294901760, %v1299_v42 }
 0x1c5   :  { %1250 = vmatpush.msrb.mxu2 %v4235_v44  ;;  %1444 = vmatpush.msra.mxu0 %v1300_v23  ;;  %v1301_v37 = vsub.f32 %v1299_v42, %v1300_v23 }
 0x1c6   :  { %1491 = vmatpush.msra.mxu1 %v4235_v44 }
 0x1c7   :  { %1252 = vmatpush.msrb.mxu2 %v4241_v16  ;;  %1448 = vmatpush.msra.mxu0 %v1306_v59  ;;  %v1302_v9 = vand.u32 4294901760, %v1301_v37 }
 0x1c8   :  { %1493 = vmatpush.msra.mxu1 %v4241_v16  ;;  %1258 = vmatmul.f32.vlgmr.msrb.gmra.mxu2 %v1257_v28 }
 0x1c9   :  { %1353 = vmatpush.msra.mxu2 %v1299_v42  ;;  %1303 = vmatpush.msrb.mxu3 %v1302_v9 }
 0x1ca   :  { %1452 = vmatpush.msra.mxu0 %v1312_v0  ;;  %1495 = vmatmul.f32.vlgmr.msra.gmra.mxu1 %v4220_v49 }
 0x1cb   :  { %1356 = vmatpush.msra.mxu2 %v1305_v55  ;;  %1309 = vmatpush.msrb.mxu3 %v1308_v1 }
 0x1cc   :  { %1456 = vmatpush.msra.mxu0 %v1318_v40 }
 0x1cd   :  { %1359 = vmatpush.msra.mxu2 %v1311_v52  ;;  %1315 = vmatpush.msrb.mxu3 %v1314_v27 }
 0x1ce   :  { %1458 = vmatmul.f32.vlgmr.msra.gmra.mxu0 %v4220_v49 }
 0x1cf   :  { %1362 = vmatpush.msra.mxu2 %v1317_v46  ;;  %1321 = vmatpush.msrb.mxu3 %v1320_v30 }
 0x1d0   :  { %1266 = vmatmul.f32.gmra.mxu2 %v1265_v4  ;;  %1323 = vmatmul.f32.vlgmr.msrb.gmra.mxu3 %v4220_v49  ;;  %v1199_v49 = vld [vmem:[%s5259_s4 + $0x18] sm:$0xff] }
 0x1d1   :  { %1397 = vmatpush.msra.mxu3 %v1245_v11  ;;  %1217 = vperm.xlu2 %3327, %v1199_v49   ;;  %v1208_v11 = vpop.permute.xlu0 %1207 }
 0x1d2   :  { %1499 = vmatmul.f32.gmra.mxu1 %v4238_v31 }
 0x1d3   :  { %1399 = vmatpush.msra.mxu3 %v4231_v6 }
 0x1d5   :  { %1401 = vmatpush.msra.mxu3 %v4235_v44 }
 0x1d6   :  { %1462 = vmatmul.f32.gmra.mxu0 %v4238_v31 }
 0x1d7   :  { %1403 = vmatpush.msra.mxu3 %v4241_v16 }
 0x1d8   :  { %1274 = vmatmul.f32.gmra.mxu2 %v1273_v34  ;;  %1327 = vmatmul.f32.gmra.mxu3 %v4238_v31 }
 0x1d9   :  { %1212 = vperm.xlu2 %3327, %v1198_v62  }
 0x1da   :  { %1503 = vmatmul.f32.gmra.mxu1 %v1269_v35 }
 0x1de   :  { %1466 = vmatmul.f32.gmra.mxu0 %v1269_v35 }
 0x1e0   :  { %1282 = vmatmul.f32.gmra.mxu2 %v1281_v41  ;;  %1331 = vmatmul.f32.gmra.mxu3 %v1269_v35 }
 0x1e1   :  { %2156 = vperm.xlu2 %3327, %v2138_v51  }
 0x1e2   :  { %1507 = vmatmul.f32.gmra.mxu1 %v1277_v22 }
 0x1e6   :  { %1470 = vmatmul.f32.gmra.mxu0 %v1277_v22 }
 0x1e8   :  { %1335 = vmatmul.f32.gmra.mxu3 %v1277_v22  ;;  %1365 = vmatmul.f32.vlgmr.msra.gmra.mxu2 %v4229_v53  ;;  %v1203_v53 = vpop.permute.xlu1 %1202 }
 0x1e9   :  { %2141 = vperm.xlu2 %3327, %v2135_v13  }
 0x1f0   :  { %1370 = vmatmul.f32.gmra.mxu2 %v4252_v19  ;;  %1407 = vmatmul.f32.vlgmr.msra.gmra.mxu3 %v1255_v21 }
 0x1f8   :  { %1375 = vmatmul.f32.gmra.mxu2 %v1270_v47  ;;  %1413 = vmatmul.f32.gmra.mxu3 %v1263_v54 }
 0x200   :  { %1380 = vmatmul.f32.gmra.mxu2 %v1278_v32  ;;  %1419 = vmatmul.f32.gmra.mxu3 %v1271_v7 }
 0x208   :  { %1425 = vmatmul.f32.gmra.mxu3 %v1279_v29 }
 0x22b   :  { %v4301_v55 = vpop.permute.xlu2 %1217 }
 0x233   :  { %v1213_v58 = vpop.permute.xlu2 %1212 }
 0x247   :  { %v1496_v25 = vpop.f32.mrf.mxu1 }
 0x24b   :  { %v1259_v26 = vpop.f32.mrf.mxu2  ;;  %v1459_v14 = vpop.f32.mrf.mxu0 }
 0x24c   :  { %v1260_v15 = vadd.f32 %v1259_v26, %v1203_v53 }
 0x24f   :  { %v1500_v9 = vpop.f32.mrf.mxu1 }
 0x253   :  { %v1267_v61 = vpop.f32.mrf.mxu2  ;;  %v1324_v2 = vpop.f32.mrf.mxu3 }
 0x254   :  { %v1325_v21 = vadd.f32 %v1324_v2, %v1260_v15  ;;  %v1268_v5 = vadd.f32 %v1267_v61, %v1208_v11  ;;  %v1463_v35 = vpop.f32.mrf.mxu0 }
 0x25b   :  { %v1275_v6 = vpop.f32.mrf.mxu2  ;;  %v1328_v39 = vpop.f32.mrf.mxu3 }
 0x25c   :  { %v1329_v59 = vadd.f32 %v1328_v39, %v1268_v5  ;;  %v1276_v47 = vadd.f32 %v1275_v6, %v1213_v58 }
 0x263   :  { %v1332_v12 = vpop.f32.mrf.mxu3  ;;  %v4297_v10 = vpop.f32.mrf.mxu2 }
 0x264   :  { %v1333_v22 = vadd.f32 %v1332_v12, %v1276_v47 }
 0x26b   :  { %v4299_v44 = vpop.f32.mrf.mxu3  ;;  %v1366_v45 = vpop.f32.mrf.mxu2 }
 0x26c   :  { %v1367_v31 = vadd.f32 %v1366_v45, %v1325_v21 }
 0x273   :  { %v1408_v16 = vpop.f32.mrf.mxu3  ;;  %v1371_v19 = vpop.f32.mrf.mxu2 }
 0x274   :  { %v1409_v17 = vadd.f32 %v1408_v16, %v1367_v31  ;;  %v1372_v23 = vadd.f32 %v1371_v19, %v1329_v59 }
 0x276   :  { %v1460_v52 = vadd.f32 %v1459_v14, %v1409_v17 }
 0x278   :  { %v4303_v42 = vadd.f32 %v1496_v25, %v1460_v52 }
 0x27a   :  { %v1511_v46 = vand.u32 2147483647, %v4303_v42  ;;  %v1514_v60 = vand.u32 2139095040, %v4303_v42 }
 0x27b   :  { %v1414_v0 = vpop.f32.mrf.mxu3 }
 0x27c   :  { %v1515_v28 = vshrl.u32 %v1514_v60, 23  ;;  %v1518_v54 = vand.u32 8388607, %v1511_v46  ;;  %v1415_v37 = vadd.f32 %v1414_v0, %v1372_v23  ;;  %v1376_v23 = vpop.f32.mrf.mxu2 }
 0x27e   :  { %v3293_v40 = vadd.s32 4294967169, %v1515_v28  ;;  %v1519_v56 = vor.u32 8388608, %v1518_v54  ;;  %v1464_v50 = vadd.f32 %v1463_v35, %v1415_v37 }
 0x280   :  { %v1521_v63 = vadd.s32 1, %v3293_v40  ;;  %v4309_v1 = vadd.f32 %v1500_v9, %v1464_v50  ;;  %v4311_v8 = vshll.u32 %v1519_v56, 8  ;;  %v1377_v56 = vadd.f32 %v1376_v23, %v1333_v22 }
 0x282   :  { %vm1522_vm10 = vcmp.gt.s32.totalorder %v1521_v63, 0  ;;  %v1666_v27 = vand.u32 2147483647, %v4309_v1  ;;  %v1669_v4 = vand.u32 2139095040, %v4309_v1  ;;  %v1560_v48 = vand.u32 65535, %v4311_v8 }
 0x283   :  { %v1523_v3 = vsel %vm1522_vm10, %v1521_v63, 0  ;;  %v1561_v32 = vshrl.u32 %v4311_v8, 16 }
 0x284   :  { %v1525_v7 = vand.u32 31, %v1523_v3  ;;  %v1670_v34 = vshrl.u32 %v1669_v4, 23  ;;  %v1524_v29 = vshrl.u32 %v1523_v3, 5  ;;  %v4321_v41 = vand.u32 8388607, %v1666_v27 }
 0x286   :  { %v1526_v30 = vsub.s32 32, %v1525_v7  ;;  %v1528_v18 = vshll.u32 %v3355_v24, %v1525_v7  ;;  %v1531_v49 = vshll.u32 %v3356_v57, %v1525_v7  ;;  %v1534_v13 = vshll.u32 %v3357_v33, %v1525_v7 }
 0x287   :  { %v1537_v61 = vshll.u32 %v3358_v20, %v1525_v7  ;;  %v1540_v6 = vshll.u32 %v3359_v36, %v1525_v7  ;;  %v3296_v45 = vadd.s32 4294967169, %v1670_v34  ;;  %vm1543_vm12 = vcmp.lt.s32.totalorder %v1524_v29, 1 }
 0x288   :  { %v1529_v62 = vshrl.u32 %v3356_v57, %v1526_v30  ;;  %v1532_v51 = vshrl.u32 %v3357_v33, %v1526_v30  ;;  %v1535_v26 = vshrl.u32 %v3358_v20, %v1526_v30  ;;  %v1538_v2 = vshrl.u32 %v3359_v36, %v1526_v30 }
 0x289   :  { %v1541_v39 = vshrl.u32 %v3360_v43, %v1526_v30  ;;  %vm1546_vm13 = vcmp.lt.s32.totalorder %v1524_v29, 4  ;;  %v1527_v14 = vshrl.u32 %v3355_v24, %v1526_v30  ;;  %vm1545_vm14 = vcmp.lt.s32.totalorder %v1524_v29, 3 }
 0x28a   :  { %v1530_v12 = vor.u32 %v1529_v62, %v1528_v18  ;;  %v1533_v53 = vor.u32 %v1532_v51, %v1531_v49  ;;  %v1536_v15 = vor.u32 %v1535_v26, %v1534_v13  ;;  %v1539_v21 = vor.u32 %v1538_v2, %v1537_v61 }
 0x28b   :  { %v1542_v31 = vor.u32 %v1541_v39, %v1540_v6  ;;  %v1676_v5 = vadd.s32 1, %v3296_v45  ;;  %vm1544_vm15 = vcmp.lt.s32.totalorder %v1524_v29, 2  ;;  %v1674_v9 = vor.u32 8388608, %v4321_v41 }
 0x28c   :  { %v1548_v16 = vsel %vm1546_vm13, %v1536_v15, 2102212464  ;;  %v1551_v17 = vsel %vm1543_vm12, %v1530_v12, %v1533_v53  ;;  %v1555_v25 = vsel %vm1543_vm12, %v1533_v53, %v1536_v15  ;;  %v1552_v11 = vsel %vm1546_vm13, %v1539_v21, 920167782 }
 0x28d   :  { %v1556_v52 = vsel %vm1546_vm13, %v1542_v31, 1326507024  ;;  %v1547_v19 = vsel %vm1543_vm12, %v1527_v14, %v1530_v12  ;;  %v1553_v59 = vsel %vm1545_vm14, %v1536_v15, %v1552_v11  ;;  %v1549_v0 = vsel %vm1545_vm14, %v1533_v53, %v1548_v16 }
 0x28e   :  { %v1557_v60 = vsel %vm1545_vm14, %v1539_v21, %v1556_v52  ;;  %v1554_v28 = vsel %vm1544_vm15, %v1551_v17, %v1553_v59  ;;  %vm1677_vm0 = vcmp.gt.s32.totalorder %v1676_v5, 0  ;;  %v4333_v50 = vsel %vm1544_vm15, %v1547_v19, %v1549_v0  ;;  %v1420_v0 = vpop.f32.mrf.mxu3 }
 0x28f   :  { %v1558_v54 = vsel %vm1544_vm15, %v1555_v25, %v1557_v60  ;;  %v1584_v58 = vand.u32 65535, %v1554_v28  ;;  %v1585_v40 = vshrl.u32 %v1554_v28, 16  ;;  %v1678_v3 = vsel %vm1677_vm0, %v1676_v5, 0 }
 0x290   :  { %v1562_v35 = vand.u32 65535, %v1558_v54  ;;  %v1563_v37 = vshrl.u32 %v1558_v54, 16  ;;  %v1680_v2 = vand.u32 31, %v1678_v3  ;;  %v4340_v21 = vshrl.u32 %v1678_v3, 5 }
 0x291   :  { %v1587_v30 = vmul.u32 %v1585_v40, %v1560_v48  ;;  %v1588_v34 = vmul.u32 %v1584_v58, %v1561_v32  ;;  %v1586_v49 = vmul.u32 %v1584_v58, %v1560_v48  ;;  %v1589_v62 = vmul.u32 %v1585_v40, %v1561_v32 }
 0x292   :  { %v1565_v63 = vmul.u32 %v1563_v37, %v1560_v48  ;;  %v1566_v47 = vmul.u32 %v1562_v35, %v1561_v32  ;;  %v1564_v4 = vmul.u32 %v1562_v35, %v1560_v48  ;;  %v1567_v7 = vmul.u32 %v1563_v37, %v1561_v32 }
 0x293   :  { %v1590_v26 = vshll.u32 %v1587_v30, 16  ;;  %v1591_v61 = vshrl.u32 %v1587_v30, 16  ;;  %v1592_v41 = vshll.u32 %v1588_v34, 16  ;;  %v1593_v39 = vshrl.u32 %v1588_v34, 16 }
 0x294   :  { %v1568_v29 = vshll.u32 %v1565_v63, 16  ;;  %v1569_v18 = vshrl.u32 %v1565_v63, 16  ;;  %v1570_v51 = vshll.u32 %v1566_v47, 16  ;;  %v1571_v13 = vshrl.u32 %v1566_v47, 16 }
 0x295   :  { %vm1594_vm2 = vc.u32 %v1586_v49, %v1590_v26  ;;  %v1596_v12 = vadd.s32 %v1590_v26, %v1586_v49  ;;  %v4337_v45 = vsub.s32 32, %v1680_v2  ;;  %v1683_v17 = vshll.u32 %v3355_v24, %v1680_v2 }
 0x296   :  { %vm1572_vm1 = vc.u32 %v1564_v4, %v1568_v29  ;;  %v1574_v22 = vadd.s32 %v1568_v29, %v1564_v4  ;;  %v1595_v15 = vsel %vm1594_vm2, 1, %v3354_v38  ;;  %v1686_v52 = vshll.u32 %v3356_v57, %v1680_v2 }
 0x297   :  { %v1573_v6 = vsel %vm1572_vm1, 1, %v3354_v38  ;;  %v1597_v32 = vadd.s32 %v1595_v15, %v1589_v62  ;;  %vm1598_vm4 = vc.u32 %v1596_v12, %v1592_v41  ;;  %v4343_v16 = vadd.s32 %v1596_v12, %v1592_v41 }
 0x298   :  { %v1575_v53 = vadd.s32 %v1573_v6, %v1567_v7  ;;  %vm1576_vm3 = vc.u32 %v1574_v22, %v1570_v51  ;;  %v1599_v14 = vsel %vm1598_vm4, 1, %v3354_v38  ;;  %v1684_v11 = vshrl.u32 %v3356_v57, %v4337_v45 }
 0x299   :  { %v1577_v48 = vsel %vm1576_vm3, 1, %v3354_v38  ;;  %v1601_v25 = vadd.s32 %v1599_v14, %v1597_v32  ;;  %v1687_v5 = vshrl.u32 %v3357_v33, %v4337_v45  ;;  %v1689_v59 = vshll.u32 %v3357_v33, %v1680_v2 }
 0x29a   :  { %v1579_v31 = vadd.s32 %v1577_v48, %v1575_v53  ;;  %v1690_v60 = vshrl.u32 %v3358_v20, %v4337_v45  ;;  %v1692_v23 = vshll.u32 %v3358_v20, %v1680_v2  ;;  %v4355_v54 = vor.u32 %v1684_v11, %v1683_v17 }
 0x29b   :  { %v1602_v28 = vadd.s32 %v1601_v25, %v1591_v61  ;;  %v4357_v35 = vor.u32 %v1687_v5, %v1686_v52  ;;  %v1693_v37 = vshrl.u32 %v3359_v36, %v4337_v45  ;;  %v1695_v63 = vshll.u32 %v3359_v36, %v1680_v2 }
 0x29c   :  { %v1580_v19 = vadd.s32 %v1579_v31, %v1569_v18  ;;  %v4363_v40 = vor.u32 %v1690_v60, %v1689_v59  ;;  %v1696_v47 = vshrl.u32 %v3360_v43, %v4337_v45  ;;  %v1421_v7 = vadd.f32 %v1420_v0, %v1377_v56  ;;  %v1504_v31 = vpop.f32.mrf.mxu1 }
 0x29d   :  { %v1603_v3 = vadd.s32 %v1602_v28, %v1593_v39  ;;  %v1694_v4 = vor.u32 %v1693_v37, %v1692_v23  ;;  %vm1698_vm6 = vcmp.lt.s32.totalorder %v4340_v21, 1  ;;  %v4371_v34 = vshll.u32 %v1674_v9, 8 }
 0x29e   :  { %v4361_v58 = vadd.s32 %v1580_v19, %v1571_v13  ;;  %v1697_v30 = vor.u32 %v1696_v47, %v1695_v63  ;;  %v1604_v29 = vmul.u32 %v4311_v8, %v4333_v50  ;;  %vm1701_vm7 = vcmp.lt.s32.totalorder %v4340_v21, 4  ;;  %v1467_v13 = vpop.f32.mrf.mxu0 }
 0x29f   :  { %v1607_v18 = vadd.s32 1, %v1603_v3  ;;  %v1706_v49 = vsel %vm1698_vm6, %v4355_v54, %v4357_v35  ;;  %vm1700_vm8 = vcmp.lt.s32.totalorder %v4340_v21, 3  ;;  %v1707_v56 = vsel %vm1701_vm7, %v1694_v4, 920167782 }
 0x2a0   :  { %vm1606_vm5 = vc.u32 %v4361_v58, %v4343_v16  ;;  %v1710_v9 = vsel %vm1698_vm6, %v4357_v35, %v4363_v40  ;;  %v1711_v8 = vsel %vm1701_vm7, %v1697_v30, 1326507024  ;;  %vm1699_vm9 = vcmp.lt.s32.totalorder %v4340_v21, 2 }
 0x2a1   :  { %v1608_v50 = vsel %vm1606_vm5, %v1607_v18, %v1603_v3  ;;  %v1708_v62 = vsel %vm1700_vm8, %v4363_v40, %v1707_v56  ;;  %v1712_v51 = vsel %vm1700_vm8, %v1694_v4, %v1711_v8  ;;  %v1715_v22 = vand.u32 65535, %v4371_v34 }
 0x2a2   :  { %v1709_v26 = vsel %vm1699_vm9, %v1706_v49, %v1708_v62  ;;  %v1713_v61 = vsel %vm1699_vm9, %v1710_v9, %v1712_v51  ;;  %v1716_v41 = vshrl.u32 %v4371_v34, 16  ;;  %v1609_v2 = vadd.s32 %v1608_v50, %v1604_v29 }
 0x2a3   :  { %v1717_v6 = vand.u32 65535, %v1713_v61  ;;  %v1718_v39 = vshrl.u32 %v1713_v61, 16  ;;  %v1740_v12 = vshrl.u32 %v1709_v26, 16  ;;  %v1739_v53 = vand.u32 65535, %v1709_v26 }
 0x2a4   :  { %v1468_v15 = vadd.f32 %v1467_v13, %v1421_v7  ;;  %v1610_v17 = vadd.s32 536870912, %v1609_v2  ;;  %v1703_v8 = vsel %vm1701_vm7, %v4363_v40, 2102212464  ;;  %v1682_v62 = vshrl.u32 %v3355_v24, %v4337_v45 }
 0x2a5   :  { %v1720_v48 = vmul.u32 %v1718_v39, %v1715_v22  ;;  %v1721_v32 = vmul.u32 %v1717_v6, %v1716_v41  ;;  %v1742_v14 = vmul.u32 %v1740_v12, %v1715_v22  ;;  %v1719_v25 = vmul.u32 %v1717_v6, %v1715_v22 }
 0x2a6   :  { %v1722_v52 = vmul.u32 %v1718_v39, %v1716_v41  ;;  %v1743_v5 = vmul.u32 %v1739_v53, %v1716_v41  ;;  %v4401_v59 = vadd.f32 %v1504_v31, %v1468_v15  ;;  %v1741_v0 = vmul.u32 %v1739_v53, %v1715_v22 }
 0x2a7   :  { %v1723_v11 = vshll.u32 %v1720_v48, 16  ;;  %v1745_v19 = vshll.u32 %v1742_v14, 16  ;;  %v1725_v60 = vshll.u32 %v1721_v32, 16  ;;  %v4404_v37 = vshrl.u32 %v1610_v17, 30 }
 0x2a8   :  { %v1724_v47 = vshrl.u32 %v1720_v48, 16  ;;  %v1744_v4 = vmul.u32 %v1740_v12, %v1716_v41  ;;  %v1747_v7 = vshll.u32 %v1743_v5, 16  ;;  %v1824_v49 = vand.u32 2139095040, %v4401_v59 }
 0x2a9   :  { %vm1727_vm10 = vc.u32 %v1719_v25, %v1723_v11  ;;  %v1729_v23 = vadd.s32 %v1723_v11, %v1719_v25  ;;  %vm1749_vm13 = vc.u32 %v1741_v0, %v1745_v19  ;;  %v1751_v18 = vadd.s32 %v1745_v19, %v1741_v0  ;;  %v1426_v11 = vpop.f32.mrf.mxu3 }
 0x2aa   :  { %v1728_v28 = vsel %vm1727_vm10, 1, %v3354_v38  ;;  %v1750_v29 = vsel %vm1749_vm13, 1, %v3354_v38  ;;  %v1612_v9 = vshll.u32 %v4404_v37, 30  ;;  %v1726_v51 = vshrl.u32 %v1721_v32, 16 }
 0x2ab   :  { %v1730_v63 = vadd.s32 %v1728_v28, %v1722_v52  ;;  %vm1731_vm12 = vc.u32 %v1729_v23, %v1725_v60  ;;  %v1752_v56 = vadd.s32 %v1750_v29, %v1744_v4  ;;  %vm1753_vm14 = vc.u32 %v1751_v18, %v1747_v7 }
 0x2ac   :  { %v1732_v3 = vsel %vm1731_vm12, 1, %v3354_v38  ;;  %v1754_v13 = vsel %vm1753_vm14, 1, %v3354_v38  ;;  %v1825_v26 = vshrl.u32 %v1824_v49, 23  ;;  %v1284_v61 = vadd.f32 %v4297_v10, %v4301_v55 }
 0x2ad   :  { %v1734_v30 = vadd.s32 %v1732_v3, %v1730_v63  ;;  %v1746_v22 = vshrl.u32 %v1742_v14, 16  ;;  %v1756_v41 = vadd.s32 %v1754_v13, %v1752_v56  ;;  %v1702_v6 = vsel %vm1698_vm6, %v1682_v62, %v4355_v54 }
 0x2ae   :  { %v1704_v40 = vsel %vm1700_vm8, %v4357_v35, %v1703_v8  ;;  %v3299_v45 = vadd.s32 4294967169, %v1825_v26  ;;  %v4426_v12 = vsub.s32 %v1609_v2, %v1612_v9  ;;  %v1748_v53 = vshrl.u32 %v1743_v5, 16  ;;  %v1381_v35 = vpop.f32.mrf.mxu2  ;;  %v1471_v9 = vpop.f32.mrf.mxu0 }
 0x2af   :  { %v1735_v50 = vadd.s32 %v1734_v30, %v1724_v47  ;;  %v1757_v15 = vadd.s32 %v1756_v41, %v1746_v22  ;;  %v4428_v48 = vadd.s32 %v1751_v18, %v1747_v7  ;;  %v1705_v55 = vsel %vm1699_vm9, %v1702_v6, %v1704_v40 }
 0x2b0   :  { %v1831_v10 = vadd.s32 1, %v3299_v45  ;;  %v1337_v54 = vadd.f32 %v4299_v44, %v1284_v61  ;;  %v1615_v31 = vsub.s32 0, %v4426_v12  ;;  %v1821_v14 = vand.u32 2147483647, %v4401_v59  ;;  %v1508_v45 = vpop.f32.mrf.mxu1 }
 0x2b1   :  { %v4424_v39 = vadd.s32 %v1735_v50, %v1726_v51  ;;  %v1758_v32 = vadd.s32 %v1757_v15, %v1748_v53  ;;  %vm1614_vm1 = vcmp.lt.s32.totalorder %v4426_v12, 0  ;;  %v1759_v25 = vmul.u32 %v4371_v34, %v1705_v55 }
 0x2b2   :  { %vm1832_vm0 = vcmp.gt.s32.totalorder %v1831_v10, 0  ;;  %v1382_v5 = vadd.f32 %v1381_v35, %v1337_v54  ;;  %v1616_v60 = vsel %vm1614_vm1, %v1615_v31, %v4426_v12  ;;  %v1828_v23 = vand.u32 8388607, %v1821_v14 }
 0x2b3   :  { %vm1761_vm15 = vc.u32 %v4424_v39, %v4428_v48  ;;  %v1762_v2 = vadd.s32 1, %v1758_v32  ;;  %v1833_v17 = vsel %vm1832_vm0, %v1831_v10, 0  ;;  %v1617_v29 = vclz %v1616_v60 }
 0x2b4   :  { %v1835_v21 = vand.u32 31, %v1833_v17  ;;  %v1427_v0 = vadd.f32 %v1426_v11, %v1382_v5  ;;  %v4457_v49 = vshrl.u32 %v1833_v17, 5  ;;  %v1829_v26 = vor.u32 8388608, %v1828_v23 }
 0x2b5   :  { %v1763_v52 = vsel %vm1761_vm15, %v1762_v2, %v1758_v32  ;;  %v3294_v53 = vadd.s32 4294967294, %v1617_v29 }
 0x2b6   :  { %v1764_v44 = vadd.s32 %v1763_v52, %v1759_v25  ;;  %v4439_v19 = vsub.s32 32, %v1835_v21  ;;  %v1838_v63 = vshll.u32 %v3355_v24, %v1835_v21  ;;  %v1841_v3 = vshll.u32 %v3356_v57, %v1835_v21 }
 0x2b7   :  { %v1847_v7 = vshll.u32 %v3358_v20, %v1835_v21  ;;  %v1844_v62 = vshll.u32 %v3357_v33, %v1835_v21  ;;  %v1850_v61 = vshll.u32 %v3359_v36, %v1835_v21  ;;  %v1472_v41 = vadd.f32 %v1471_v9, %v1427_v0 }
 0x2b8   :  { %v1765_v28 = vadd.s32 536870912, %v1764_v44  ;;  %v1839_v47 = vshrl.u32 %v3356_v57, %v4439_v19  ;;  %v1842_v34 = vshrl.u32 %v3357_v33, %v4439_v19  ;;  %v1845_v4 = vshrl.u32 %v3358_v20, %v4439_v19 }
 0x2b9   :  { %v1848_v30 = vshrl.u32 %v3359_v36, %v4439_v19  ;;  %v1851_v56 = vshrl.u32 %v3360_v43, %v4439_v19  ;;  %vm1853_vm2 = vcmp.lt.s32.totalorder %v4457_v49, 1  ;;  %vm1856_vm3 = vcmp.lt.s32.totalorder %v4457_v49, 4 }
 0x2ba   :  { %v4455_v18 = vshrl.u32 %v1765_v28, 30  ;;  %v4461_v8 = vor.u32 %v1839_v47, %v1838_v63  ;;  %v4463_v50 = vor.u32 %v1842_v34, %v1841_v3  ;;  %v1846_v22 = vor.u32 %v1845_v4, %v1844_v62 }
 0x2bb   :  { %v1849_v51 = vor.u32 %v1848_v30, %v1847_v7  ;;  %v1852_v40 = vor.u32 %v1851_v56, %v1850_v61  ;;  %vm1855_vm5 = vcmp.lt.s32.totalorder %v4457_v49, 3  ;;  %v4481_v32 = vshll.u32 %v1829_v26, 8 }
 0x2bc   :  { %v1767_v13 = vshll.u32 %v4455_v18, 30  ;;  %v1861_v15 = vsel %vm1853_vm2, %v4461_v8, %v4463_v50  ;;  %vm1854_vm6 = vcmp.lt.s32.totalorder %v4457_v49, 2  ;;  %v1865_v35 = vsel %vm1853_vm2, %v4463_v50, %v1846_v22 }
 0x2bd   :  { %v1862_v10 = vsel %vm1856_vm3, %v1849_v51, 920167782  ;;  %v4489_v31 = vadd.f32 %v1508_v45, %v1472_v41  ;;  %v1866_v25 = vsel %vm1856_vm3, %v1852_v40, 1326507024  ;;  %vm3295_vm7 = vcmp.lt.s32.totalorder %v3294_v53, 0 }
 0x2be   :  { %v4468_v6 = vsub.s32 %v1764_v44, %v1767_v13  ;;  %v1863_v54 = vsel %vm1855_vm5, %v1846_v22, %v1862_v10  ;;  %v1867_v11 = vsel %vm1855_vm5, %v1849_v51, %v1866_v25  ;;  %v1870_v5 = vand.u32 65535, %v4481_v32 }
 0x2bf   :  { %v1864_v17 = vsel %vm1854_vm6, %v1861_v15, %v1863_v54  ;;  %v1868_v52 = vsel %vm1854_vm6, %v1865_v35, %v1867_v11  ;;  %v1979_v28 = vand.u32 2139095040, %v4489_v31  ;;  %v1871_v47 = vshrl.u32 %v4481_v32, 16 }
 0x2c0   :  { %vm1769_vm4 = vcmp.lt.s32.totalorder %v4468_v6, 0  ;;  %v1770_v55 = vsub.s32 0, %v4468_v6  ;;  %v1895_v44 = vshrl.u32 %v1864_v17, 16  ;;  %v1872_v60 = vand.u32 65535, %v1868_v52 }
 0x2c1   :  { %v1873_v23 = vshrl.u32 %v1868_v52, 16  ;;  %v1894_v0 = vand.u32 65535, %v1864_v17  ;;  %v1620_v4 = vsel %vm3295_vm7, 0, %v3294_v53  ;;  %v1605_v30 = vadd.s32 %v4343_v16, %v4361_v58 }
 0x2c2   :  { %v1771_v2 = vsel %vm1769_vm4, %v1770_v55, %v4468_v6  ;;  %v1897_v34 = vmul.u32 %v1895_v44, %v1870_v5  ;;  %v1876_v7 = vmul.u32 %v1872_v60, %v1871_v47  ;;  %v1980_v56 = vshrl.u32 %v1979_v28, 23 }
 0x2c3   :  { %v1772_v21 = vclz %v1771_v2  ;;  %v1875_v3 = vmul.u32 %v1873_v23, %v1870_v5  ;;  %v1898_v29 = vmul.u32 %v1894_v0, %v1871_v47  ;;  %v1874_v9 = vmul.u32 %v1872_v60, %v1870_v5 }
 0x2c4   :  { %v1900_v51 = vshll.u32 %v1897_v34, 16  ;;  %v1621_v13 = vsub.s32 32, %v1620_v4  ;;  %v1837_v26 = vshrl.u32 %v3355_v24, %v4439_v19  ;;  %v1858_v61 = vsel %vm1856_vm3, %v1846_v22, 2102212464 }
 0x2c5   :  { %v3297_v63 = vadd.s32 4294967294, %v1772_v21  ;;  %v1878_v62 = vshll.u32 %v1875_v3, 16  ;;  %v1896_v41 = vmul.u32 %v1894_v0, %v1870_v5  ;;  %v1877_v40 = vmul.u32 %v1873_v23, %v1871_v47 }
 0x2c6   :  { %v1880_v45 = vshll.u32 %v1876_v7, 16  ;;  %v1902_v58 = vshll.u32 %v1898_v29, 16  ;;  %v3302_v10 = vadd.s32 4294967169, %v1980_v56  ;;  %v1625_v35 = vsub.s32 4294967266, %v1620_v4 }
 0x2c7   :  { %vm3298_vm8 = vcmp.lt.s32.totalorder %v3297_v63, 0  ;;  %vm1882_vm9 = vc.u32 %v1874_v9, %v1878_v62  ;;  %v1884_v53 = vadd.s32 %v1878_v62, %v1874_v9  ;;  %vm1904_vm12 = vc.u32 %v1896_v41, %v1900_v51 }
 0x2c8   :  { %v4509_v15 = vsel %vm3298_vm8, 0, %v3297_v63  ;;  %v1883_v16 = vsel %vm1882_vm9, 1, %v3354_v38  ;;  %v1906_v54 = vadd.s32 %v1900_v51, %v1896_v41  ;;  %v1857_v19 = vsel %vm1853_vm2, %v1837_v26, %v4461_v8 }
 0x2c9   :  { %v1885_v55 = vadd.s32 %v1883_v16, %v1877_v40  ;;  %vm1886_vm10 = vc.u32 %v1884_v53, %v1880_v45  ;;  %v1899_v2 = vmul.u32 %v1895_v44, %v1871_v47  ;;  %v1879_v17 = vshrl.u32 %v1875_v3, 16 }
 0x2ca   :  { %v1887_v22 = vsel %vm1886_vm10, 1, %v3354_v38  ;;  %v1905_v21 = vsel %vm1904_vm12, 1, %v3354_v38  ;;  %vm1908_vm13 = vc.u32 %v1906_v54, %v1902_v58  ;;  %v1780_v11 = vsub.s32 4294967266, %v4509_v15 }
 0x2cb   :  { %v1889_v25 = vadd.s32 %v1887_v22, %v1885_v55  ;;  %v1859_v52 = vsel %vm1855_vm5, %v4463_v50, %v1858_v61  ;;  %v1907_v5 = vadd.s32 %v1905_v21, %v1899_v2  ;;  %v1909_v60 = vsel %vm1908_vm13, 1, %v3354_v38 }
 0x2cc   :  { %v1881_v23 = vshrl.u32 %v1876_v7, 16  ;;  %v1976_v8 = vand.u32 2147483647, %v4489_v31  ;;  %v1986_v28 = vadd.s32 1, %v3302_v10  ;;  %v1623_v44 = vshrl.u32 %v1605_v30, %v1621_v13 }
 0x2cd   :  { %v1890_v0 = vadd.s32 %v1889_v25, %v1879_v17  ;;  %v1626_v63 = vadd.s32 127, %v1625_v35  ;;  %v1901_v47 = vshrl.u32 %v1897_v34, 16  ;;  %v1911_v3 = vadd.s32 %v1909_v60, %v1907_v5 }
 0x2ce   :  { %v1622_v56 = vshll.u32 %v4426_v12, %v1620_v4  ;;  %v1860_v9 = vsel %vm1854_vm6, %v1857_v19, %v1859_v52  ;;  %vm1987_vm14 = vcmp.gt.s32.totalorder %v1986_v28, 0  ;;  %v1781_v50 = vadd.s32 127, %v1780_v11 }
 0x2cf   :  { %v4526_v62 = vadd.s32 %v1890_v0, %v1881_v23  ;;  %v1903_v51 = vshrl.u32 %v1898_v29, 16  ;;  %v1912_v26 = vadd.s32 %v1911_v3, %v1901_v47  ;;  %v1988_v7 = vsel %vm1987_vm14, %v1986_v28, 0 }
 0x2d0   :  { %v1760_v61 = vadd.s32 %v4428_v48, %v4424_v39  ;;  %v4530_v41 = vadd.s32 %v1906_v54, %v1902_v58  ;;  %v1990_v30 = vand.u32 31, %v1988_v7  ;;  %v4532_v34 = vor.u32 %v1623_v44, %v1622_v56 }
 0x2d1   :  { %v1627_v13 = vshll.u32 %v1626_v63, 23  ;;  %v1913_v12 = vadd.s32 %v1912_v26, %v1903_v51  ;;  %v1983_v49 = vand.u32 8388607, %v1976_v8  ;;  %v1776_v4 = vsub.s32 32, %v4509_v15 }
 0x2d2   :  { %v1914_v40 = vmul.u32 %v4481_v32, %v1860_v9  ;;  %vm1916_vm15 = vc.u32 %v4526_v62, %v4530_v41  ;;  %v4540_v29 = vsub.s32 32, %v1990_v30  ;;  %v1782_v39 = vshll.u32 %v1781_v50, 23 }
 0x2d3   :  { %v1917_v48 = vadd.s32 1, %v1913_v12  ;;  %v4542_v45 = vshrl.u32 %v1988_v7, 5  ;;  %v1993_v53 = vshll.u32 %v3355_v24, %v1990_v30  ;;  %v1996_v58 = vshll.u32 %v3356_v57, %v1990_v30 }
 0x2d4   :  { %v1994_v16 = vshrl.u32 %v3356_v57, %v4540_v29  ;;  %v1997_v10 = vshrl.u32 %v3357_v33, %v4540_v29  ;;  %v2000_v32 = vshrl.u32 %v3358_v20, %v4540_v29  ;;  %v1999_v54 = vshll.u32 %v3357_v33, %v1990_v30 }
 0x2d5   :  { %v1918_v55 = vsel %vm1916_vm15, %v1917_v48, %v1913_v12  ;;  %v2002_v35 = vshll.u32 %v3358_v20, %v1990_v30  ;;  %v2003_v19 = vshrl.u32 %v3359_v36, %v4540_v29  ;;  %v1984_v2 = vor.u32 8388608, %v1983_v49 }
 0x2d6   :  { %v1919_v22 = vadd.s32 %v1918_v55, %v1914_v40  ;;  %v4556_v17 = vor.u32 %v1994_v16, %v1993_v53  ;;  %v4558_v25 = vor.u32 %v1997_v10, %v1996_v58  ;;  %v4560_v21 = vor.u32 %v2000_v32, %v1999_v54 }
 0x2d7   :  { %v2004_v11 = vor.u32 %v2003_v19, %v2002_v35  ;;  %v2005_v52 = vshll.u32 %v3359_v36, %v1990_v30  ;;  %v2006_v5 = vshrl.u32 %v3360_v43, %v4540_v29  ;;  %v1628_v60 = vor.u32 4788187, %v1627_v13 }
 0x2d8   :  { %v1777_v23 = vshll.u32 %v4468_v6, %v4509_v15  ;;  %v1778_v0 = vshrl.u32 %v1760_v61, %v1776_v4  ;;  %v1920_v28 = vadd.s32 536870912, %v1919_v22  ;;  %v1783_v44 = vor.u32 4788187, %v1782_v39 }
 0x2d9   :  { %v2007_v63 = vor.u32 %v2006_v5, %v2005_v52  ;;  %vm2008_vm0 = vcmp.lt.s32.totalorder %v4542_v45, 1  ;;  %vm2011_vm1 = vcmp.lt.s32.totalorder %v4542_v45, 4  ;;  %vm2010_vm2 = vcmp.lt.s32.totalorder %v4542_v45, 3 }
 0x2da   :  { %v4569_v47 = vshrl.u32 %v1920_v28, 30  ;;  %v2016_v3 = vsel %vm2008_vm0, %v4556_v17, %v4558_v25  ;;  %v2017_v6 = vsel %vm2011_vm1, %v2004_v11, 920167782  ;;  %vm2009_vm3 = vcmp.lt.s32.totalorder %v4542_v45, 2 }
 0x2db   :  { %v2018_v15 = vsel %vm2010_vm2, %v4560_v21, %v2017_v6  ;;  %v2020_v56 = vsel %vm2008_vm0, %v4558_v25, %v4560_v21  ;;  %v4586_v9 = vshll.u32 %v1984_v2, 8  ;;  %v1779_v50 = vor.u32 %v1778_v0, %v1777_v23 }
 0x2dc   :  { %v1922_v51 = vshll.u32 %v4569_v47, 30  ;;  %v2019_v26 = vsel %vm2009_vm3, %v2016_v3, %v2018_v15  ;;  %v2021_v7 = vsel %vm2011_vm1, %v2007_v63, 1326507024  ;;  %v1629_v61 = vand.u32 2147483647, %v1628_v60 }
 0x2dd   :  { %v1631_v30 = vcvt.s32.f32 %v4532_v34  ;;  %v1784_v13 = vand.u32 2147483647, %v1783_v44  ;;  %v2022_v12 = vsel %vm2010_vm2, %v2004_v11, %v2021_v7  ;;  %v2049_v40 = vand.u32 65535, %v2019_v26 }
 0x2de   :  { %v1923_v49 = vsub.s32 %v1919_v22, %v1922_v51  ;;  %v2023_v4 = vsel %vm2009_vm3, %v2020_v56, %v2022_v12  ;;  %v2050_v39 = vshrl.u32 %v2019_v26, 16  ;;  %v2025_v48 = vand.u32 65535, %v4586_v9 }
 0x2df   :  { %v2026_v53 = vshrl.u32 %v4586_v9, 16  ;;  %v2027_v16 = vand.u32 65535, %v2023_v4  ;;  %v2028_v58 = vshrl.u32 %v2023_v4, 16  ;;  %v1786_v10 = vcvt.s32.f32 %v1779_v50 }
 0x2e0   :  { %vm1924_vm4 = vcmp.lt.s32.totalorder %v1923_v49, 0  ;;  %v1925_v32 = vsub.s32 0, %v1923_v49  ;;  %v1632_v34 = vmul.f32 %v1631_v30, %v1629_v61  ;;  %v2052_v22 = vmul.u32 %v2050_v39, %v2025_v48 }
 0x2e1   :  { %v2030_v55 = vmul.u32 %v2028_v58, %v2025_v48  ;;  %v2031_v54 = vmul.u32 %v2027_v16, %v2026_v53  ;;  %v4600_v35 = vmul.f32 %v1786_v10, %v1784_v13  ;;  %v2053_v2 = vmul.u32 %v2049_v40, %v2026_v53 }
 0x2e2   :  { %v1926_v19 = vsel %vm1924_vm4, %v1925_v32, %v1923_v49  ;;  %v1915_v11 = vadd.s32 %v4530_v41, %v4526_v62  ;;  %v2029_v5 = vmul.u32 %v2027_v16, %v2025_v48  ;;  %v1992_v23 = vshrl.u32 %v3355_v24, %v4540_v29 }
 0x2e3   :  { %v1927_v52 = vclz %v1926_v19  ;;  %v2033_v60 = vshll.u32 %v2030_v55, 16  ;;  %v2032_v0 = vmul.u32 %v2028_v58, %v2026_v53  ;;  %v2051_v28 = vmul.u32 %v2049_v40, %v2025_v48 }
 0x2e4   :  { %v2055_v44 = vshll.u32 %v2052_v22, 16  ;;  %v2035_v3 = vshll.u32 %v2031_v54, 16  ;;  %v2054_v56 = vmul.u32 %v2050_v39, %v2026_v53  ;;  %v2057_v50 = vshll.u32 %v2053_v2, 16 }
 0x2e5   :  { %v3300_v63 = vadd.s32 4294967294, %v1927_v52  ;;  %vm2037_vm5 = vc.u32 %v2029_v5, %v2033_v60  ;;  %v2039_v6 = vadd.s32 %v2033_v60, %v2029_v5  ;;  %v2034_v13 = vshrl.u32 %v2030_v55, 16 }
 0x2e6   :  { %v2038_v15 = vsel %vm2037_vm5, 1, %v3354_v38  ;;  %vm2059_vm6 = vc.u32 %v2051_v28, %v2055_v44  ;;  %v2061_v26 = vadd.s32 %v2055_v44, %v2051_v28  ;;  %v2013_v40 = vsel %vm2011_vm1, %v4560_v21, 2102212464 }
 0x2e7   :  { %vm3301_vm7 = vcmp.lt.s32.totalorder %v3300_v63, 0  ;;  %v2040_v62 = vadd.s32 %v2038_v15, %v2032_v0  ;;  %vm2041_vm8 = vc.u32 %v2039_v6, %v2035_v3  ;;  %v2060_v41 = vsel %vm2059_vm6, 1, %v3354_v38 }
 0x2e8   :  { %v1930_v51 = vsel %vm3301_vm7, 0, %v3300_v63  ;;  %v2042_v29 = vsel %vm2041_vm8, 1, %v3354_v38  ;;  %v2062_v7 = vadd.s32 %v2060_v41, %v2054_v56  ;;  %v2036_v39 = vshrl.u32 %v2031_v54, 16 }
 0x2e9   :  { %v1931_v61 = vsub.s32 32, %v1930_v51  ;;  %v1935_v30 = vsub.s32 4294967266, %v1930_v51  ;;  %v2044_v12 = vadd.s32 %v2042_v29, %v2040_v62  ;;  %v1932_v4 = vshll.u32 %v1923_v49, %v1930_v51 }
 0x2ea   :  { %vm2063_vm9 = vc.u32 %v2061_v26, %v2057_v50  ;;  %v1633_v10 = vxor.u32 2147483648, %v1632_v34  ;;  %v2012_v32 = vsel %vm2008_vm0, %v1992_v23, %v4556_v17  ;;  %v2056_v19 = vshrl.u32 %v2052_v22, 16 }
 0x2eb   :  { %v1933_v48 = vshrl.u32 %v1915_v11, %v1931_v61  ;;  %v1936_v53 = vadd.s32 127, %v1935_v30  ;;  %v2045_v16 = vadd.s32 %v2044_v12, %v2034_v13  ;;  %v2064_v58 = vsel %vm2063_vm9, 1, %v3354_v38 }
 0x2ec   :  { %v2066_v55 = vadd.s32 %v2064_v58, %v2062_v7  ;;  %v2014_v21 = vsel %vm2010_vm2, %v4558_v25, %v2013_v40  ;;  %v2058_v5 = vshrl.u32 %v2053_v2, 16  ;;  %v1788_v60 = vxor.u32 2147483648, %v4600_v35 }
 0x2ed   :  { %v1934_v52 = vor.u32 %v1933_v48, %v1932_v4  ;;  %v1937_v49 = vshll.u32 %v1936_v53, 23  ;;  %v2046_v54 = vadd.s32 %v2045_v16, %v2036_v39  ;;  %v2065_v28 = vadd.s32 %v2061_v26, %v2057_v50 }
 0x2ee   :  { %v2067_v11 = vadd.s32 %v2066_v55, %v2056_v19  ;;  %vm1513_vm10 = vcmp.lt.s32.totalorder %v4303_v42, 0  ;;  %v2015_v17 = vsel %vm2009_vm3, %v2012_v32, %v2014_v21  ;;  %vm1668_vm13 = vcmp.lt.s32.totalorder %v4309_v1, 0 }
 0x2ef   :  { %v1938_v0 = vor.u32 4788187, %v1937_v49  ;;  %v1634_v23 = vsel %vm1513_vm10, %v1633_v10, %v1632_v34  ;;  %v1941_v63 = vcvt.s32.f32 %v1934_v52  ;;  %vm2071_vm12 = vc.u32 %v2046_v54, %v2065_v28 }
 0x2f0   :  { %v2068_v22 = vadd.s32 %v2067_v11, %v2058_v5  ;;  %vm4628_vm14 = vcmp.le.f32.partialorder %v1511_v46, 0.7853982  ;;  %v1789_v45 = vsel %vm1668_vm13, %v1788_v60, %v4600_v35  ;;  %v2069_v6 = vmul.u32 %v4586_v9, %v2015_v17 }
 0x2f1   :  { %v1939_v44 = vand.u32 2147483647, %v1938_v0  ;;  %v4639_v34 = vsel %vm4628_vm14, %v4303_v42, %v1634_v23  ;;  %vm4643_vm15 = vcmp.le.f32.partialorder %v1666_v27, 0.7853982  ;;  %vm1823_vm0 = vcmp.lt.s32.totalorder %v4401_v59, 0 }
 0x2f2   :  { %v2072_v25 = vadd.s32 1, %v2068_v22  ;;  %v4650_v35 = vsel %vm4643_vm15, %v4309_v1, %v1789_v45  ;;  %v4655_v9 = vmul.f32 %v4639_v34, %v4639_v34  ;;  %vm4659_vm1 = vcmp.le.f32.partialorder %v1821_v14, 0.7853982 }
 0x2f3   :  { %v1942_v3 = vmul.f32 %v1941_v63, %v1939_v44  ;;  %v4672_v29 = vmul.f32 %v4650_v35, %v4650_v35  ;;  %v2070_v11 = vadd.s32 %v2065_v28, %v2046_v54  ;;  %v1945_v23 = vsub.s32 4, %v4569_v47 }
 0x2f4   :  { %v2073_v15 = vsel %vm2071_vm12, %v2072_v25, %v2068_v22  ;;  %v1647_v7 = vmul.f32 -0.00019511016, %v4655_v9  ;;  %v1640_v5 = vmul.f32 -0.001358992, %v4655_v9  ;;  %v1635_v54 = vsub.s32 4, %v4404_v37 }
 0x2f5   :  { %v1943_v56 = vxor.u32 2147483648, %v1942_v3  ;;  %v2074_v50 = vadd.s32 %v2073_v15, %v2069_v6  ;;  %v1802_v30 = vmul.f32 -0.00019511016, %v4672_v29  ;;  %v1795_v55 = vmul.f32 -0.001358992, %v4672_v29 }
 0x2f6   :  { %v1648_v4 = vadd.f32 0.008332121, %v1647_v7  ;;  %v1790_v6 = vsub.s32 4, %v4455_v18  ;;  %v1641_v15 = vadd.f32 0.041655596, %v1640_v5  ;;  %vm1978_vm4 = vcmp.lt.s32.totalorder %v4489_v31, 0 }
 0x2f7   :  { %v1944_v62 = vsel %vm1823_vm0, %v1943_v56, %v1942_v3  ;;  %v2075_v41 = vadd.s32 536870912, %v2074_v50  ;;  %v1803_v39 = vadd.f32 0.008332121, %v1802_v30  ;;  %v1796_v44 = vadd.f32 0.041655596, %v1795_v55 }
 0x2f8   :  { %v4668_v51 = vsel %vm4659_vm1, %v4401_v59, %v1944_v62  ;;  %v1649_v58 = vmul.f32 %v1648_v4, %v4655_v9  ;;  %v1642_v4 = vmul.f32 %v1641_v15, %v4655_v9  ;;  %vm4722_vm5 = vcmp.le.f32.partialorder %v1976_v8, 0.7853982 }
 0x2f9   :  { %v4674_v26 = vshrl.u32 %v2075_v41, 30  ;;  %v4678_v14 = vmul.f32 %v4668_v51, %v4668_v51  ;;  %v1804_v19 = vmul.f32 %v1803_v39, %v4672_v29  ;;  %v1946_v41 = vsel %vm1823_vm0, %v1945_v23, %v4569_v47 }
 0x2fa   :  { %v1650_v49 = vadd.f32 -0.16666654, %v1649_v58  ;;  %v1797_v7 = vmul.f32 %v1796_v44, %v4672_v29  ;;  %v1636_v47 = vsel %vm1513_vm10, %v1635_v54, %v4404_v37 }
 0x2fb   :  { %v2077_v61 = vshll.u32 %v4674_v26, 30  ;;  %v1957_v12 = vmul.f32 -0.00019511016, %v4678_v14  ;;  %v1950_v32 = vmul.f32 -0.001358992, %v4678_v14  ;;  %v1638_v27 = vsel %vm4628_vm14, 0, %v1636_v47 }
 0x2fc   :  { %v1805_v22 = vadd.f32 -0.16666654, %v1804_v19  ;;  %v1651_v28 = vmul.f32 %v1650_v49, %v4655_v9  ;;  %v1798_v58 = vadd.f32 -0.4999988, %v1797_v7  ;;  %vm1964_vm14 = vweird.f32 %v4401_v59 }
 0x2fd   :  { %v2078_v13 = vsub.s32 %v2074_v50, %v2077_v61  ;;  %v1958_v53 = vadd.f32 0.008332121, %v1957_v12  ;;  %v1951_v17 = vadd.f32 0.041655596, %v1950_v32  ;;  %v1791_v12 = vsel %vm1668_vm13, %v1790_v6, %v4455_v18 }
 0x2fe   :  { %v1806_v61 = vmul.f32 %v1805_v22, %v4672_v29  ;;  %v1799_v37 = vmul.f32 %v1798_v58, %v4672_v29  ;;  %v1655_v22 = vadd.s32 3, %v1638_v27 }
 0x2ff   :  { %vm2079_vm2 = vcmp.lt.s32.totalorder %v2078_v13, 0  ;;  %v2080_v40 = vsub.s32 0, %v2078_v13  ;;  %v1959_v52 = vmul.f32 %v1958_v53, %v4678_v14  ;;  %v1952_v62 = vmul.f32 %v1951_v17, %v4678_v14 }
 0x300   :  { %v1807_v32 = vadd.f32 1.0, %v1806_v61  ;;  %v1800_v8 = vadd.f32 1.0, %v1799_v37 }
 0x301   :  { %v2081_v48 = vsel %vm2079_vm2, %v2080_v40, %v2078_v13  ;;  %v1960_v63 = vadd.f32 -0.16666654, %v1959_v52  ;;  %v1948_v40 = vsel %vm4659_vm1, 0, %v1946_v41  ;;  %v1953_v53 = vadd.f32 -0.4999988, %v1952_v62  ;;  %v2131_v62 = vld [vmem:[%s5260_s5] sm:$0xff] }
 0x302   :  { %v2082_v16 = vclz %v2081_v48  ;;  %v1965_v55 = vadd.s32 3, %v1948_v40  ;;  %v1643_v52 = vadd.f32 -0.4999988, %v1642_v4  ;;  %v1808_v46 = vmul.f32 %v1807_v32, %v4650_v35 }
 0x303   :  { %v1961_v30 = vmul.f32 %v1960_v63, %v4678_v14  ;;  %v1817_v54 = vxor.u32 2147483648, %v1800_v8  ;;  %vm1809_vm1 = vweird.f32 %v4309_v1  ;;  %vm1654_vm2 = vweird.f32 %v4303_v42 }
 0x304   :  { %v3303_v10 = vadd.s32 4294967294, %v2082_v16  ;;  %v1652_v16 = vadd.f32 1.0, %v1651_v28  ;;  %v1966_v29 = vand.u32 3, %v1965_v55  ;;  %v1644_v35 = vmul.f32 %v1643_v52, %v4655_v9 }
 0x305   :  { %v1962_v19 = vadd.f32 1.0, %v1961_v30  ;;  %v1814_v63 = vxor.u32 2147483648, %v1808_v46  ;;  %v1656_v28 = vand.u32 3, %v1655_v22 }
 0x306   :  { %vm3304_vm3 = vcmp.lt.s32.totalorder %v3303_v10, 0  ;;  %v1653_v5 = vmul.f32 %v1652_v16, %v4639_v34  ;;  %v2100_v34 = vsub.s32 4, %v4674_v26  ;;  %vm1967_vm6 = vcmp.lt.s32.totalorder %v1966_v29, 2 }
 0x307   :  { %v2085_v21 = vsel %vm3304_vm3, 0, %v3303_v10  ;;  %v1793_v10 = vsel %vm4643_vm15, 0, %v1791_v12  ;;  %vm1968_vm7 = vcmp.eq.s32.totalorder %v1966_v29, 0  ;;  %v1645_v15 = vadd.f32 1.0, %v1644_v35 }
 0x308   :  { %v2086_v60 = vsub.s32 32, %v2085_v21  ;;  %v2090_v0 = vsub.s32 4294967266, %v2085_v21  ;;  %v2087_v25 = vshll.u32 %v2078_v13, %v2085_v21  ;;  %v1954_v21 = vmul.f32 %v1953_v53, %v4678_v14 }
 0x309   :  { %v1659_v23 = vxor.u32 2147483648, %v1653_v5  ;;  %v2101_v6 = vsel %vm1978_vm4, %v2100_v34, %v4674_v26  ;;  %vm1971_vm8 = vcmp.eq.s32.totalorder %v1966_v29, 2  ;;  %vm1658_vm13 = vcmp.eq.s32.totalorder %v1656_v28, 0 }
 0x30a   :  { %v2088_v45 = vshrl.u32 %v2070_v11, %v2086_v60  ;;  %v2091_v3 = vadd.s32 127, %v2090_v0  ;;  %v1810_v11 = vadd.s32 3, %v1793_v10  ;;  %v1963_v60 = vmul.f32 %v1962_v19, %v4668_v51 }
 0x30b   :  { %v1955_v51 = vadd.f32 1.0, %v1954_v21  ;;  %v2103_v41 = vsel %vm4722_vm5, 0, %v2101_v6  ;;  %v1660_v10 = vsel %vm1658_vm13, %v1645_v15, %v1659_v23  ;;  %vm1657_vm15 = vcmp.lt.s32.totalorder %v1656_v28, 2 }
 0x30c   :  { %v2089_v56 = vor.u32 %v2088_v45, %v2087_v25  ;;  %v2092_v50 = vshll.u32 %v2091_v3, 23  ;;  %v1811_v44 = vand.u32 3, %v1810_v11  ;;  %v1969_v25 = vxor.u32 2147483648, %v1963_v60 }
 0x30d   :  { %v1972_v9 = vxor.u32 2147483648, %v1955_v51  ;;  %vm1661_vm0 = vcmp.eq.s32.totalorder %v1656_v28, 2 }
 0x30e   :  { %v2093_v13 = vor.u32 4788187, %v2092_v50  ;;  %v2096_v48 = vcvt.s32.f32 %v2089_v56  ;;  %vm1813_vm9 = vcmp.eq.s32.totalorder %v1811_v44, 0  ;;  %v1970_v26 = vsel %vm1968_vm7, %v1955_v51, %v1969_v25 }
 0x30f   :  { %vm1812_vm10 = vcmp.lt.s32.totalorder %v1811_v44, 2  ;;  %v1815_v30 = vsel %vm1813_vm9, %v1800_v8, %v1814_v63  ;;  %vm1816_vm12 = vcmp.eq.s32.totalorder %v1811_v44, 2  ;;  %v1973_v40 = vsel %vm1971_vm8, %v1972_v9, %v1963_v60  ;;  %v2133_v8 = vld [vmem:[%s5260_s5 + $0x10] sm:$0xff] }
 0x310   :  { %v2094_v39 = vand.u32 2147483647, %v2093_v13  ;;  %v2160_v13 = vsel %vm1220_vm11, %v2131_v62, 0  ;;  %v1974_v53 = vsel %vm1967_vm6, %v1970_v26, %v1973_v40  ;;  %v1818_v47 = vsel %vm1816_vm12, %v1817_v54, %v1808_v46 }
 0x311   :  { %v4743_v32 = vand.u32 4294901760, %v2160_v13  ;;  %v1819_v19 = vsel %vm1812_vm10, %v1815_v30, %v1818_v47  ;;  %v1975_v52 = vsel %vm1964_vm14, nan, %v1974_v53  ;;  %vm2119_vm6 = vweird.f32 %v4489_v31 }
 0x312   :  { %v2097_v18 = vmul.f32 %v2096_v48, %v2094_v39  ;;  %v1662_v39 = vxor.u32 2147483648, %v1645_v15  ;;  %v2120_v48 = vadd.s32 3, %v2103_v41  ;;  %v1820_v60 = vsel %vm1809_vm1, nan, %v1819_v19 }
 0x313   :  { %v4752_v59 = vsub.f32 %v2160_v13, %v4743_v32  ;;  %v4754_v0 = vand.u32 4294901760, %v1975_v52  ;;  %v4758_v29 = vand.u32 4294901760, %v1820_v60  ;;  %v2166_v15 = vsel %vm1220_vm11, %v2133_v8, 0 }
 0x314   :  { %v2098_v49 = vxor.u32 2147483648, %v2097_v18  ;;  %v1663_v27 = vsel %vm1661_vm0, %v1662_v39, %v1653_v5  ;;  %v2121_v21 = vand.u32 3, %v2120_v48  ;;  %v4777_v54 = vand.u32 4294901760, %v2166_v15 }
 0x315   :  { %v1664_v11 = vsel %vm1657_vm15, %v1660_v10, %v1663_v27  ;;  %v2193_v35 = vand.u32 4294901760, %v4752_v59  ;;  %v2243_v42 = vsub.f32 %v1975_v52, %v4754_v0  ;;  %v2249_v63 = vsub.f32 %v1820_v60, %v4758_v29 }
 0x316   :  { %v2099_v2 = vsel %vm1978_vm4, %v2098_v49, %v2097_v18  ;;  %v2132_v49 = vld [vmem:[%s5260_s5 + $0x8] sm:$0xff]  ;;  %v1665_v34 = vsel %vm1654_vm2, nan, %v1664_v11  ;;  %vm2122_vm3 = vcmp.lt.s32.totalorder %v2121_v21, 2  ;;  %vm2123_vm4 = vcmp.eq.s32.totalorder %v2121_v21, 0 }
 0x317   :  { %v2102_v14 = vsel %vm4722_vm5, %v4489_v31, %v2099_v2  ;;  %v2163_v5 = vsel %vm1220_vm11, %v2132_v49, 0  ;;  %vm2126_vm5 = vcmp.eq.s32.totalorder %v2121_v21, 2  ;;  %v4765_v22 = vand.u32 4294901760, %v1665_v34 }
 0x318   :  { %v2104_v17 = vmul.f32 %v2102_v14, %v2102_v14  ;;  %v2194_v25 = vsub.f32 %v4752_v59, %v2193_v35  ;;  %v2244_v6 = vand.u32 4294901760, %v2243_v42 }
 0x31a   :  { %v2112_v45 = vmul.f32 -0.00019511016, %v2104_v17  ;;  %v2105_v3 = vmul.f32 -0.001358992, %v2104_v17  ;;  %v2195_v9 = vand.u32 4294901760, %v2194_v25  ;;  %v2245_v41 = vsub.f32 %v2243_v42, %v2244_v6 }
 0x31c   :  { %v2113_v56 = vadd.f32 0.008332121, %v2112_v45  ;;  %v2106_v50 = vadd.f32 0.041655596, %v2105_v3  ;;  %v2255_v3 = vsub.f32 %v1665_v34, %v4765_v22 }
 0x31e   :  { %v2114_v7 = vmul.f32 %v2113_v56, %v2104_v17  ;;  %v2107_v61 = vmul.f32 %v2106_v50, %v2104_v17  ;;  %v2250_v50 = vand.u32 4294901760, %v2249_v63 }
 0x320   :  { %v2115_v12 = vadd.f32 -0.16666654, %v2114_v7  ;;  %v2108_v4 = vadd.f32 -0.4999988, %v2107_v61  ;;  %v2256_v7 = vand.u32 4294901760, %v2255_v3  ;;  %v2134_v61 = vld [vmem:[%s5260_s5 + $0x18] sm:$0xff]  ;;  %v2251_v30 = vsub.f32 %v2249_v63, %v2250_v50 }
 0x321   :  { %v2169_v39 = vsel %vm1220_vm11, %v2134_v61, 0 }
 0x322   :  { %v2116_v16 = vmul.f32 %v2115_v12, %v2104_v17  ;;  %v2109_v58 = vmul.f32 %v2108_v4, %v2104_v17  ;;  %v4761_v17 = vand.u32 4294901760, %v2163_v5  ;;  %v2208_v12 = vsub.f32 %v2166_v15, %v4777_v54 }
 0x323   :  { %v2246_v4 = vand.u32 4294901760, %v2245_v41  ;;  %v2257_v40 = vsub.f32 %v2255_v3, %v2256_v7  ;;  %v2252_v48 = vand.u32 4294901760, %v2251_v30 }
 0x324   :  { %v2117_v18 = vadd.f32 1.0, %v2116_v16  ;;  %v2110_v55 = vadd.f32 1.0, %v2109_v58  ;;  %v2200_v45 = vsub.f32 %v2163_v5, %v4761_v17  ;;  %v2209_v47 = vand.u32 4294901760, %v2208_v12 }
 0x325   :  { %v2215_v16 = vand.u32 4294901760, %v2169_v39  ;;  %v2258_v58 = vand.u32 4294901760, %v2257_v40 }
 0x326   :  { %v2118_v37 = vmul.f32 %v2117_v18, %v2102_v14  ;;  %v2127_v46 = vxor.u32 2147483648, %v2110_v55  ;;  %v2201_v62 = vand.u32 4294901760, %v2200_v45  ;;  %v2210_v10 = vsub.f32 %v2208_v12, %v2209_v47 }
 0x327   :  { %v2216_v19 = vsub.f32 %v2169_v39, %v2215_v16 }
 0x328   :  { %v2124_v2 = vxor.u32 2147483648, %v2118_v37  ;;  %v2128_v14 = vsel %vm2126_vm5, %v2127_v46, %v2118_v37  ;;  %v2202_v13 = vsub.f32 %v2200_v45, %v2201_v62  ;;  %v2211_v18 = vand.u32 4294901760, %v2210_v10  ;;  %v4801_v37 = vpop.permute.xlu2 %2156 }
 0x32a   :  { %v2125_v1 = vsel %vm2123_vm4, %v2110_v55, %v2124_v2  ;;  %v2203_v53 = vand.u32 4294901760, %v2202_v13  ;;  %v2217_v55 = vand.u32 4294901760, %v2216_v19 }
 0x32b   :  { %v2129_v51 = vsel %vm2122_vm3, %v2125_v1, %v2128_v14 }
 0x32c   :  { %v2130_v23 = vsel %vm2119_vm6, nan, %v2129_v51  ;;  %v2218_v52 = vsub.f32 %v2216_v19, %v2217_v55 }
 0x32d   :  { %v2183_v44 = vand.u32 4294901760, %v2130_v23 }
 0x32e   :  { %v2219_v27 = vand.u32 4294901760, %v2218_v52 }
 0x32f   :  { %2184 = vmatpush.msrb.mxu2 %v2183_v44  ;;  %2335 = vmatpush.msrb.mxu1 %v2183_v44  ;;  %v2237_v31 = vsub.f32 %v2130_v23, %v2183_v44 }
 0x331   :  { %2186 = vmatpush.msrb.mxu2 %v4754_v0  ;;  %2291 = vmatpush.msrb.mxu0 %v2237_v31  ;;  %v2238_v56 = vand.u32 4294901760, %v2237_v31 }
 0x332   :  { %2337 = vmatpush.msrb.mxu1 %v4754_v0 }
 0x333   :  { %2188 = vmatpush.msrb.mxu2 %v4758_v29  ;;  %2294 = vmatpush.msrb.mxu0 %v2243_v42  ;;  %v2239_v28 = vsub.f32 %v2237_v31, %v2238_v56 }
 0x334   :  { %2339 = vmatpush.msrb.mxu1 %v4758_v29 }
 0x335   :  { %2190 = vmatpush.msrb.mxu2 %v4765_v22  ;;  %2297 = vmatpush.msrb.mxu0 %v2249_v63  ;;  %v2240_v26 = vand.u32 4294901760, %v2239_v28 }
 0x336   :  { %2341 = vmatpush.msrb.mxu1 %v4765_v22  ;;  %2196 = vmatmul.f32.vlgmr.msrb.gmra.mxu2 %v2195_v9 }
 0x337   :  { %2382 = vmatpush.msra.mxu2 %v2238_v56  ;;  %2241 = vmatpush.msrb.mxu3 %v2240_v26 }
 0x338   :  { %2300 = vmatpush.msrb.mxu0 %v2255_v3  ;;  %2345 = vmatmul.f32.vlgmr.msrb.gmra.mxu1 %v2193_v35  ;;  %v2147_v35 = vpop.permute.xlu1 %2146 }
 0x339   :  { %2386 = vmatpush.msra.mxu2 %v2244_v6  ;;  %2247 = vmatpush.msrb.mxu3 %v2246_v4 }
 0x33a   :  { %2303 = vmatmul.f32.vlgmr.msrb.gmra.mxu0 %v4752_v59 }
 0x33b   :  { %2390 = vmatpush.msra.mxu2 %v2250_v50  ;;  %2253 = vmatpush.msrb.mxu3 %v2252_v48 }
 0x33d   :  { %2394 = vmatpush.msra.mxu2 %v2256_v7  ;;  %2259 = vmatpush.msrb.mxu3 %v2258_v58 }
 0x33e   :  { %2204 = vmatmul.f32.gmra.mxu2 %v2203_v53  ;;  %2261 = vmatmul.f32.vlgmr.msrb.gmra.mxu3 %v4743_v32 }
 0x33f   :  { %2425 = vmatpush.msra.mxu3 %v2183_v44 }
 0x340   :  { %2351 = vmatmul.f32.gmra.mxu1 %v2201_v62 }
 0x341   :  { %2427 = vmatpush.msra.mxu3 %v4754_v0 }
 0x342   :  { %2308 = vmatmul.f32.gmra.mxu0 %v2200_v45 }
 0x343   :  { %2429 = vmatpush.msra.mxu3 %v4758_v29 }
 0x345   :  { %2431 = vmatpush.msra.mxu3 %v4765_v22 }
 0x346   :  { %2212 = vmatmul.f32.gmra.mxu2 %v2211_v18  ;;  %2265 = vmatmul.f32.gmra.mxu3 %v4761_v17 }
 0x348   :  { %2357 = vmatmul.f32.gmra.mxu1 %v2209_v47 }
 0x34a   :  { %2313 = vmatmul.f32.gmra.mxu0 %v2208_v12  ;;  %v2152_v12 = vpop.permute.xlu0 %2151 }
 0x34e   :  { %2220 = vmatmul.f32.gmra.mxu2 %v2219_v27  ;;  %2269 = vmatmul.f32.gmra.mxu3 %v4777_v54 }
 0x350   :  { %2363 = vmatmul.f32.gmra.mxu1 %v2217_v55 }
 0x352   :  { %2318 = vmatmul.f32.gmra.mxu0 %v2216_v19 }
 0x356   :  { %2273 = vmatmul.f32.gmra.mxu3 %v2215_v16  ;;  %2396 = vmatmul.f32.vlgmr.msra.gmra.mxu2 %v4743_v32 }
 0x35e   :  { %2400 = vmatmul.f32.gmra.mxu2 %v4761_v17  ;;  %2433 = vmatmul.f32.vlgmr.msra.gmra.mxu3 %v4743_v32  ;;  %v2142_v32 = vpop.permute.xlu2 %2141 }
 0x366   :  { %2404 = vmatmul.f32.gmra.mxu2 %v4777_v54  ;;  %2437 = vmatmul.f32.gmra.mxu3 %v4761_v17 }
 0x36e   :  { %2408 = vmatmul.f32.gmra.mxu2 %v2215_v16  ;;  %2441 = vmatmul.f32.gmra.mxu3 %v4777_v54 }
 0x376   :  { %2445 = vmatmul.f32.gmra.mxu3 %v2215_v16 }
 0x3b5   :  { %v2346_v29 = vpop.f32.mrf.mxu1 }
 0x3b7   :  { %v2304_v2 = vpop.f32.mrf.mxu0 }
 0x3b9   :  { %v2197_v49 = vpop.f32.mrf.mxu2 }
 0x3ba   :  { %v2198_v5 = vadd.f32 %v2197_v49, %v2142_v32 }
 0x3bd   :  { %v2352_v45 = vpop.f32.mrf.mxu1 }
 0x3bf   :  { %v2309_v23 = vpop.f32.mrf.mxu0 }
 0x3c1   :  { %v2205_v21 = vpop.f32.mrf.mxu2  ;;  %v2262_v11 = vpop.f32.mrf.mxu3 }
 0x3c2   :  { %v2263_v34 = vadd.f32 %v2262_v11, %v2198_v5  ;;  %v2206_v51 = vadd.f32 %v2205_v21, %v2147_v35 }
 0x3c4   :  { %v2305_v14 = vadd.f32 %v2304_v2, %v2263_v34 }
 0x3c6   :  { %v2347_v42 = vadd.f32 %v2346_v29, %v2305_v14 }
 0x3c9   :  { %v2213_v46 = vpop.f32.mrf.mxu2  ;;  %v2266_v60 = vpop.f32.mrf.mxu3 }
 0x3ca   :  { %v2267_v22 = vadd.f32 %v2266_v60, %v2206_v51  ;;  %v2214_v40 = vadd.f32 %v2213_v46, %v2152_v12 }
 0x3cc   :  { %v2310_v63 = vadd.f32 %v2309_v23, %v2267_v22 }
 0x3ce   :  { %v2353_v15 = vadd.f32 %v2352_v45, %v2310_v63 }
 0x3d1   :  { %v4803_v59 = vpop.f32.mrf.mxu2  ;;  %v4805_v0 = vpop.f32.mrf.mxu3 }
 0x3d9   :  { %v4807_v1 = vpop.f32.mrf.mxu3  ;;  %v2397_v17 = vpop.f32.mrf.mxu2 }
 0x3da   :  { %v2398_v8 = vadd.f32 %v2397_v17, %v2347_v42 }
 0x3e1   :  { %v2434_v44 = vpop.f32.mrf.mxu3  ;;  %v2401_v6 = vpop.f32.mrf.mxu2 }
 0x3e2   :  { %v4809_v25 = vadd.f32 %v2434_v44, %v2398_v8  ;;  %v2402_v9 = vadd.f32 %v2401_v6, %v2353_v15 }
 0x3e4   :  { %v2449_v31 = vand.u32 2147483647, %v4809_v25  ;;  %v2452_v3 = vand.u32 2139095040, %v4809_v25 }
 0x3e6   :  { %v2453_v56 = vshrl.u32 %v2452_v3, 23  ;;  %v2456_v50 = vand.u32 8388607, %v2449_v31 }
 0x3e8   :  { %v3305_v62 = vadd.s32 4294967169, %v2453_v56  ;;  %v2457_v54 = vor.u32 8388608, %v2456_v50 }
 0x3e9   :  { %v2438_v28 = vpop.f32.mrf.mxu3 }
 0x3ea   :  { %v2459_v41 = vadd.s32 1, %v3305_v62  ;;  %v4815_v7 = vadd.f32 %v2438_v28, %v2402_v9  ;;  %v4817_v61 = vshll.u32 %v2457_v54, 8  ;;  %v2271_v62 = vadd.f32 %v4805_v0, %v2214_v40 }
 0x3ec   :  { %vm2460_vm7 = vcmp.gt.s32.totalorder %v2459_v41, 0  ;;  %v2604_v30 = vand.u32 2147483647, %v4815_v7  ;;  %v2607_v13 = vand.u32 2139095040, %v4815_v7  ;;  %v2498_v48 = vand.u32 65535, %v4817_v61 }
 0x3ed   :  { %v2461_v26 = vsel %vm2460_vm7, %v2459_v41, 0  ;;  %v2499_v53 = vshrl.u32 %v4817_v61, 16 }
 0x3ee   :  { %v2463_v4 = vand.u32 31, %v2461_v26  ;;  %v2608_v47 = vshrl.u32 %v2607_v13, 23  ;;  %v2462_v16 = vshrl.u32 %v2461_v26, 5  ;;  %v4827_v19 = vand.u32 8388607, %v2604_v30 }
 0x3f0   :  { %v2464_v39 = vsub.s32 32, %v2463_v4  ;;  %v2466_v58 = vshll.u32 %v3355_v24, %v2463_v4  ;;  %v2469_v10 = vshll.u32 %v3356_v57, %v2463_v4  ;;  %v2472_v52 = vshll.u32 %v3357_v33, %v2463_v4 }
 0x3f1   :  { %v2475_v49 = vshll.u32 %v3358_v20, %v2463_v4  ;;  %v2478_v11 = vshll.u32 %v3359_v36, %v2463_v4  ;;  %v3308_v2 = vadd.s32 4294967169, %v2608_v47  ;;  %vm2481_vm8 = vcmp.lt.s32.totalorder %v2462_v16, 1 }
 0x3f2   :  { %v2467_v18 = vshrl.u32 %v3356_v57, %v2464_v39  ;;  %v2470_v55 = vshrl.u32 %v3357_v33, %v2464_v39  ;;  %v2473_v27 = vshrl.u32 %v3358_v20, %v2464_v39  ;;  %v2476_v21 = vshrl.u32 %v3359_v36, %v2464_v39 }
 0x3f3   :  { %v2479_v46 = vshrl.u32 %v3360_v43, %v2464_v39  ;;  %vm2484_vm9 = vcmp.lt.s32.totalorder %v2462_v16, 4  ;;  %v2465_v14 = vshrl.u32 %v3355_v24, %v2464_v39  ;;  %vm2483_vm10 = vcmp.lt.s32.totalorder %v2462_v16, 3 }
 0x3f4   :  { %v2468_v60 = vor.u32 %v2467_v18, %v2466_v58  ;;  %v2471_v32 = vor.u32 %v2470_v55, %v2469_v10  ;;  %v2474_v5 = vor.u32 %v2473_v27, %v2472_v52  ;;  %v2477_v34 = vor.u32 %v2476_v21, %v2475_v49 }
 0x3f5   :  { %v2480_v29 = vor.u32 %v2479_v46, %v2478_v11  ;;  %v2614_v23 = vadd.s32 1, %v3308_v2  ;;  %vm2482_vm12 = vcmp.lt.s32.totalorder %v2462_v16, 2  ;;  %v2612_v54 = vor.u32 8388608, %v4827_v19 }
 0x3f6   :  { %v2486_v35 = vsel %vm2484_vm9, %v2474_v5, 2102212464  ;;  %v2489_v17 = vsel %vm2481_vm8, %v2468_v60, %v2471_v32  ;;  %v2493_v51 = vsel %vm2481_vm8, %v2471_v32, %v2474_v5  ;;  %v2490_v42 = vsel %vm2484_vm9, %v2477_v34, 920167782 }
 0x3f7   :  { %v2494_v22 = vsel %vm2484_vm9, %v2480_v29, 1326507024  ;;  %v2485_v8 = vsel %vm2481_vm8, %v2465_v14, %v2468_v60  ;;  %v2491_v44 = vsel %vm2483_vm10, %v2474_v5, %v2490_v42  ;;  %v2487_v45 = vsel %vm2483_vm10, %v2471_v32, %v2486_v35 }
 0x3f8   :  { %v2495_v63 = vsel %vm2483_vm10, %v2477_v34, %v2494_v22  ;;  %v2492_v3 = vsel %vm2482_vm12, %v2489_v17, %v2491_v44  ;;  %vm2615_vm13 = vcmp.gt.s32.totalorder %v2614_v23, 0  ;;  %v4840_v28 = vsel %vm2482_vm12, %v2485_v8, %v2487_v45 }
 0x3f9   :  { %v2496_v6 = vsel %vm2482_vm12, %v2493_v51, %v2495_v63  ;;  %v2522_v50 = vand.u32 65535, %v2492_v3  ;;  %v2523_v9 = vshrl.u32 %v2492_v3, 16  ;;  %v2616_v13 = vsel %vm2615_vm13, %v2614_v23, 0  ;;  %v2314_v23 = vpop.f32.mrf.mxu0 }
 0x3fa   :  { %v2500_v15 = vand.u32 65535, %v2496_v6  ;;  %v2501_v56 = vshrl.u32 %v2496_v6, 16  ;;  %v2618_v19 = vand.u32 31, %v2616_v13  ;;  %v4847_v2 = vshrl.u32 %v2616_v13, 5 }
 0x3fb   :  { %v2525_v39 = vmul.u32 %v2523_v9, %v2498_v48  ;;  %v2526_v47 = vmul.u32 %v2522_v50, %v2499_v53  ;;  %v2524_v10 = vmul.u32 %v2522_v50, %v2498_v48  ;;  %v2527_v18 = vmul.u32 %v2523_v9, %v2499_v53 }
 0x3fc   :  { %v2503_v41 = vmul.u32 %v2501_v56, %v2498_v48  ;;  %v2504_v26 = vmul.u32 %v2500_v15, %v2499_v53  ;;  %v2502_v12 = vmul.u32 %v2500_v15, %v2498_v48  ;;  %v2505_v4 = vmul.u32 %v2501_v56, %v2499_v53 }
 0x3fd   :  { %v2528_v27 = vshll.u32 %v2525_v39, 16  ;;  %v2529_v49 = vshrl.u32 %v2525_v39, 16  ;;  %v2530_v40 = vshll.u32 %v2526_v47, 16  ;;  %v2531_v11 = vshrl.u32 %v2526_v47, 16 }
 0x3fe   :  { %v2506_v16 = vshll.u32 %v2503_v41, 16  ;;  %v2507_v58 = vshrl.u32 %v2503_v41, 16  ;;  %v2508_v55 = vshll.u32 %v2504_v26, 16  ;;  %v2509_v52 = vshrl.u32 %v2504_v26, 16 }
 0x3ff   :  { %vm2532_vm15 = vc.u32 %v2524_v10, %v2528_v27  ;;  %v2534_v46 = vadd.s32 %v2528_v27, %v2524_v10  ;;  %v4844_v5 = vsub.s32 32, %v2618_v19  ;;  %v2621_v35 = vshll.u32 %v3355_v24, %v2618_v19 }
 0x400   :  { %vm2510_vm14 = vc.u32 %v2502_v12, %v2506_v16  ;;  %v2512_v0 = vadd.s32 %v2506_v16, %v2502_v12  ;;  %v2533_v32 = vsel %vm2532_vm15, 1, %v3354_v38  ;;  %v2624_v42 = vshll.u32 %v3356_v57, %v2618_v19 }
 0x401   :  { %v2511_v21 = vsel %vm2510_vm14, 1, %v3354_v38  ;;  %v2535_v53 = vadd.s32 %v2533_v32, %v2527_v18  ;;  %vm2536_vm1 = vc.u32 %v2534_v46, %v2530_v40  ;;  %v4850_v14 = vadd.s32 %v2534_v46, %v2530_v40 }
 0x402   :  { %v2513_v60 = vadd.s32 %v2511_v21, %v2505_v4  ;;  %vm2514_vm0 = vc.u32 %v2512_v0, %v2508_v55  ;;  %v2537_v29 = vsel %vm2536_vm1, 1, %v3354_v38  ;;  %v2622_v51 = vshrl.u32 %v3356_v57, %v4844_v5  ;;  %v2405_v21 = vpop.f32.mrf.mxu2 }
 0x403   :  { %v2515_v48 = vsel %vm2514_vm0, 1, %v3354_v38  ;;  %v2539_v17 = vadd.s32 %v2537_v29, %v2535_v53  ;;  %v2625_v22 = vshrl.u32 %v3357_v33, %v4844_v5  ;;  %v2627_v44 = vshll.u32 %v3357_v33, %v2618_v19  ;;  %v2442_v29 = vpop.f32.mrf.mxu3 }
 0x404   :  { %v2517_v34 = vadd.s32 %v2515_v48, %v2513_v60  ;;  %v2628_v63 = vshrl.u32 %v3358_v20, %v4844_v5  ;;  %v2630_v45 = vshll.u32 %v3358_v20, %v2618_v19  ;;  %v4862_v6 = vor.u32 %v2622_v51, %v2621_v35 }
 0x405   :  { %v2540_v3 = vadd.s32 %v2539_v17, %v2529_v49  ;;  %v4864_v15 = vor.u32 %v2625_v22, %v2624_v42  ;;  %v2631_v56 = vshrl.u32 %v3359_v36, %v4844_v5  ;;  %v2633_v41 = vshll.u32 %v3359_v36, %v2618_v19 }
 0x406   :  { %v2518_v8 = vadd.s32 %v2517_v34, %v2507_v58  ;;  %v4870_v9 = vor.u32 %v2628_v63, %v2627_v44  ;;  %v2634_v26 = vshrl.u32 %v3360_v43, %v4844_v5  ;;  %v2315_v13 = vadd.f32 %v2314_v23, %v2271_v62 }
 0x407   :  { %v2541_v12 = vadd.s32 %v2540_v3, %v2531_v11  ;;  %v2632_v4 = vor.u32 %v2631_v56, %v2630_v45  ;;  %vm2636_vm3 = vcmp.lt.s32.totalorder %v4847_v2, 1  ;;  %v4878_v47 = vshll.u32 %v2612_v54, 8 }
 0x408   :  { %v4868_v50 = vadd.s32 %v2518_v8, %v2509_v52  ;;  %v2635_v39 = vor.u32 %v2634_v26, %v2633_v41  ;;  %v2542_v16 = vmul.u32 %v4817_v61, %v4840_v28  ;;  %vm2639_vm4 = vcmp.lt.s32.totalorder %v4847_v2, 4  ;;  %v2358_v28 = vpop.f32.mrf.mxu1 }
 0x409   :  { %v2545_v58 = vadd.s32 1, %v2541_v12  ;;  %v2644_v62 = vsel %vm2636_vm3, %v4862_v6, %v4864_v15  ;;  %vm2638_vm5 = vcmp.lt.s32.totalorder %v4847_v2, 3  ;;  %v2645_v10 = vsel %vm2639_vm4, %v2632_v4, 920167782 }
 0x40a   :  { %vm2544_vm2 = vc.u32 %v4868_v50, %v4850_v14  ;;  %v2648_v54 = vsel %vm2636_vm3, %v4864_v15, %v4870_v9  ;;  %v2649_v61 = vsel %vm2639_vm4, %v2635_v39, 1326507024  ;;  %vm2637_vm6 = vcmp.lt.s32.totalorder %v4847_v2, 2 }
 0x40b   :  { %v2546_v18 = vsel %vm2544_vm2, %v2545_v58, %v2541_v12  ;;  %v2646_v55 = vsel %vm2638_vm5, %v4870_v9, %v2645_v10  ;;  %v2650_v52 = vsel %vm2638_vm5, %v2632_v4, %v2649_v61  ;;  %v2653_v0 = vand.u32 65535, %v4878_v47 }
 0x40c   :  { %v2647_v27 = vsel %vm2637_vm6, %v2644_v62, %v2646_v55  ;;  %v2651_v49 = vsel %vm2637_vm6, %v2648_v54, %v2650_v52  ;;  %v2654_v40 = vshrl.u32 %v4878_v47, 16  ;;  %v2547_v19 = vadd.s32 %v2546_v18, %v2542_v16 }
 0x40d   :  { %v2655_v11 = vand.u32 65535, %v2651_v49  ;;  %v2656_v46 = vshrl.u32 %v2651_v49, 16  ;;  %v2678_v60 = vshrl.u32 %v2647_v27, 16  ;;  %v2359_v32 = vadd.f32 %v2358_v28, %v2315_v13 }
 0x40e   :  { %v2677_v48 = vand.u32 65535, %v2647_v27  ;;  %v2548_v51 = vadd.s32 536870912, %v2547_v19  ;;  %v2222_v61 = vadd.f32 %v4803_v59, %v4801_v37  ;;  %v2641_v55 = vsel %vm2639_vm4, %v4870_v9, 2102212464  ;;  %v2319_v59 = vpop.f32.mrf.mxu0 }
 0x40f   :  { %v2658_v53 = vmul.u32 %v2656_v46, %v2653_v0  ;;  %v2659_v34 = vmul.u32 %v2655_v11, %v2654_v40  ;;  %v2406_v35 = vadd.f32 %v2405_v21, %v2359_v32  ;;  %v2680_v17 = vmul.u32 %v2678_v60, %v2653_v0 }
 0x410   :  { %v2657_v42 = vmul.u32 %v2655_v11, %v2653_v0  ;;  %v2660_v23 = vmul.u32 %v2656_v46, %v2654_v40  ;;  %v2681_v8 = vmul.u32 %v2677_v48, %v2654_v40  ;;  %v2679_v56 = vmul.u32 %v2677_v48, %v2653_v0 }
 0x411   :  { %v2661_v22 = vshll.u32 %v2658_v53, 16  ;;  %v2683_v44 = vshll.u32 %v2680_v17, 16  ;;  %v4908_v63 = vadd.f32 %v2442_v29, %v2406_v35  ;;  %v2663_v45 = vshll.u32 %v2659_v34, 16 }
 0x412   :  { %v4911_v26 = vshrl.u32 %v2548_v51, 30  ;;  %v2662_v12 = vshrl.u32 %v2658_v53, 16  ;;  %v2682_v39 = vmul.u32 %v2678_v60, %v2654_v40  ;;  %v2685_v16 = vshll.u32 %v2681_v8, 16 }
 0x413   :  { %vm2665_vm7 = vc.u32 %v2657_v42, %v2661_v22  ;;  %v2667_v3 = vadd.s32 %v2661_v22, %v2657_v42  ;;  %vm2687_vm9 = vc.u32 %v2679_v56, %v2683_v44  ;;  %v2689_v10 = vadd.s32 %v2683_v44, %v2679_v56 }
 0x414   :  { %v2666_v41 = vsel %vm2665_vm7, 1, %v3354_v38  ;;  %v2688_v62 = vsel %vm2687_vm9, 1, %v3354_v38  ;;  %v2762_v54 = vand.u32 2139095040, %v4908_v63  ;;  %v2550_v18 = vshll.u32 %v4911_v26, 30 }
 0x415   :  { %v2668_v13 = vadd.s32 %v2666_v41, %v2660_v23  ;;  %vm2669_vm8 = vc.u32 %v2667_v3, %v2663_v45  ;;  %v2690_v28 = vadd.s32 %v2688_v62, %v2682_v39  ;;  %vm2691_vm10 = vc.u32 %v2689_v10, %v2685_v16  ;;  %v2409_v23 = vpop.f32.mrf.mxu2 }
 0x416   :  { %v2670_v4 = vsel %vm2669_vm8, 1, %v3354_v38  ;;  %v2620_v27 = vshrl.u32 %v3355_v24, %v4844_v5  ;;  %v2664_v49 = vshrl.u32 %v2659_v34, 16  ;;  %v2692_v0 = vsel %vm2691_vm10, 1, %v3354_v38 }
 0x417   :  { %v2672_v58 = vadd.s32 %v2670_v4, %v2668_v13  ;;  %v2763_v40 = vshrl.u32 %v2762_v54, 23  ;;  %v2275_v21 = vadd.f32 %v4807_v1, %v2222_v61  ;;  %v2684_v11 = vshrl.u32 %v2680_v17, 16 }
 0x418   :  { %v2694_v37 = vadd.s32 %v2692_v0, %v2690_v28  ;;  %v2640_v46 = vsel %vm2636_vm3, %v2620_v27, %v4862_v6  ;;  %v2642_v9 = vsel %vm2638_vm5, %v4864_v15, %v2641_v55  ;;  %v4934_v32 = vsub.s32 %v2547_v19, %v2550_v18  ;;  %v2364_v6 = vpop.f32.mrf.mxu1  ;;  %v2446_v55 = vpop.f32.mrf.mxu3 }
 0x419   :  { %v2673_v52 = vadd.s32 %v2672_v58, %v2662_v12  ;;  %v3311_v5 = vadd.s32 4294967169, %v2763_v40  ;;  %v2686_v48 = vshrl.u32 %v2681_v8, 16  ;;  %v4936_v34 = vadd.s32 %v2689_v10, %v2685_v16 }
 0x41a   :  { %v2695_v53 = vadd.s32 %v2694_v37, %v2684_v11  ;;  %v2320_v29 = vadd.f32 %v2319_v59, %v2275_v21  ;;  %v2643_v35 = vsel %vm2637_vm6, %v2640_v46, %v2642_v9  ;;  %v2553_v15 = vsub.s32 0, %v4934_v32 }
 0x41b   :  { %v4932_v60 = vadd.s32 %v2673_v52, %v2664_v49  ;;  %v2769_v1 = vadd.s32 1, %v3311_v5  ;;  %v2759_v19 = vand.u32 2147483647, %v4908_v63  ;;  %vm2552_vm14 = vcmp.lt.s32.totalorder %v4934_v32, 0 }
 0x41c   :  { %v2696_v17 = vadd.s32 %v2695_v53, %v2686_v48  ;;  %v2697_v22 = vmul.u32 %v4878_v47, %v2643_v35  ;;  %v2365_v2 = vadd.f32 %v2364_v6, %v2320_v29  ;;  %v2554_v56 = vsel %vm2552_vm14, %v2553_v15, %v4934_v32 }
 0x41d   :  { %vm2699_vm12 = vc.u32 %v4932_v60, %v4936_v34  ;;  %vm2770_vm13 = vcmp.gt.s32.totalorder %v2769_v1, 0  ;;  %v2766_v13 = vand.u32 8388607, %v2759_v19  ;;  %v2555_v54 = vclz %v2554_v56 }
 0x41e   :  { %v2700_v51 = vadd.s32 1, %v2696_v17  ;;  %v2771_v42 = vsel %vm2770_vm13, %v2769_v1, 0  ;;  %v2410_v41 = vadd.f32 %v2409_v23, %v2365_v2 }
 0x41f   :  { %v2773_v8 = vand.u32 31, %v2771_v42  ;;  %v4964_v28 = vshrl.u32 %v2771_v42, 5  ;;  %v2767_v21 = vor.u32 8388608, %v2766_v13  ;;  %v3306_v5 = vadd.s32 4294967294, %v2555_v54 }
 0x420   :  { %v2701_v44 = vsel %vm2699_vm12, %v2700_v51, %v2696_v17  ;;  %v4973_v59 = vadd.f32 %v2446_v55, %v2410_v41 }
 0x421   :  { %v2702_v45 = vadd.s32 %v2701_v44, %v2697_v22  ;;  %v4946_v3 = vsub.s32 32, %v2773_v8  ;;  %v2776_v4 = vshll.u32 %v3355_v24, %v2773_v8  ;;  %v2779_v16 = vshll.u32 %v3356_v57, %v2773_v8 }
 0x422   :  { %v2785_v62 = vshll.u32 %v3358_v20, %v2773_v8  ;;  %v2782_v49 = vshll.u32 %v3357_v33, %v2773_v8  ;;  %v2788_v11 = vshll.u32 %v3359_v36, %v2773_v8  ;;  %vm2791_vm15 = vcmp.lt.s32.totalorder %v4964_v28, 1 }
 0x423   :  { %v2703_v12 = vadd.s32 536870912, %v2702_v45  ;;  %v2777_v39 = vshrl.u32 %v3356_v57, %v4946_v3  ;;  %v2780_v47 = vshrl.u32 %v3357_v33, %v4946_v3  ;;  %v2783_v58 = vshrl.u32 %v3358_v20, %v4946_v3 }
 0x424   :  { %v2786_v10 = vshrl.u32 %v3359_v36, %v4946_v3  ;;  %v2789_v18 = vshrl.u32 %v3360_v43, %v4946_v3  ;;  %vm2794_vm0 = vcmp.lt.s32.totalorder %v4964_v28, 4  ;;  %vm2793_vm2 = vcmp.lt.s32.totalorder %v4964_v28, 3 }
 0x425   :  { %v4962_v61 = vshrl.u32 %v2703_v12, 30  ;;  %v2778_v52 = vor.u32 %v2777_v39, %v2776_v4  ;;  %v4968_v27 = vor.u32 %v2780_v47, %v2779_v16  ;;  %v2784_v37 = vor.u32 %v2783_v58, %v2782_v49 }
 0x426   :  { %v2787_v0 = vor.u32 %v2786_v10, %v2785_v62  ;;  %v2790_v9 = vor.u32 %v2789_v18, %v2788_v11  ;;  %v4987_v29 = vshll.u32 %v2767_v21, 8  ;;  %vm2792_vm3 = vcmp.lt.s32.totalorder %v4964_v28, 2 }
 0x427   :  { %v2705_v40 = vshll.u32 %v4962_v61, 30  ;;  %v2799_v48 = vsel %vm2791_vm15, %v2778_v52, %v4968_v27  ;;  %v2803_v17 = vsel %vm2791_vm15, %v4968_v27, %v2784_v37  ;;  %v2917_v6 = vand.u32 2139095040, %v4973_v59 }
 0x428   :  { %v2800_v53 = vsel %vm2794_vm0, %v2787_v0, 920167782  ;;  %v2804_v42 = vsel %vm2794_vm0, %v2790_v9, 1326507024  ;;  %vm3307_vm4 = vcmp.lt.s32.totalorder %v3306_v5, 0  ;;  %v2808_v2 = vand.u32 65535, %v4987_v29 }
 0x429   :  { %v4975_v46 = vsub.s32 %v2702_v45, %v2705_v40  ;;  %v2801_v35 = vsel %vm2793_vm2, %v2784_v37, %v2800_v53  ;;  %v2805_v23 = vsel %vm2793_vm2, %v2787_v0, %v2804_v42  ;;  %v2918_v13 = vshrl.u32 %v2917_v6, 23 }
 0x42a   :  { %v2802_v51 = vsel %vm2792_vm3, %v2799_v48, %v2801_v35  ;;  %v2806_v8 = vsel %vm2792_vm3, %v2803_v17, %v2805_v23  ;;  %v2809_v12 = vshrl.u32 %v4987_v29, 16  ;;  %v5007_v39 = vsel %vm3307_vm4, 0, %v3306_v5 }
 0x42b   :  { %vm2707_vm1 = vcmp.lt.s32.totalorder %v4975_v46, 0  ;;  %v2708_v1 = vsub.s32 0, %v4975_v46  ;;  %v2833_v44 = vshrl.u32 %v2802_v51, 16  ;;  %v2810_v45 = vand.u32 65535, %v2806_v8 }
 0x42c   :  { %v2811_v56 = vshrl.u32 %v2806_v8, 16  ;;  %v2832_v41 = vand.u32 65535, %v2802_v51  ;;  %v2914_v10 = vand.u32 2147483647, %v4973_v59  ;;  %v3314_v54 = vadd.s32 4294967169, %v2918_v13 }
 0x42d   :  { %v2709_v15 = vsel %vm2707_vm1, %v2708_v1, %v4975_v46  ;;  %v2835_v4 = vmul.u32 %v2833_v44, %v2808_v2  ;;  %v2814_v58 = vmul.u32 %v2810_v45, %v2809_v12  ;;  %v2563_v18 = vsub.s32 4294967266, %v5007_v39 }
 0x42e   :  { %v2710_v22 = vclz %v2709_v15  ;;  %v2813_v16 = vmul.u32 %v2811_v56, %v2808_v2  ;;  %v2836_v62 = vmul.u32 %v2832_v41, %v2809_v12  ;;  %v2812_v55 = vmul.u32 %v2810_v45, %v2808_v2 }
 0x42f   :  { %v2838_v0 = vshll.u32 %v2835_v4, 16  ;;  %v2775_v40 = vshrl.u32 %v3355_v24, %v4946_v3  ;;  %v2796_v21 = vsel %vm2794_vm0, %v2784_v37, 2102212464  ;;  %v2834_v11 = vmul.u32 %v2832_v41, %v2808_v2 }
 0x430   :  { %v3309_v47 = vadd.s32 4294967294, %v2710_v22  ;;  %v2816_v49 = vshll.u32 %v2813_v16, 16  ;;  %v2815_v9 = vmul.u32 %v2811_v56, %v2809_v12  ;;  %v2818_v5 = vshll.u32 %v2814_v58, 16 }
 0x431   :  { %v2795_v53 = vsel %vm2791_vm15, %v2775_v40, %v2778_v52  ;;  %v2840_v35 = vshll.u32 %v2836_v62, 16  ;;  %v2924_v17 = vadd.s32 1, %v3314_v54  ;;  %vm2842_vm8 = vc.u32 %v2834_v11, %v2838_v0 }
 0x432   :  { %vm3310_vm5 = vcmp.lt.s32.totalorder %v3309_v47, 0  ;;  %vm2820_vm6 = vc.u32 %v2812_v55, %v2816_v49  ;;  %v2822_v48 = vadd.s32 %v2816_v49, %v2812_v55  ;;  %v2844_v15 = vadd.s32 %v2838_v0, %v2834_v11 }
 0x433   :  { %v2821_v1 = vsel %vm2820_vm6, 1, %v3354_v38  ;;  %v5019_v3 = vsel %vm3310_vm5, 0, %v3309_v47  ;;  %v2797_v37 = vsel %vm2793_vm2, %v4968_v27, %v2796_v21  ;;  %v2837_v42 = vmul.u32 %v2833_v44, %v2809_v12 }
 0x434   :  { %v2823_v6 = vadd.s32 %v2821_v1, %v2815_v9  ;;  %vm2824_vm7 = vc.u32 %v2822_v48, %v2818_v5  ;;  %v2817_v22 = vshrl.u32 %v2813_v16, 16  ;;  %v2843_v23 = vsel %vm2842_vm8, 1, %v3354_v38 }
 0x435   :  { %v2825_v51 = vsel %vm2824_vm7, 1, %v3354_v38  ;;  %vm2846_vm9 = vc.u32 %v2844_v15, %v2840_v35  ;;  %v2564_v8 = vadd.s32 127, %v2563_v18  ;;  %v2845_v2 = vadd.s32 %v2843_v23, %v2837_v42 }
 0x436   :  { %v2827_v52 = vadd.s32 %v2825_v51, %v2823_v6  ;;  %v2847_v45 = vsel %vm2846_vm9, 1, %v3354_v38  ;;  %v2921_v56 = vand.u32 8388607, %v2914_v10  ;;  %v2798_v41 = vsel %vm2792_vm3, %v2795_v53, %v2797_v37 }
 0x437   :  { %v2819_v13 = vshrl.u32 %v2814_v58, 16  ;;  %vm2925_vm10 = vcmp.gt.s32.totalorder %v2924_v17, 0  ;;  %v2718_v44 = vsub.s32 4294967266, %v5019_v3  ;;  %v2839_v12 = vshrl.u32 %v2835_v4, 16 }
 0x438   :  { %v2828_v27 = vadd.s32 %v2827_v52, %v2817_v22  ;;  %v2849_v47 = vadd.s32 %v2847_v45, %v2845_v2  ;;  %v2926_v16 = vsel %vm2925_vm10, %v2924_v17, 0  ;;  %v2543_v54 = vadd.s32 %v4850_v14, %v4868_v50 }
 0x439   :  { %v2698_v18 = vadd.s32 %v4936_v34, %v4932_v60  ;;  %v2928_v49 = vand.u32 31, %v2926_v16  ;;  %v2559_v28 = vsub.s32 32, %v5007_v39  ;;  %v2841_v0 = vshrl.u32 %v2836_v62, 16 }
 0x43a   :  { %v5036_v55 = vadd.s32 %v2828_v27, %v2819_v13  ;;  %v5039_v58 = vadd.s32 %v2844_v15, %v2840_v35  ;;  %v2850_v40 = vadd.s32 %v2849_v47, %v2839_v12  ;;  %v2565_v21 = vshll.u32 %v2564_v8, 23 }
 0x43b   :  { %v2852_v4 = vmul.u32 %v4987_v29, %v2798_v41  ;;  %v2922_v11 = vor.u32 8388608, %v2921_v56  ;;  %v5042_v9 = vsub.s32 32, %v2928_v49  ;;  %v2714_v14 = vsub.s32 32, %v5019_v3 }
 0x43c   :  { %v2719_v50 = vadd.s32 127, %v2718_v44  ;;  %v2851_v5 = vadd.s32 %v2850_v40, %v2841_v0  ;;  %vm2854_vm12 = vc.u32 %v5036_v55, %v5039_v58  ;;  %v2931_v60 = vshll.u32 %v3355_v24, %v2928_v49 }
 0x43d   :  { %v2932_v34 = vshrl.u32 %v3356_v57, %v5042_v9  ;;  %v2934_v62 = vshll.u32 %v3356_v57, %v2928_v49  ;;  %v2935_v29 = vshrl.u32 %v3357_v33, %v5042_v9  ;;  %v5053_v53 = vshrl.u32 %v2926_v16, 5 }
 0x43e   :  { %v2855_v48 = vadd.s32 1, %v2851_v5  ;;  %v2937_v1 = vshll.u32 %v3357_v33, %v2928_v49  ;;  %v2938_v35 = vshrl.u32 %v3358_v20, %v5042_v9  ;;  %v2940_v15 = vshll.u32 %v3358_v20, %v2928_v49 }
 0x43f   :  { %v5058_v17 = vor.u32 %v2932_v34, %v2931_v60  ;;  %v5060_v6 = vor.u32 %v2935_v29, %v2934_v62  ;;  %v2941_v57 = vshrl.u32 %v3359_v36, %v5042_v9  ;;  %v2943_v42 = vshll.u32 %v3359_v36, %v2928_v49 }
 0x440   :  { %v2856_v37 = vsel %vm2854_vm12, %v2855_v48, %v2851_v5  ;;  %v5065_v51 = vor.u32 %v2938_v35, %v2937_v1  ;;  %v2944_v33 = vshrl.u32 %v3360_v43, %v5042_v9  ;;  %v2560_v22 = vshll.u32 %v4934_v32, %v5007_v39 }
 0x441   :  { %v2561_v52 = vshrl.u32 %v2543_v54, %v2559_v28  ;;  %v2857_v23 = vadd.s32 %v2856_v37, %v2852_v4  ;;  %v2942_v8 = vor.u32 %v2941_v57, %v2940_v15  ;;  %v2566_v2 = vor.u32 4788187, %v2565_v21 }
 0x442   :  { %v2945_v45 = vor.u32 %v2944_v33, %v2943_v42  ;;  %vm2946_vm13 = vcmp.lt.s32.totalorder %v5053_v53, 1  ;;  %v5073_v20 = vshll.u32 %v2922_v11, 8  ;;  %v2720_v56 = vshll.u32 %v2719_v50, 23 }
 0x443   :  { %v2858_v41 = vadd.s32 536870912, %v2857_v23  ;;  %vm2949_vm14 = vcmp.lt.s32.totalorder %v5053_v53, 4  ;;  %v2954_v36 = vsel %vm2946_vm13, %v5058_v17, %v5060_v6  ;;  %v2716_v43 = vshrl.u32 %v2698_v18, %v2714_v14 }
 0x444   :  { %vm2948_vm15 = vcmp.lt.s32.totalorder %v5053_v53, 3  ;;  %v2955_v32 = vsel %vm2949_vm14, %v2942_v8, 920167782  ;;  %v2958_v39 = vsel %vm2946_vm13, %v5060_v6, %v5065_v51  ;;  %vm2947_vm0 = vcmp.lt.s32.totalorder %v5053_v53, 2 }
 0x445   :  { %v5087_v13 = vshrl.u32 %v2858_v41, 30  ;;  %v2956_v27 = vsel %vm2948_vm15, %v5065_v51, %v2955_v32  ;;  %v2959_v44 = vsel %vm2949_vm14, %v2945_v45, 1326507024  ;;  %v2562_v12 = vor.u32 %v2561_v52, %v2560_v22 }
 0x446   :  { %v2715_v47 = vshll.u32 %v4975_v46, %v5019_v3  ;;  %v2957_v16 = vsel %vm2947_vm0, %v2954_v36, %v2956_v27  ;;  %v2960_v54 = vsel %vm2948_vm15, %v2942_v8, %v2959_v44  ;;  %v2567_v18 = vand.u32 2147483647, %v2566_v2 }
 0x447   :  { %v2721_v49 = vor.u32 4788187, %v2720_v56  ;;  %v2860_v28 = vshll.u32 %v5087_v13, 30  ;;  %v2961_v0 = vsel %vm2947_vm0, %v2958_v39, %v2960_v54  ;;  %v2963_v21 = vand.u32 65535, %v5073_v20 }
 0x448   :  { %v2717_v40 = vor.u32 %v2716_v43, %v2715_v47  ;;  %v2965_v4 = vand.u32 65535, %v2961_v0  ;;  %v2966_v11 = vshrl.u32 %v2961_v0, 16  ;;  %v2964_v46 = vshrl.u32 %v5073_v20, 16 }
 0x449   :  { %v2861_v14 = vsub.s32 %v2857_v23, %v2860_v28  ;;  %v2987_v3 = vand.u32 65535, %v2957_v16  ;;  %v2988_v50 = vshrl.u32 %v2957_v16, 16  ;;  %v2569_v5 = vcvt.s32.f32 %v2562_v12 }
 0x44a   :  { %v2968_v60 = vmul.u32 %v2966_v11, %v2963_v21  ;;  %v2722_v34 = vand.u32 2147483647, %v2721_v49  ;;  %v2969_v29 = vmul.u32 %v2965_v4, %v2964_v46  ;;  %v2724_v1 = vcvt.s32.f32 %v2717_v40 }
 0x44b   :  { %vm2862_vm1 = vcmp.lt.s32.totalorder %v2861_v14, 0  ;;  %v2863_v62 = vsub.s32 0, %v2861_v14  ;;  %v5106_v48 = vmul.f32 %v2569_v5, %v2567_v18  ;;  %v2967_v35 = vmul.u32 %v2965_v4, %v2963_v21 }
 0x44c   :  { %v2971_v15 = vshll.u32 %v2968_v60, 16  ;;  %v2970_v37 = vmul.u32 %v2966_v11, %v2964_v46  ;;  %v2990_v42 = vmul.u32 %v2988_v50, %v2963_v21  ;;  %v2991_v33 = vmul.u32 %v2987_v3, %v2964_v46 }
 0x44d   :  { %v2864_v57 = vsel %vm2862_vm1, %v2863_v62, %v2861_v14  ;;  %v2973_v52 = vshll.u32 %v2969_v29, 16  ;;  %v2725_v8 = vmul.f32 %v2724_v1, %v2722_v34  ;;  %v2989_v45 = vmul.u32 %v2987_v3, %v2963_v21 }
 0x44e   :  { %v2865_v22 = vclz %v2864_v57  ;;  %vm2975_vm2 = vc.u32 %v2967_v35, %v2971_v15  ;;  %v2977_v23 = vadd.s32 %v2971_v15, %v2967_v35  ;;  %v2993_v56 = vshll.u32 %v2990_v42, 16 }
 0x44f   :  { %v2976_v2 = vsel %vm2975_vm2, 1, %v3354_v38  ;;  %v2992_v43 = vmul.u32 %v2988_v50, %v2964_v46  ;;  %v2995_v39 = vshll.u32 %v2991_v33, 16  ;;  %v2972_v44 = vshrl.u32 %v2968_v60, 16 }
 0x450   :  { %v3312_v41 = vadd.s32 4294967294, %v2865_v22  ;;  %v2978_v36 = vadd.s32 %v2976_v2, %v2970_v37  ;;  %vm2979_vm3 = vc.u32 %v2977_v23, %v2973_v52  ;;  %vm2997_vm4 = vc.u32 %v2989_v45, %v2993_v56 }
 0x451   :  { %v2980_v32 = vsel %vm2979_vm3, 1, %v3354_v38  ;;  %v2999_v27 = vadd.s32 %v2993_v56, %v2989_v45  ;;  %v2998_v47 = vsel %vm2997_vm4, 1, %v3354_v38  ;;  %v2853_v16 = vadd.s32 %v5039_v58, %v5036_v55 }
 0x452   :  { %vm3313_vm5 = vcmp.lt.s32.totalorder %v3312_v41, 0  ;;  %v2982_v12 = vadd.s32 %v2980_v32, %v2978_v36  ;;  %v3000_v18 = vadd.s32 %v2998_v47, %v2992_v43  ;;  %v2951_v0 = vsel %vm2949_vm14, %v5065_v51, 2102212464 }
 0x453   :  { %v2868_v54 = vsel %vm3313_vm5, 0, %v3312_v41  ;;  %vm3001_vm6 = vc.u32 %v2999_v27, %v2995_v39  ;;  %v2930_v21 = vshrl.u32 %v3355_v24, %v5042_v9  ;;  %v2974_v4 = vshrl.u32 %v2969_v29, 16 }
 0x454   :  { %v2869_v49 = vsub.s32 32, %v2868_v54  ;;  %v2873_v28 = vsub.s32 4294967266, %v2868_v54  ;;  %v2983_v40 = vadd.s32 %v2982_v12, %v2972_v44  ;;  %v2994_v11 = vshrl.u32 %v2990_v42, 16 }
 0x455   :  { %v3002_v46 = vsel %vm3001_vm6, 1, %v3354_v38  ;;  %v2870_v3 = vshll.u32 %v2861_v14, %v2868_v54  ;;  %v2950_v5 = vsel %vm2946_vm13, %v2930_v21, %v5058_v17  ;;  %v2952_v51 = vsel %vm2948_vm15, %v5060_v6, %v2951_v0 }
 0x456   :  { %v2871_v50 = vshrl.u32 %v2853_v16, %v2869_v49  ;;  %v2874_v55 = vadd.s32 127, %v2873_v28  ;;  %v3004_v58 = vadd.s32 %v3002_v46, %v3000_v18  ;;  %v2984_v60 = vadd.s32 %v2983_v40, %v2974_v4 }
 0x457   :  { %v2996_v24 = vshrl.u32 %v2991_v33, 16  ;;  %v2571_v29 = vxor.u32 2147483648, %v5106_v48  ;;  %v2726_v38 = vxor.u32 2147483648, %v2725_v8  ;;  %v3003_v14 = vadd.s32 %v2999_v27, %v2995_v39 }
 0x458   :  { %v2872_v34 = vor.u32 %v2871_v50, %v2870_v3  ;;  %v2875_v62 = vshll.u32 %v2874_v55, 23  ;;  %v3005_v9 = vadd.s32 %v3004_v58, %v2994_v11  ;;  %v2953_v35 = vsel %vm2947_vm0, %v2950_v5, %v2952_v51 }
 0x459   :  { %vm2451_vm7 = vcmp.lt.s32.totalorder %v4809_v25, 0  ;;  %vm3009_vm8 = vc.u32 %v2984_v60, %v3003_v14  ;;  %vm2606_vm9 = vcmp.lt.s32.totalorder %v4815_v7, 0  ;;  %v3007_v33 = vmul.u32 %v5073_v20, %v2953_v35 }
 0x45a   :  { %v2876_v1 = vor.u32 4788187, %v2875_v62  ;;  %v3006_v15 = vadd.s32 %v3005_v9, %v2996_v24  ;;  %v2879_v6 = vcvt.s32.f32 %v2872_v34  ;;  %v2572_v37 = vsel %vm2451_vm7, %v2571_v29, %v5106_v48 }
 0x45b   :  { %v2727_v42 = vsel %vm2606_vm9, %v2726_v38, %v2725_v8  ;;  %vm5138_vm10 = vcmp.le.f32.partialorder %v2449_v31, 0.7853982  ;;  %vm5144_vm12 = vcmp.le.f32.partialorder %v2604_v30, 0.7853982  ;;  %vm2761_vm13 = vcmp.lt.s32.totalorder %v4908_v63, 0 }
 0x45c   :  { %v2877_v17 = vand.u32 2147483647, %v2876_v1  ;;  %v3010_v57 = vadd.s32 1, %v3006_v15  ;;  %v5151_v8 = vsel %vm5138_vm10, %v4809_v25, %v2572_v37  ;;  %v5156_v20 = vsel %vm5144_vm12, %v4815_v7, %v2727_v42 }
 0x45d   :  { %vm5161_vm14 = vcmp.le.f32.partialorder %v2759_v19, 0.7853982  ;;  %v5169_v56 = vmul.f32 %v5151_v8, %v5151_v8  ;;  %v5173_v41 = vmul.f32 %v5156_v20, %v5156_v20  ;;  %v2883_v58 = vsub.s32 4, %v5087_v13 }
 0x45e   :  { %v2880_v53 = vmul.f32 %v2879_v6, %v2877_v17  ;;  %v3011_v22 = vsel %vm3009_vm8, %v3010_v57, %v3006_v15  ;;  %v3008_v5 = vadd.s32 %v3003_v14, %v2984_v60  ;;  %v2728_v15 = vsub.s32 4, %v4962_v61 }
 0x45f   :  { %v3012_v48 = vadd.s32 %v3011_v22, %v3007_v33  ;;  %v2585_v39 = vmul.f32 -0.00019511016, %v5169_v56  ;;  %v2740_v27 = vmul.f32 -0.00019511016, %v5173_v41  ;;  %v2733_v11 = vmul.f32 -0.001358992, %v5173_v41 }
 0x460   :  { %v2881_v31 = vxor.u32 2147483648, %v2880_v53  ;;  %v2578_v55 = vmul.f32 -0.001358992, %v5169_v56  ;;  %v2884_v57 = vsel %vm2761_vm13, %v2883_v58, %v5087_v13  ;;  %v2573_v60 = vsub.s32 4, %v4911_v26 }
 0x461   :  { %v3013_v2 = vadd.s32 536870912, %v3012_v48  ;;  %v2586_v16 = vadd.f32 0.008332121, %v2585_v39  ;;  %v2741_v54 = vadd.f32 0.008332121, %v2740_v27  ;;  %vm2916_vm1 = vcmp.lt.s32.totalorder %v4973_v59, 0 }
 0x462   :  { %v2882_v45 = vsel %vm2761_vm13, %v2881_v31, %v2880_v53  ;;  %v2734_v9 = vadd.f32 0.041655596, %v2733_v11  ;;  %v2579_v6 = vadd.f32 0.041655596, %v2578_v55  ;;  %v2729_v31 = vsel %vm2606_vm9, %v2728_v15, %v4962_v61 }
 0x463   :  { %v5178_v36 = vsel %vm5161_vm14, %v4908_v63, %v2882_v45  ;;  %v5180_v19 = vshrl.u32 %v3013_v2, 30  ;;  %v2587_v21 = vmul.f32 %v2586_v16, %v5169_v56  ;;  %v2742_v4 = vmul.f32 %v2741_v54, %v5173_v41 }
 0x464   :  { %v2887_v43 = vmul.f32 %v5178_v36, %v5178_v36  ;;  %v2735_v53 = vmul.f32 %v2734_v9, %v5173_v41  ;;  %v2886_v2 = vsel %vm5161_vm14, 0, %v2884_v57  ;;  %v2580_v45 = vmul.f32 %v2579_v6, %v5169_v56 }
 0x465   :  { %v3015_v32 = vshll.u32 %v5180_v19, 30  ;;  %v2588_v62 = vadd.f32 -0.16666654, %v2587_v21  ;;  %v2743_v24 = vadd.f32 -0.16666654, %v2742_v4  ;;  %v2574_v27 = vsel %vm2451_vm7, %v2573_v60, %v4911_v26 }
 0x466   :  { %v2895_v12 = vmul.f32 -0.00019511016, %v2887_v43  ;;  %v2888_v0 = vmul.f32 -0.001358992, %v2887_v43  ;;  %v2731_v16 = vsel %vm5144_vm12, 0, %v2729_v31  ;;  %v2903_v61 = vadd.s32 3, %v2886_v2 }
 0x467   :  { %v3016_v44 = vsub.s32 %v3012_v48, %v3015_v32  ;;  %v2589_v14 = vmul.f32 %v2588_v62, %v5169_v56  ;;  %v2744_v33 = vmul.f32 %v2743_v24, %v5173_v41  ;;  %v2748_v21 = vadd.s32 3, %v2731_v16 }
 0x468   :  { %v2896_v49 = vadd.f32 0.008332121, %v2895_v12  ;;  %v2889_v50 = vadd.f32 0.041655596, %v2888_v0  ;;  %vm5220_vm2 = vcmp.le.f32.partialorder %v2914_v10, 0.7853982  ;;  %vm2747_vm13 = vweird.f32 %v4815_v7 }
 0x469   :  { %vm3017_vm15 = vcmp.lt.s32.totalorder %v3016_v44, 0  ;;  %v3018_v47 = vsub.s32 0, %v3016_v44  ;;  %v2745_v12 = vadd.f32 1.0, %v2744_v33  ;;  %v2904_v11 = vand.u32 3, %v2903_v61 }
 0x46a   :  { %v2897_v46 = vmul.f32 %v2896_v49, %v2887_v43  ;;  %v2890_v17 = vmul.f32 %v2889_v50, %v2887_v43  ;;  %v2581_v49 = vadd.f32 -0.4999988, %v2580_v45  ;;  %v2749_v58 = vand.u32 3, %v2748_v21 }
 0x46b   :  { %v3019_v18 = vsel %vm3017_vm15, %v3018_v47, %v3016_v44  ;;  %v2736_v47 = vadd.f32 -0.4999988, %v2735_v53  ;;  %v2746_v26 = vmul.f32 %v2745_v12, %v5156_v20  ;;  %vm2905_vm3 = vcmp.lt.s32.totalorder %v2904_v11, 2 }
 0x46c   :  { %v3020_v28 = vclz %v3019_v18  ;;  %v2898_v29 = vadd.f32 -0.16666654, %v2897_v46  ;;  %v2891_v13 = vadd.f32 -0.4999988, %v2890_v17  ;;  %v3038_v46 = vsub.s32 4, %v5180_v19 }
 0x46d   :  { %v2737_v4 = vmul.f32 %v2736_v47, %v5173_v41  ;;  %v2582_v41 = vmul.f32 %v2581_v49, %v5169_v56  ;;  %v2752_v10 = vxor.u32 2147483648, %v2746_v26  ;;  %vm2906_vm4 = vcmp.eq.s32.totalorder %v2904_v11, 0  ;;  %v3069_v56 = vld [vmem:[%s5262_s7] sm:$0x3]  ;;  %s3361_s7 = smov [#allocation2]  }
 0x46e   :  { %v3315_v40 = vadd.s32 4294967294, %v3020_v28  ;;  %v2899_v22 = vmul.f32 %v2898_v29, %v2887_v43  ;;  %v2892_v30 = vmul.f32 %v2891_v13, %v2887_v43  ;;  %v2576_v28 = vsel %vm5138_vm10, 0, %v2574_v27  ;;  %s3270_s19 = sshll.u32 %s3361_s7, 4  ;;  %s3271_s19 = int_to_ptr.vmem [resolvable:$true] %s3270_s19 }
 0x46f   :  { %v2738_v55 = vadd.f32 1.0, %v2737_v4  ;;  %v3039_v62 = vsel %vm2916_vm1, %v3038_v46, %v5180_v19  ;;  %v2583_v9 = vadd.f32 1.0, %v2582_v41  ;;  %vm2909_vm5 = vcmp.eq.s32.totalorder %v2904_v11, 2 }
 0x470   :  { %vm3316_vm0 = vcmp.lt.s32.totalorder %v3315_v40, 0  ;;  %v2900_v54 = vadd.f32 1.0, %v2899_v22  ;;  %v2893_v20 = vadd.f32 1.0, %v2892_v30  ;;  %vm2750_vm6 = vcmp.lt.s32.totalorder %v2749_v58, 2 }
 0x471   :  { %v3023_v3 = vsel %vm3316_vm0, 0, %v3315_v40  ;;  %v3041_v15 = vsel %vm5220_vm2, 0, %v3039_v62  ;;  %vm2751_vm7 = vcmp.eq.s32.totalorder %v2749_v58, 0  ;;  %vm2754_vm8 = vcmp.eq.s32.totalorder %v2749_v58, 2 }
 0x472   :  { %v3024_v51 = vsub.s32 32, %v3023_v3  ;;  %v3028_v34 = vsub.s32 4294967266, %v3023_v3  ;;  %v3025_v38 = vshll.u32 %v3016_v44, %v3023_v3  ;;  %v2590_v44 = vadd.f32 1.0, %v2589_v14 }
 0x473   :  { %v2901_v23 = vmul.f32 %v2900_v54, %v5178_v36  ;;  %v2593_v36 = vadd.s32 3, %v2576_v28  ;;  %v2910_v24 = vxor.u32 2147483648, %v2893_v20  ;;  %v2600_v19 = vxor.u32 2147483648, %v2583_v9 }
 0x474   :  { %v3026_v1 = vshrl.u32 %v3008_v5, %v3024_v51  ;;  %v3029_v35 = vadd.s32 127, %v3028_v34  ;;  %v2591_v40 = vmul.f32 %v2590_v44, %v5151_v8  ;;  %v2753_v33 = vsel %vm2751_vm7, %v2738_v55, %v2752_v10 }
 0x475   :  { %v2907_v5 = vxor.u32 2147483648, %v2901_v23  ;;  %v2911_v14 = vsel %vm2909_vm5, %v2910_v24, %v2901_v23  ;;  %v3058_v53 = vadd.s32 3, %v3041_v15  ;;  %vm2902_vm10 = vweird.f32 %v4908_v63 }
 0x476   :  { %v3027_v37 = vor.u32 %v3026_v1, %v3025_v38  ;;  %v3030_v42 = vshll.u32 %v3029_v35, 23  ;;  %v2597_v50 = vxor.u32 2147483648, %v2591_v40  ;;  %v2755_v1 = vxor.u32 2147483648, %v2738_v55 }
 0x477   :  { %v2594_v35 = vand.u32 3, %v2593_v36  ;;  %v2908_v57 = vsel %vm2906_vm4, %v2893_v20, %v2907_v5  ;;  %v3059_v47 = vand.u32 3, %v3058_v53  ;;  %vm2592_vm14 = vweird.f32 %v4809_v25 }
 0x478   :  { %v3031_v48 = vor.u32 4788187, %v3030_v42  ;;  %v3034_v39 = vcvt.s32.f32 %v3027_v37  ;;  %v3077_v37 = vsel %vm1220_vm11, %v3069_v56, 0  ;;  %v2912_v22 = vsel %vm2905_vm3, %v2908_v57, %v2911_v14 }
 0x479   :  { %vm2596_vm9 = vcmp.eq.s32.totalorder %v2594_v35, 0  ;;  %v5241_v45 = vand.u32 4294901760, %v3077_v37  ;;  %vm2595_vm12 = vcmp.lt.s32.totalorder %v2594_v35, 2  ;;  %vm2599_vm11 = vcmp.eq.s32.totalorder %v2594_v35, 2 }
 0x47a   :  { %v3032_v32 = vand.u32 2147483647, %v3031_v48  ;;  %v2756_v48 = vsel %vm2754_vm8, %v2755_v1, %v2746_v26  ;;  %v2598_v13 = vsel %vm2596_vm9, %v2583_v9, %v2597_v50  ;;  %v2913_v44 = vsel %vm2902_vm10, nan, %v2912_v22  ;;  %v3074_v9 = vpop.permute.xlu0 %3073 }
 0x47b   :  { %v2601_v12 = vsel %vm2599_vm11, %v2600_v19, %v2591_v40  ;;  %v3100_v30 = vsub.f32 %v3077_v37, %v5241_v45  ;;  %v3093_v49 = vand.u32 4294901760, %v2913_v44  ;;  %vm3061_vm15 = vcmp.eq.s32.totalorder %v3059_v47, 0 }
 0x47c   :  { %v3035_v18 = vmul.f32 %v3034_v39, %v3032_v32  ;;  %v2757_v32 = vsel %vm2750_vm6, %v2753_v33, %v2756_v48  ;;  %v2602_v16 = vsel %vm2595_vm12, %v2598_v13, %v2601_v12  ;;  %vm3064_vm0 = vcmp.eq.s32.totalorder %v3059_v47, 2 }
 0x47d   :  { %v2603_v28 = vsel %vm2592_vm14, nan, %v2602_v16  ;;  %v3101_v21 = vand.u32 4294901760, %v3100_v30  ;;  %v3127_v4 = vsub.f32 %v2913_v44, %v3093_v49 }
 0x47e   :  { %v3036_v0 = vxor.u32 2147483648, %v3035_v18  ;;  %v3097_v23 = vand.u32 4294901760, %v2603_v28 }
 0x47f   :  { %v3102_v46 = vsub.f32 %v3100_v30, %v3101_v21  ;;  %v3128_v20 = vand.u32 4294901760, %v3127_v4 }
 0x480   :  { %v3037_v52 = vsel %vm2916_vm1, %v3036_v0, %v3035_v18  ;;  %v2758_v18 = vsel %vm2747_vm13, nan, %v2757_v32  ;;  %vm3060_vm1 = vcmp.lt.s32.totalorder %v3059_v47, 2 }
 0x481   :  { %v3040_v8 = vsel %vm5220_vm2, %v4973_v59, %v3037_v52  ;;  %v3095_v0 = vand.u32 4294901760, %v2758_v18  ;;  %vm3057_vm2 = vweird.f32 %v4973_v59  ;;  %v3129_v50 = vsub.f32 %v3127_v4, %v3128_v20 }
 0x482   :  { %v3042_v3 = vmul.f32 %v3040_v8, %v3040_v8 }
 0x483   :  { %v3133_v11 = vsub.f32 %v2758_v18, %v3095_v0  ;;  %v3130_v5 = vand.u32 4294901760, %v3129_v50 }
 0x484   :  { %v3050_v51 = vmul.f32 -0.00019511016, %v3042_v3  ;;  %v3043_v34 = vmul.f32 -0.001358992, %v3042_v3 }
 0x485   :  { %v3134_v36 = vand.u32 4294901760, %v3133_v11 }
 0x486   :  { %v3051_v29 = vadd.f32 0.008332121, %v3050_v51  ;;  %v3044_v38 = vadd.f32 0.041655596, %v3043_v34 }
 0x487   :  { %v3135_v58 = vsub.f32 %v3133_v11, %v3134_v36 }
 0x488   :  { %v3052_v17 = vmul.f32 %v3051_v29, %v3042_v3  ;;  %v3045_v6 = vmul.f32 %v3044_v38, %v3042_v3 }
 0x489   :  { %v3136_v34 = vand.u32 4294901760, %v3135_v58 }
 0x48a   :  { %v3053_v42 = vadd.f32 -0.16666654, %v3052_v17  ;;  %v3046_v60 = vadd.f32 -0.4999988, %v3045_v6 }
 0x48c   :  { %v3054_v31 = vmul.f32 %v3053_v42, %v3042_v3  ;;  %v3047_v2 = vmul.f32 %v3046_v60, %v3042_v3  ;;  %v3103_v3 = vand.u32 4294901760, %v3102_v46 }
 0x48e   :  { %v3055_v39 = vadd.f32 1.0, %v3054_v31  ;;  %v3048_v27 = vadd.f32 1.0, %v3047_v2 }
 0x490   :  { %v3056_v54 = vmul.f32 %v3055_v39, %v3040_v8  ;;  %v3065_v61 = vxor.u32 2147483648, %v3048_v27  ;;  %v3139_v8 = vsub.f32 %v2603_v28, %v3097_v23 }
 0x492   :  { %v3062_v63 = vxor.u32 2147483648, %v3056_v54  ;;  %v3066_v40 = vsel %vm3064_vm0, %v3065_v61, %v3056_v54  ;;  %v3140_v10 = vand.u32 4294901760, %v3139_v8 }
 0x494   :  { %v3063_v26 = vsel %vm3061_vm15, %v3048_v27, %v3062_v63  ;;  %v3141_v51 = vsub.f32 %v3139_v8, %v3140_v10 }
 0x495   :  { %v3067_v7 = vsel %vm3060_vm1, %v3063_v26, %v3066_v40 }
 0x496   :  { %v3068_v43 = vsel %vm3057_vm2, nan, %v3067_v7  ;;  %v3142_v62 = vand.u32 4294901760, %v3141_v51 }
 0x497   :  { %v3091_v52 = vand.u32 4294901760, %v3068_v43 }
 0x499   :  { %3092 = vmatpush.msra.mxu0 %v3091_v52  ;;  %3192 = vmatpush.msrb.mxu3 %v3091_v52  ;;  %v3121_v25 = vsub.f32 %v3068_v43, %v3091_v52 }
 0x49b   :  { %3094 = vmatpush.msra.mxu0 %v3093_v49  ;;  %3163 = vmatpush.msrb.mxu2 %v3121_v25  ;;  %v3122_v41 = vand.u32 4294901760, %v3121_v25 }
 0x49c   :  { %3194 = vmatpush.msrb.mxu3 %v3093_v49 }
 0x49d   :  { %3096 = vmatpush.msra.mxu0 %v3095_v0  ;;  %3166 = vmatpush.msrb.mxu2 %v3127_v4  ;;  %v3123_v59 = vsub.f32 %v3121_v25, %v3122_v41 }
 0x49e   :  { %3196 = vmatpush.msrb.mxu3 %v3095_v0 }
 0x49f   :  { %3098 = vmatpush.msra.mxu0 %v3097_v23  ;;  %3169 = vmatpush.msrb.mxu2 %v3133_v11  ;;  %v3124_v55 = vand.u32 4294901760, %v3123_v59 }
 0x4a0   :  { %3198 = vmatpush.msrb.mxu3 %v3097_v23  ;;  %3104 = vmatmul.f32.vlgmr.msra.gmra.mxu0 %v3103_v3 }
 0x4a1   :  { %3221 = vmatpush.msrb.mxu0 %v3122_v41  ;;  %3125 = vmatpush.msra.mxu1 %v3124_v55 }
 0x4a2   :  { %3172 = vmatpush.msrb.mxu2 %v3139_v8  ;;  %3202 = vmatmul.f32.vlgmr.msrb.gmra.mxu3 %v3101_v21 }
 0x4a3   :  { %3225 = vmatpush.msrb.mxu0 %v3128_v20  ;;  %3131 = vmatpush.msra.mxu1 %v3130_v5 }
 0x4a4   :  { %3175 = vmatmul.f32.vlgmr.msrb.gmra.mxu2 %v3100_v30 }
 0x4a5   :  { %3229 = vmatpush.msrb.mxu0 %v3134_v36  ;;  %3137 = vmatpush.msra.mxu1 %v3136_v34 }
 0x4a7   :  { %3233 = vmatpush.msrb.mxu0 %v3140_v10  ;;  %3143 = vmatpush.msra.mxu1 %v3142_v62 }
 0x4a8   :  { %3145 = vmatmul.f32.vlgmr.msra.gmra.mxu1 %v5241_v45  ;;  %3235 = vmatmul.f32.vlgmr.msrb.gmra.mxu0 %v5241_v45 }
 0x4a9   :  { %3252 = vmatpush.msrb.mxu1 %v3091_v52 }
 0x4ab   :  { %3254 = vmatpush.msrb.mxu1 %v3093_v49 }
 0x4ad   :  { %3256 = vmatpush.msrb.mxu1 %v3095_v0 }
 0x4af   :  { %3258 = vmatpush.msrb.mxu1 %v3097_v23 }
 0x4b0   :  { %3260 = vmatmul.f32.vlgmr.msrb.gmra.mxu1 %v5241_v45 }
 0x51d   :  { %v3105_v24 = vpop.f32.mrf.mxu0 }
 0x51e   :  { %v3106_v29 = vadd.f32 %v3105_v24, %v3074_v9 }
 0x525   :  { %v3146_v38 = vpop.f32.mrf.mxu1  ;;  %v3203_v35 = vpop.f32.mrf.mxu3 }
 0x526   :  { %v3147_v56 = vadd.f32 %v3146_v38, %v3106_v29  ;;  %v3236_v17 = vpop.f32.mrf.mxu0 }
 0x527   :  { %v3176_v1 = vpop.f32.mrf.mxu2 }
 0x528   :  { %v3177_v15 = vadd.f32 %v3176_v1, %v3147_v56 }
 0x52a   :  { %v3204_v6 = vadd.f32 %v3203_v35, %v3177_v15 }
 0x52c   :  { %v3237_v57 = vadd.f32 %v3236_v17, %v3204_v6 }
 0x52d   :  { %v3261_v19 = vpop.f32.mrf.mxu1 }
 0x52e   :  { %v3262_v37 = vadd.f32 %v3261_v19, %v3237_v57 }
 0x530   :  { %3264 = vst [vmem:[#allocation2] sm:$0x3] %v3262_v37 }
 0x531   :  { %3275 = dma.vmem_to_hbm [thread:$0]  %s3271_s19, 32, %s3273_s8, [#allocation3]  }
 0x532   :  { %3352 = dma.done.wait [#allocation3], 32  }
 0x533   :  { %3353 = vsyncadd [#allocation3], 4294967264 }
 0x534   :  { %3280 = vsyncpa [#allocation3], 1 }

</bundles_post_ra>
